<compile_context>
chip_gen: v6e
topology: v6e:2x2x1
jax: 0.10.0
libtpu: 0.0.40
codegen_flags: <defaults>
</compile_context>

<pallas_src>
import functools

import jax
import jax.numpy as jnp
from jax.experimental import pallas as pl
from jax.experimental.pallas import tpu as pltpu


# -----------------------------------------------------------------------------
# Pallas kernel: fused GRU encoder + non-autoregressive MLP decoder (point mean)
# One grid step == one (aggregate, level) base-model invocation.
# -----------------------------------------------------------------------------
def _gru_nar_kernel(min_te, lens_ref, x_ref, f_ref, ft_ref, enc_ref, dec_ref, out_ref):
    """Fused GRU-NAR forward, everything VMEM resident.

    min_te  : python int  -- static min valid encoder length over calls (skip masking)
    lens_ref: SMEM (C,) i32 -- per-call valid encoder lengths (scalar prefetch)
    x_ref   : (1, B, Te, 1)     series values, batch-major, zero-padded to Te
    f_ref   : (1, B, Te, F_in)  encoder features
    ft_ref  : (1, B, Td, F_tgt) decoder features
    enc_ref : (1, Re, 3H) packed encoder weights:
                rows [0,H)        = fused W_hh (gate order r,z,n)
                row  H            = series row of fused W_ih
                rows [H+1,H+1+Fin)= feats rows of fused W_ih
                row  H+1+Fin      = [b_ir+b_hr, b_iz+b_hz, b_in]
                row  H+2+Fin      = b_hn in lanes [0,H)   (kept inside r*(...))
    dec_ref : (1, Rd, Hd) packed decoder weights:
                rows [0,H) = W1h, rows [H,H+Ftgt) = W1f, then b1, w2-row, b2@lane0
    out_ref : (1, B, Td)
    """
    c = pl.program_id(0)
    te_len = lens_ref[c]

    _, B, Te, _ = x_ref.shape
    F_in = f_ref.shape[3]
    _, _, Td, F_tgt = ft_ref.shape
    H3 = enc_ref.shape[2]
    H = H3 // 3
    Hd = dec_ref.shape[2]

    # ---- unpack the weight slabs (tiny: ~15 KB + ~5 KB; static value slices) ----
    enc = enc_ref[0]                                    # (Re, 3H)
    w_hh = enc[0:H, :]                                  # (H, 3H), loop-invariant
    w_x = enc[H:H + 1, :]                               # (1, 3H)
    w_f = enc[H + 1:H + 1 + F_in, :]                    # (F_in, 3H)
    b_x = enc[H + 1 + F_in:H + 2 + F_in, :]             # (1, 3H)
    b_hn = enc[H + 2 + F_in:H + 3 + F_in, 0:H]          # (1, H)

    # ---- hoisted input projection: one pass for all timesteps & gates, in registers ----
    x_flat = x_ref[...].reshape(B * Te, 1)
    f_flat = f_ref[...].reshape(B * Te, F_in)
    xp = (x_flat * w_x                                  # (B*Te,1)*(1,3H) on the VPU
          + jnp.dot(f_flat, w_f, preferred_element_type=jnp.float32)
          + b_x)                                        # (B*Te, 3H)
    xp = xp.reshape(B, Te, H3)

    # ---- recurrence: exactly one (B,H)@(H,3H) matmul per step, statically unrolled ----
    h = jnp.zeros((B, H), jnp.float32)
    for t in range(Te):                                 # Te is small and static
        xp_t = xp[:, t, :]                              # (B, 3H), static slice
        hh = jnp.dot(h, w_hh, preferred_element_type=jnp.float32)   # (B, 3H)
        r = jax.nn.sigmoid(xp_t[:, 0:H] + hh[:, 0:H])
        z = jax.nn.sigmoid(xp_t[:, H:2 * H] + hh[:, H:2 * H])
        n = jnp.tanh(xp_t[:, 2 * H:3 * H] + r * (hh[:, 2 * H:3 * H] + b_hn))
        h_new = (1.0 - z) * n + z * h
        if t < min_te:
            h = h_new                                   # step valid for every call
        else:
            # exact scalar blend (1.0 / 0.0) -> masks zero-padded encoder steps
            valid = (te_len > t).astype(jnp.float32)
            h = valid * h_new + (1.0 - valid) * h

    # ---- non-autoregressive decoder, flattened to 2-D MXU matmuls ----
    dec = dec_ref[0]                                    # (Rd, Hd)
    w1h = dec[0:H, :]                                   # (H, Hd)
    w1f = dec[H:H + F_tgt, :]                           # (F_tgt, Hd)
    b1 = dec[H + F_tgt:H + F_tgt + 1, :]                # (1, Hd)
    w2 = dec[H + F_tgt + 1:H + F_tgt + 2, :]            # (1, Hd)
    b2 = dec[H + F_tgt + 2:H + F_tgt + 3, 0:1]          # (1, 1)

    ft_flat = ft_ref[...].reshape(B * Td, F_tgt)
    hid_f = jnp.dot(ft_flat, w1f,
                    preferred_element_type=jnp.float32).reshape(B, Td, Hd)
    hid_h = jnp.dot(h, w1h, preferred_element_type=jnp.float32)     # (B, Hd)
    hid = jnp.maximum(hid_f + hid_h[:, None, :] + b1, 0.0)          # (B, Td, Hd)
    # Final Hd->1 projection as VPU multiply + lane reduction (no N=1 matmul,
    # no last-dim-1 masked stores).
    out_ref[0] = jnp.sum(hid * w2, axis=-1) + b2                    # (B, Td)


# -----------------------------------------------------------------------------
# Batched wrapper: one Pallas launch for ALL (aggregate, level) base-model calls
# -----------------------------------------------------------------------------
def _batched_gru_nar(enc_all, dec_all, xs, fs, fts, te_list, td_list):
    C = len(xs)
    B = xs[0].shape[0]
    Te = max(te_list)
    Td = max(td_list)
    F_in = fs[0].shape[2]
    F_tgt = fts[0].shape[2]
    Cw = enc_all.shape[0]            # 1 if all calls share one model's weights, else C

    def pad_time(a, T):
        return jnp.pad(a.astype(jnp.float32), ((0, 0), (0, T - a.shape[1]), (0, 0)))

    x_all = jnp.stack([pad_time(x, Te) for x in xs], axis=0)      # (C, B, Te, 1)
    f_all = jnp.stack([pad_time(f, Te) for f in fs], axis=0)      # (C, B, Te, F_in)
    ft_all = jnp.stack([pad_time(ft, Td) for ft in fts], axis=0)  # (C, B, Td, F_tgt)
    lens = jnp.asarray(te_list, dtype=jnp.int32)                  # (C,) scalar prefetch

    def widx(c):
        return c if Cw > 1 else 0    # shared weights -> block never re-fetched

    grid_spec = pltpu.PrefetchScalarGridSpec(
        num_scalar_prefetch=1,
        grid=(C,),
        in_specs=[
            pl.BlockSpec((1, B, Te, 1), lambda c, lens_ref: (c, 0, 0, 0)),
            pl.BlockSpec((1, B, Te, F_in), lambda c, lens_ref: (c, 0, 0, 0)),
            pl.BlockSpec((1, B, Td, F_tgt), lambda c, lens_ref: (c, 0, 0, 0)),
            pl.BlockSpec((1,) + enc_all.shape[1:],
                         lambda c, lens_ref: (widx(c), 0, 0)),
            pl.BlockSpec((1,) + dec_all.shape[1:],
                         lambda c, lens_ref: (widx(c), 0, 0)),
        ],
        out_specs=pl.BlockSpec((1, B, Td), lambda c, lens_ref: (c, 0, 0)),
    )
    out_all = pl.pallas_call(
        functools.partial(_gru_nar_kernel, min(te_list)),
        out_shape=jax.ShapeDtypeStruct((C, B, Td), jnp.float32),
        grid_spec=grid_spec,
        # "parallel": on v7x the calls are sharded across the 2 TensorCores; no-op on
        # v5e/v6e.  VMEM footprint (~50 KB) is far under the 64 MiB v7x budget.
        compiler_params=pltpu.CompilerParams(dimension_semantics=("parallel",)),
    )(lens, x_all, f_all, ft_all, enc_all, dec_all)
    return tuple(out_all[i, :, :td_list[i], None] for i in range(C))


_batched_gru_nar_jit = jax.jit(_batched_gru_nar, static_argnums=(5, 6))


def batched_point_forward(models, inputs_list, feats_in_list, feats_tgt_list):
    """Run every (aggregate, level) base-model call in a single Pallas launch."""
    shared = all(m is models[0] for m in models)
    if shared:
        enc_all = models[0].enc[None]
        dec_all = models[0].dec[None]
    else:
        enc_all = jnp.stack([m.enc for m in models], axis=0)
        dec_all = jnp.stack([m.dec for m in models], axis=0)
    te_list = tuple(int(x.shape[1]) for x in inputs_list)
    td_list = tuple(int(ft.shape[1]) for ft in feats_tgt_list)
    outs = _batched_gru_nar_jit(enc_all, dec_all,
                                tuple(inputs_list), tuple(feats_in_list),
                                tuple(feats_tgt_list), te_list, td_list)
    return list(outs)


class PallasGRUNARPoint:
    """Point-estimate GRU-NAR base model backed by the Pallas kernel."""
    estimate_type = 'point'

    def __init__(self, enc_pack, dec_pack):
        self.enc = enc_pack
        self.dec = dec_pack

    def __call__(self, feats_in, inputs, feats_tgt):
        (out,) = batched_point_forward([self], [inputs], [feats_in], [feats_tgt])
        return out                                                   # (B, Td, 1)


# -----------------------------------------------------------------------------
# Pure-JAX reference base model (unfused parameters) — correctness oracle
# -----------------------------------------------------------------------------
def gru_nar_reference(params, feats_in, inputs, feats_tgt):
    x = jnp.concatenate([inputs, feats_in], axis=-1).astype(jnp.float32)
    B, Te, _ = x.shape
    H = params['w_hh'].shape[1]
    h = jnp.zeros((B, H), jnp.float32)
    for t in range(Te):
        xt = x[:, t, :]
        i_r = xt @ params['w_ih'][0] + params['b_ih'][0]
        i_z = xt @ params['w_ih'][1] + params['b_ih'][1]
        i_n = xt @ params['w_ih'][2] + params['b_ih'][2]
        h_r = h @ params['w_hh'][0] + params['b_hh'][0]
        h_z = h @ params['w_hh'][1] + params['b_hh'][1]
        h_n = h @ params['w_hh'][2] + params['b_hh'][2]
        r = jax.nn.sigmoid(i_r + h_r)
        z = jax.nn.sigmoid(i_z + h_z)
        n = jnp.tanh(i_n + r * h_n)
        h = (1.0 - z) * n + z * h
    ft = feats_tgt.astype(jnp.float32)
    hid = jax.nn.relu((h @ params['w1h'])[:, None, :]
                      + jnp.einsum('btf,fh->bth', ft, params['w1f'])
                      + params['b1'])
    return jnp.einsum('bth,ho->bto', hid, params['w2']) + params['b2']


class RefGRUNARPoint:
    estimate_type = 'point'

    def __init__(self, params):
        self.params = params

    def __call__(self, feats_in, inputs, feats_tgt):
        return gru_nar_reference(self.params, feats_in, inputs, feats_tgt)


# -----------------------------------------------------------------------------
# DualTPP_CF forward (JAX mirror): closed-form mean reconciliation
# -----------------------------------------------------------------------------
class DualTPP_CF:
    def __init__(self, K_list, base_models_dict, aggregates, opt_normspace=True):
        self.K_list = K_list
        self.base_models_dict = base_models_dict
        self.aggregates = aggregates
        self.opt_normspace = opt_normspace

    def get_A(self, agg, K, bs, N, sigma):
        if agg == 'sum':
            a = jnp.ones((K,), jnp.float32) / K
        elif agg == 'slope':
            if K == 1:
                a = jnp.ones((K,), jnp.float32)
            else:
                x = jnp.arange(K, dtype=jnp.float32)
                m_x = x.mean()
                s_xx = ((x - m_x) ** 2).sum()
                a = (x - m_x) / s_xx
        elif agg == 'haar':
            a_ = jnp.ones((K,), jnp.float32) / K
            s = K // 2
            a = jnp.concatenate([a_[:s] * -1.0, a_[s:]], axis=0)
        else:
            raise ValueError(f'unknown aggregate {agg}')
        A_ = jnp.kron(jnp.eye(N // K, dtype=jnp.float32), a[None, :])   # (N//K, N)
        A_ = jnp.broadcast_to(A_[None], (bs, N // K, N))
        return A_ / sigma                                               # sigma: (bs, N//K, 1)

    def forward(self, dataset, norms=None, which_split=None):
        entries = [(agg, lvl) for agg in self.aggregates for lvl in self.K_list]
        datas = [dataset[agg][lvl] for (agg, lvl) in entries]
        models = [self.base_models_dict[agg][lvl] for (agg, lvl) in entries]

        # Batched fast path: all base-model calls share the Pallas GRU-NAR architecture,
        # so they are padded/stacked and executed as a single pallas_call.
        if models and all(isinstance(m, PallasGRUNARPoint) for m in models):
            means_list = batched_point_forward(models,
                                               [d[0] for d in datas],
                                               [d[2] for d in datas],
                                               [d[3] for d in datas])
        else:
            means_list = [m(d[2], d[0], d[3]) for m, d in zip(models, datas)]

        params_dict = {}
        for (agg, lvl), means in zip(entries, means_list):
            d_ = jnp.ones_like(means) * 1e-9
            v_ = jnp.ones_like(means) * 1e-9
            stds = jnp.ones_like(means) * 1e-9
            # TODO(synk): norms.unnormalize path (opt_normspace=False) and the
            # variance/covariance estimate_types are model/dataset plumbing with no
            # Pallas content; only the point-estimate path is implemented.
            params_dict.setdefault(agg, {})[lvl] = [means, stds, d_, v_]

        base_lvl = self.aggregates[0]
        bs = params_dict[base_lvl][1][0].shape[0]
        N = params_dict[base_lvl][1][0].shape[1]

        A, b = [], []
        for agg in self.aggregates:
            for K in self.K_list:
                A.append(self.get_A(agg, K, bs, N, params_dict[agg][K][1]))
                b.append(params_dict[agg][K][0] / params_dict[agg][K][1])
        A = jnp.concatenate(A, axis=1)                                  # (bs, M, N)
        b = jnp.concatenate(b, axis=1)                                  # (bs, M, 1)
        At = jnp.swapaxes(A, 1, 2)
        # Closed-form reconciliation via solve() (better conditioned than an explicit
        # inverse given the 1/sigma^2 ~ 1e18 scaling of the normal equations).
        x = jnp.linalg.solve(jnp.matmul(At, A), jnp.matmul(At, b))

        # TODO(synk): the cvxpy KL-divergence variance optimization (cp.Variable /
        # cp.Problem.solve) has no Pallas/JAX equivalent; the std output below is the
        # base-level placeholder std instead of the solver result.
        all_preds_mu = x
        all_preds_std = params_dict[base_lvl][1][1]
        d = params_dict[base_lvl][1][2]
        v = params_dict[base_lvl][1][3]
        return all_preds_mu, d, v, all_preds_std

    __call__ = forward


# -----------------------------------------------------------------------------
# Parameter construction / packing
# -----------------------------------------------------------------------------
def _init_params(key, d_in, f_tgt, hidden, dec_hidden):
    """Deterministic init matching PyTorch default uniform(-1/sqrt(fan), 1/sqrt(fan))."""
    ks = jax.random.split(key, 9)
    u = lambda k, shape, s: jax.random.uniform(k, shape, jnp.float32, -s, s)
    s_gru = 1.0 / float(hidden) ** 0.5
    s_l1 = 1.0 / float(hidden + f_tgt) ** 0.5
    s_l2 = 1.0 / float(dec_hidden) ** 0.5
    return dict(
        w_ih=u(ks[0], (3, d_in, hidden), s_gru),      # gate order r, z, n (PyTorch GRU)
        w_hh=u(ks[1], (3, hidden, hidden), s_gru),
        b_ih=u(ks[2], (3, 1, hidden), s_gru),
        b_hh=u(ks[3], (3, 1, hidden), s_gru),
        w1h=u(ks[4], (hidden, dec_hidden), s_l1),
        w1f=u(ks[5], (f_tgt, dec_hidden), s_l1),
        b1=u(ks[6], (1, dec_hidden), s_l1),
        w2=u(ks[7], (dec_hidden, 1), s_l2),
        b2=u(ks[8], (1, 1), s_l2),
    )


def pack_params(p):
    """Pack all weights into two VMEM slabs (one encoder, one decoder DMA per launch)."""
    H = p['w_hh'].shape[1]
    Hd = p['w1h'].shape[1]
    D_in = p['w_ih'].shape[1]
    F_in = D_in - 1
    F_tgt = p['w1f'].shape[0]
    H3 = 3 * H

    w_ih = jnp.concatenate([p['w_ih'][0], p['w_ih'][1], p['w_ih'][2]], axis=-1)   # (D, 3H)
    w_hh = jnp.concatenate([p['w_hh'][0], p['w_hh'][1], p['w_hh'][2]], axis=-1)   # (H, 3H)
    b_x = jnp.concatenate([p['b_ih'][0] + p['b_hh'][0],      # r/z biases pre-folded,
                           p['b_ih'][1] + p['b_hh'][1],      # n-gate keeps only b_ih here
                           p['b_ih'][2]], axis=-1)           # (1, 3H)
    b_hn = p['b_hh'][2]                                      # (1, H): stays inside r*(...)

    rows_e = H + 3 + F_in
    Re = -(-rows_e // 8) * 8                                 # pad rows to sublane multiple
    enc = jnp.zeros((Re, H3), jnp.float32)
    enc = enc.at[0:H, :].set(w_hh)
    enc = enc.at[H:H + 1, :].set(w_ih[0:1, :])               # series-value row
    enc = enc.at[H + 1:H + 1 + F_in, :].set(w_ih[1:, :])     # feats rows
    enc = enc.at[H + 1 + F_in:H + 2 + F_in, :].set(b_x)
    enc = enc.at[H + 2 + F_in:H + 3 + F_in, 0:H].set(b_hn)

    rows_d = H + 3 + F_tgt
    Rd = -(-rows_d // 8) * 8
    dec = jnp.zeros((Rd, Hd), jnp.float32)
    dec = dec.at[0:H, :].set(p['w1h'])
    dec = dec.at[H:H + F_tgt, :].set(p['w1f'])
    dec = dec.at[H + F_tgt:H + F_tgt + 1, :].set(p['b1'])
    dec = dec.at[H + F_tgt + 1:H + F_tgt + 2, :].set(jnp.transpose(p['w2']))
    dec = dec.at[H + F_tgt + 2:H + F_tgt + 3, 0:1].set(p['b2'])
    return enc, dec


if __name__ == "__main__":
    # Small shapes consistent with the forward pass.
    B = 8                      # batch
    N = 8                      # base-level prediction horizon (level-1 decoder length)
    Te = 8                     # base-level encoder length
    F_in, F_tgt = 4, 4         # encoder / decoder feature dims
    series_dim = 1             # univariate series values
    H, Hd = 32, 32             # GRU hidden, decoder hidden
    D_in = series_dim + F_in
    K_list = [1, 4]            # aggregation levels
    aggregates = ['sum', 'slope']

    key = jax.random.PRNGKey(0)
    k_par, k_data = jax.random.split(key)
    params = _init_params(k_par, D_in, F_tgt, H, Hd)
    enc_pack, dec_pack = pack_params(params)

    # One shared Pallas-backed point-estimate base model per (aggregate, level).
    pallas_model = PallasGRUNARPoint(enc_pack, dec_pack)
    ref_model = RefGRUNARPoint(params)
    base_models_dict = {agg: {lvl: pallas_model for lvl in K_list} for agg in aggregates}
    ref_models_dict = {agg: {lvl: ref_model for lvl in K_list} for agg in aggregates}

    # Synthetic hierarchical dataset: dataset[agg][level] =
    #   (inputs, targets, feats_in, feats_tgt, ids)  -- indices as in the torch module.
    dataset = {}
    dkey = k_data
    for agg in aggregates:
        dataset[agg] = {}
        for lvl in K_list:
            dkey, k1, k2, k3 = jax.random.split(dkey, 4)
            Te_l, Td_l = max(Te // lvl, 1), max(N // lvl, 1)
            inputs_l = jax.random.normal(k1, (B, Te_l, series_dim), jnp.float32)
            feats_in_l = jax.random.normal(k2, (B, Te_l, F_in), jnp.float32)
            feats_tgt_l = jax.random.normal(k3, (B, Td_l, F_tgt), jnp.float32)
            targets_l = jnp.zeros((B, Td_l, 1), jnp.float32)
            ids_l = jnp.arange(B, dtype=jnp.int32)
            dataset[agg][lvl] = (inputs_l, targets_l, feats_in_l, feats_tgt_l, ids_l)

    model = DualTPP_CF(K_list, base_models_dict, aggregates, opt_normspace=True)
    mu, d, v, std = model(dataset, norms=None, which_split='test')
    mu = jax.block_until_ready(mu)

    # ---- correctness: Pallas base model vs pure-JAX reference, per (agg, level) ----
    for agg in aggregates:
        for lvl in K_list:
            data = dataset[agg][lvl]
            got = pallas_model(data[2], data[0], data[3])
            want = ref_model(data[2], data[0], data[3])
            assert got.shape == want.shape, (got.shape, want.shape)
            err = float(jnp.max(jnp.abs(got - want)))
            assert jnp.allclose(got, want, atol=1e-4, rtol=1e-4), (agg, lvl, err)

    # ---- correctness: full reconciliation pipeline vs pure-JAX-base-model pipeline ----
    ref_pipeline = DualTPP_CF(K_list, ref_models_dict, aggregates, opt_normspace=True)
    mu_ref, _, _, _ = ref_pipeline(dataset, norms=None, which_split='test')
    assert mu.shape == (B, N, 1), mu.shape
    assert jnp.allclose(mu, mu_ref, atol=1e-3, rtol=1e-3), \
        float(jnp.max(jnp.abs(mu - mu_ref)))

    print("KERNEL_OK")
</pallas_src>

<mosaic_0001>
module attributes {stable_mosaic.version = 11 : i64} {
  func.func @_gru_nar_kernel(%arg0: i32, %arg1: memref<4xi32, #tpu.memory_space<smem>>, %arg2: memref<1x8x8x1xf32, #tpu.memory_space<vmem>>, %arg3: memref<1x8x8x4xf32, #tpu.memory_space<vmem>>, %arg4: memref<1x8x8x4xf32, #tpu.memory_space<vmem>>, %arg5: memref<1x40x96xf32, #tpu.memory_space<vmem>>, %arg6: memref<1x40x32xf32, #tpu.memory_space<vmem>>, %arg7: memref<1x8x8xf32, #tpu.memory_space<vmem>>) attributes {dimension_semantics = [#tpu.dimension_semantics<parallel>], iteration_bounds = array<i64: 4>, scalar_prefetch = 1 : i64, scratch_operands = 0 : i64, tpu.core_type = #tpu.core_type<tc>, window_params = [{transform_indices = @transform_0, window_bounds = array<i64: 1, 8, 8, 1>}, {transform_indices = @transform_1, window_bounds = array<i64: 1, 8, 8, 4>}, {transform_indices = @transform_2, window_bounds = array<i64: 1, 8, 8, 4>}, {pipeline_mode = #tpu.pipeline_mode<synchronous>, transform_indices = @transform_3, window_bounds = array<i64: 1, 40, 96>}, {pipeline_mode = #tpu.pipeline_mode<synchronous>, transform_indices = @transform_4, window_bounds = array<i64: 1, 40, 32>}, {transform_indices = @transform_5, window_bounds = array<i64: 1, 8, 8>}]} {
    %0 = arith.index_cast %arg0 : i32 to index
    %1 = memref.load %arg1[%0] : memref<4xi32, #tpu.memory_space<smem>>
    %c0 = arith.constant 0 : index
    %c0_0 = arith.constant 0 : index
    %c0_1 = arith.constant 0 : index
    %2 = vector.load %arg5[%c0, %c0_0, %c0_1] : memref<1x40x96xf32, #tpu.memory_space<vmem>>, vector<1x40x96xf32>
    %3 = vector.shape_cast %2 : vector<1x40x96xf32> to vector<40x96xf32>
    %4 = vector.extract_strided_slice %3 {offsets = [0, 0], sizes = [32, 96], strides = [1, 1]} : vector<40x96xf32> to vector<32x96xf32>
    %5 = vector.extract_strided_slice %3 {offsets = [32, 0], sizes = [1, 96], strides = [1, 1]} : vector<40x96xf32> to vector<1x96xf32>
    %6 = vector.extract_strided_slice %3 {offsets = [33, 0], sizes = [4, 96], strides = [1, 1]} : vector<40x96xf32> to vector<4x96xf32>
    %7 = vector.extract_strided_slice %3 {offsets = [37, 0], sizes = [1, 96], strides = [1, 1]} : vector<40x96xf32> to vector<1x96xf32>
    %8 = vector.extract_strided_slice %3 {offsets = [38, 0], sizes = [1, 32], strides = [1, 1]} : vector<40x96xf32> to vector<1x32xf32>
    %c0_2 = arith.constant 0 : index
    %c0_3 = arith.constant 0 : index
    %c0_4 = arith.constant 0 : index
    %c0_5 = arith.constant 0 : index
    %9 = vector.load %arg2[%c0_2, %c0_3, %c0_4, %c0_5] : memref<1x8x8x1xf32, #tpu.memory_space<vmem>>, vector<1x8x8x1xf32>
    %10 = vector.shape_cast %9 : vector<1x8x8x1xf32> to vector<64x1xf32>
    %c0_6 = arith.constant 0 : index
    %c0_7 = arith.constant 0 : index
    %c0_8 = arith.constant 0 : index
    %c0_9 = arith.constant 0 : index
    %11 = vector.load %arg3[%c0_6, %c0_7, %c0_8, %c0_9] : memref<1x8x8x4xf32, #tpu.memory_space<vmem>>, vector<1x8x8x4xf32>
    %12 = vector.shape_cast %11 : vector<1x8x8x4xf32> to vector<64x4xf32>
    %13 = vector.broadcast %10 : vector<64x1xf32> to vector<64x96xf32>
    %14 = vector.broadcast %5 : vector<1x96xf32> to vector<64x96xf32>
    %15 = arith.mulf %13, %14 : vector<64x96xf32>
    %cst = arith.constant dense<0.000000e+00> : vector<64x96xf32>
    %16 = tpu.matmul %12, %6, %cst {dimension_numbers = #tpu.dot_dimension_numbers<[1], [0], [0], [1], [0, 0, 1, 1], [], []>} : vector<64x4xf32>, vector<4x96xf32>, vector<64x96xf32> -> vector<64x96xf32>
    %17 = arith.addf %15, %16 : vector<64x96xf32>
    %18 = vector.broadcast %7 : vector<1x96xf32> to vector<64x96xf32>
    %19 = arith.addf %17, %18 : vector<64x96xf32>
    %20 = vector.shape_cast %19 : vector<64x96xf32> to vector<8x8x96xf32>
    %cst_10 = arith.constant 0.000000e+00 : f32
    %21 = vector.broadcast %cst_10 : f32 to vector<8x32xf32>
    %22 = vector.extract_strided_slice %20 {offsets = [0, 0, 0], sizes = [8, 1, 96], strides = [1, 1, 1]} : vector<8x8x96xf32> to vector<8x1x96xf32>
    %23 = vector.shape_cast %22 : vector<8x1x96xf32> to vector<8x96xf32>
    %cst_11 = arith.constant dense<0.000000e+00> : vector<8x96xf32>
    %24 = tpu.matmul %21, %4, %cst_11 {dimension_numbers = #tpu.dot_dimension_numbers<[1], [0], [0], [1], [0, 0, 1, 1], [], []>} : vector<8x32xf32>, vector<32x96xf32>, vector<8x96xf32> -> vector<8x96xf32>
    %25 = vector.extract_strided_slice %23 {offsets = [0, 0], sizes = [8, 32], strides = [1, 1]} : vector<8x96xf32> to vector<8x32xf32>
    %26 = vector.extract_strided_slice %24 {offsets = [0, 0], sizes = [8, 32], strides = [1, 1]} : vector<8x96xf32> to vector<8x32xf32>
    %27 = arith.addf %25, %26 : vector<8x32xf32>
    %28 = arith.negf %27 : vector<8x32xf32>
    %29 = math.exp %28 : vector<8x32xf32>
    %cst_12 = arith.constant 1.000000e+00 : f32
    %30 = vector.broadcast %cst_12 : f32 to vector<8x32xf32>
    %31 = arith.addf %30, %29 : vector<8x32xf32>
    %32 = arith.divf %30, %31 : vector<8x32xf32>
    %33 = vector.extract_strided_slice %23 {offsets = [0, 32], sizes = [8, 32], strides = [1, 1]} : vector<8x96xf32> to vector<8x32xf32>
    %34 = vector.extract_strided_slice %24 {offsets = [0, 32], sizes = [8, 32], strides = [1, 1]} : vector<8x96xf32> to vector<8x32xf32>
    %35 = arith.addf %33, %34 : vector<8x32xf32>
    %36 = arith.negf %35 : vector<8x32xf32>
    %37 = math.exp %36 : vector<8x32xf32>
    %cst_13 = arith.constant 1.000000e+00 : f32
    %38 = vector.broadcast %cst_13 : f32 to vector<8x32xf32>
    %39 = arith.addf %38, %37 : vector<8x32xf32>
    %40 = arith.divf %38, %39 : vector<8x32xf32>
    %41 = vector.extract_strided_slice %23 {offsets = [0, 64], sizes = [8, 32], strides = [1, 1]} : vector<8x96xf32> to vector<8x32xf32>
    %42 = vector.extract_strided_slice %24 {offsets = [0, 64], sizes = [8, 32], strides = [1, 1]} : vector<8x96xf32> to vector<8x32xf32>
    %43 = vector.broadcast %8 : vector<1x32xf32> to vector<8x32xf32>
    %44 = arith.addf %42, %43 : vector<8x32xf32>
    %45 = arith.mulf %32, %44 : vector<8x32xf32>
    %46 = arith.addf %41, %45 : vector<8x32xf32>
    %47 = math.tanh %46 : vector<8x32xf32>
    %cst_14 = arith.constant 1.000000e+00 : f32
    %48 = vector.broadcast %cst_14 : f32 to vector<8x32xf32>
    %49 = arith.subf %48, %40 : vector<8x32xf32>
    %50 = arith.mulf %49, %47 : vector<8x32xf32>
    %51 = arith.mulf %40, %21 : vector<8x32xf32>
    %52 = arith.addf %50, %51 : vector<8x32xf32>
    %53 = vector.extract_strided_slice %20 {offsets = [0, 1, 0], sizes = [8, 1, 96], strides = [1, 1, 1]} : vector<8x8x96xf32> to vector<8x1x96xf32>
    %54 = vector.shape_cast %53 : vector<8x1x96xf32> to vector<8x96xf32>
    %cst_15 = arith.constant dense<0.000000e+00> : vector<8x96xf32>
    %55 = tpu.matmul %52, %4, %cst_15 {dimension_numbers = #tpu.dot_dimension_numbers<[1], [0], [0], [1], [0, 0, 1, 1], [], []>} : vector<8x32xf32>, vector<32x96xf32>, vector<8x96xf32> -> vector<8x96xf32>
    %56 = vector.extract_strided_slice %54 {offsets = [0, 0], sizes = [8, 32], strides = [1, 1]} : vector<8x96xf32> to vector<8x32xf32>
    %57 = vector.extract_strided_slice %55 {offsets = [0, 0], sizes = [8, 32], strides = [1, 1]} : vector<8x96xf32> to vector<8x32xf32>
    %58 = arith.addf %56, %57 : vector<8x32xf32>
    %59 = arith.negf %58 : vector<8x32xf32>
    %60 = math.exp %59 : vector<8x32xf32>
    %cst_16 = arith.constant 1.000000e+00 : f32
    %61 = vector.broadcast %cst_16 : f32 to vector<8x32xf32>
    %62 = arith.addf %61, %60 : vector<8x32xf32>
    %63 = arith.divf %61, %62 : vector<8x32xf32>
    %64 = vector.extract_strided_slice %54 {offsets = [0, 32], sizes = [8, 32], strides = [1, 1]} : vector<8x96xf32> to vector<8x32xf32>
    %65 = vector.extract_strided_slice %55 {offsets = [0, 32], sizes = [8, 32], strides = [1, 1]} : vector<8x96xf32> to vector<8x32xf32>
    %66 = arith.addf %64, %65 : vector<8x32xf32>
    %67 = arith.negf %66 : vector<8x32xf32>
    %68 = math.exp %67 : vector<8x32xf32>
    %cst_17 = arith.constant 1.000000e+00 : f32
    %69 = vector.broadcast %cst_17 : f32 to vector<8x32xf32>
    %70 = arith.addf %69, %68 : vector<8x32xf32>
    %71 = arith.divf %69, %70 : vector<8x32xf32>
    %72 = vector.extract_strided_slice %54 {offsets = [0, 64], sizes = [8, 32], strides = [1, 1]} : vector<8x96xf32> to vector<8x32xf32>
    %73 = vector.extract_strided_slice %55 {offsets = [0, 64], sizes = [8, 32], strides = [1, 1]} : vector<8x96xf32> to vector<8x32xf32>
    %74 = vector.broadcast %8 : vector<1x32xf32> to vector<8x32xf32>
    %75 = arith.addf %73, %74 : vector<8x32xf32>
    %76 = arith.mulf %63, %75 : vector<8x32xf32>
    %77 = arith.addf %72, %76 : vector<8x32xf32>
    %78 = math.tanh %77 : vector<8x32xf32>
    %cst_18 = arith.constant 1.000000e+00 : f32
    %79 = vector.broadcast %cst_18 : f32 to vector<8x32xf32>
    %80 = arith.subf %79, %71 : vector<8x32xf32>
    %81 = arith.mulf %80, %78 : vector<8x32xf32>
    %82 = arith.mulf %71, %52 : vector<8x32xf32>
    %83 = arith.addf %81, %82 : vector<8x32xf32>
    %84 = vector.extract_strided_slice %20 {offsets = [0, 2, 0], sizes = [8, 1, 96], strides = [1, 1, 1]} : vector<8x8x96xf32> to vector<8x1x96xf32>
    %85 = vector.shape_cast %84 : vector<8x1x96xf32> to vector<8x96xf32>
    %cst_19 = arith.constant dense<0.000000e+00> : vector<8x96xf32>
    %86 = tpu.matmul %83, %4, %cst_19 {dimension_numbers = #tpu.dot_dimension_numbers<[1], [0], [0], [1], [0, 0, 1, 1], [], []>} : vector<8x32xf32>, vector<32x96xf32>, vector<8x96xf32> -> vector<8x96xf32>
    %87 = vector.extract_strided_slice %85 {offsets = [0, 0], sizes = [8, 32], strides = [1, 1]} : vector<8x96xf32> to vector<8x32xf32>
    %88 = vector.extract_strided_slice %86 {offsets = [0, 0], sizes = [8, 32], strides = [1, 1]} : vector<8x96xf32> to vector<8x32xf32>
    %89 = arith.addf %87, %88 : vector<8x32xf32>
    %90 = arith.negf %89 : vector<8x32xf32>
    %91 = math.exp %90 : vector<8x32xf32>
    %cst_20 = arith.constant 1.000000e+00 : f32
    %92 = vector.broadcast %cst_20 : f32 to vector<8x32xf32>
    %93 = arith.addf %92, %91 : vector<8x32xf32>
    %94 = arith.divf %92, %93 : vector<8x32xf32>
    %95 = vector.extract_strided_slice %85 {offsets = [0, 32], sizes = [8, 32], strides = [1, 1]} : vector<8x96xf32> to vector<8x32xf32>
    %96 = vector.extract_strided_slice %86 {offsets = [0, 32], sizes = [8, 32], strides = [1, 1]} : vector<8x96xf32> to vector<8x32xf32>
    %97 = arith.addf %95, %96 : vector<8x32xf32>
    %98 = arith.negf %97 : vector<8x32xf32>
    %99 = math.exp %98 : vector<8x32xf32>
    %cst_21 = arith.constant 1.000000e+00 : f32
    %100 = vector.broadcast %cst_21 : f32 to vector<8x32xf32>
    %101 = arith.addf %100, %99 : vector<8x32xf32>
    %102 = arith.divf %100, %101 : vector<8x32xf32>
    %103 = vector.extract_strided_slice %85 {offsets = [0, 64], sizes = [8, 32], strides = [1, 1]} : vector<8x96xf32> to vector<8x32xf32>
    %104 = vector.extract_strided_slice %86 {offsets = [0, 64], sizes = [8, 32], strides = [1, 1]} : vector<8x96xf32> to vector<8x32xf32>
    %105 = vector.broadcast %8 : vector<1x32xf32> to vector<8x32xf32>
    %106 = arith.addf %104, %105 : vector<8x32xf32>
    %107 = arith.mulf %94, %106 : vector<8x32xf32>
    %108 = arith.addf %103, %107 : vector<8x32xf32>
    %109 = math.tanh %108 : vector<8x32xf32>
    %cst_22 = arith.constant 1.000000e+00 : f32
    %110 = vector.broadcast %cst_22 : f32 to vector<8x32xf32>
    %111 = arith.subf %110, %102 : vector<8x32xf32>
    %112 = arith.mulf %111, %109 : vector<8x32xf32>
    %113 = arith.mulf %102, %83 : vector<8x32xf32>
    %114 = arith.addf %112, %113 : vector<8x32xf32>
    %c2_i32 = arith.constant 2 : i32
    %115 = arith.cmpi sgt, %1, %c2_i32 : i32
    %116 = arith.extui %115 : i1 to i32
    %117 = arith.sitofp %116 : i32 to f32
    %118 = vector.broadcast %117 : f32 to vector<8x32xf32>
    %119 = arith.mulf %118, %114 : vector<8x32xf32>
    %cst_23 = arith.constant 1.000000e+00 : f32
    %120 = arith.subf %cst_23, %117 : f32
    %121 = vector.broadcast %120 : f32 to vector<8x32xf32>
    %122 = arith.mulf %121, %83 : vector<8x32xf32>
    %123 = arith.addf %119, %122 : vector<8x32xf32>
    %124 = vector.extract_strided_slice %20 {offsets = [0, 3, 0], sizes = [8, 1, 96], strides = [1, 1, 1]} : vector<8x8x96xf32> to vector<8x1x96xf32>
    %125 = vector.shape_cast %124 : vector<8x1x96xf32> to vector<8x96xf32>
    %cst_24 = arith.constant dense<0.000000e+00> : vector<8x96xf32>
    %126 = tpu.matmul %123, %4, %cst_24 {dimension_numbers = #tpu.dot_dimension_numbers<[1], [0], [0], [1], [0, 0, 1, 1], [], []>} : vector<8x32xf32>, vector<32x96xf32>, vector<8x96xf32> -> vector<8x96xf32>
    %127 = vector.extract_strided_slice %125 {offsets = [0, 0], sizes = [8, 32], strides = [1, 1]} : vector<8x96xf32> to vector<8x32xf32>
    %128 = vector.extract_strided_slice %126 {offsets = [0, 0], sizes = [8, 32], strides = [1, 1]} : vector<8x96xf32> to vector<8x32xf32>
    %129 = arith.addf %127, %128 : vector<8x32xf32>
    %130 = arith.negf %129 : vector<8x32xf32>
    %131 = math.exp %130 : vector<8x32xf32>
    %cst_25 = arith.constant 1.000000e+00 : f32
    %132 = vector.broadcast %cst_25 : f32 to vector<8x32xf32>
    %133 = arith.addf %132, %131 : vector<8x32xf32>
    %134 = arith.divf %132, %133 : vector<8x32xf32>
    %135 = vector.extract_strided_slice %125 {offsets = [0, 32], sizes = [8, 32], strides = [1, 1]} : vector<8x96xf32> to vector<8x32xf32>
    %136 = vector.extract_strided_slice %126 {offsets = [0, 32], sizes = [8, 32], strides = [1, 1]} : vector<8x96xf32> to vector<8x32xf32>
    %137 = arith.addf %135, %136 : vector<8x32xf32>
    %138 = arith.negf %137 : vector<8x32xf32>
    %139 = math.exp %138 : vector<8x32xf32>
    %cst_26 = arith.constant 1.000000e+00 : f32
    %140 = vector.broadcast %cst_26 : f32 to vector<8x32xf32>
    %141 = arith.addf %140, %139 : vector<8x32xf32>
    %142 = arith.divf %140, %141 : vector<8x32xf32>
    %143 = vector.extract_strided_slice %125 {offsets = [0, 64], sizes = [8, 32], strides = [1, 1]} : vector<8x96xf32> to vector<8x32xf32>
    %144 = vector.extract_strided_slice %126 {offsets = [0, 64], sizes = [8, 32], strides = [1, 1]} : vector<8x96xf32> to vector<8x32xf32>
    %145 = vector.broadcast %8 : vector<1x32xf32> to vector<8x32xf32>
    %146 = arith.addf %144, %145 : vector<8x32xf32>
    %147 = arith.mulf %134, %146 : vector<8x32xf32>
    %148 = arith.addf %143, %147 : vector<8x32xf32>
    %149 = math.tanh %148 : vector<8x32xf32>
    %cst_27 = arith.constant 1.000000e+00 : f32
    %150 = vector.broadcast %cst_27 : f32 to vector<8x32xf32>
    %151 = arith.subf %150, %142 : vector<8x32xf32>
    %152 = arith.mulf %151, %149 : vector<8x32xf32>
    %153 = arith.mulf %142, %123 : vector<8x32xf32>
    %154 = arith.addf %152, %153 : vector<8x32xf32>
    %c3_i32 = arith.constant 3 : i32
    %155 = arith.cmpi sgt, %1, %c3_i32 : i32
    %156 = arith.extui %155 : i1 to i32
    %157 = arith.sitofp %156 : i32 to f32
    %158 = vector.broadcast %157 : f32 to vector<8x32xf32>
    %159 = arith.mulf %158, %154 : vector<8x32xf32>
    %cst_28 = arith.constant 1.000000e+00 : f32
    %160 = arith.subf %cst_28, %157 : f32
    %161 = vector.broadcast %160 : f32 to vector<8x32xf32>
    %162 = arith.mulf %161, %123 : vector<8x32xf32>
    %163 = arith.addf %159, %162 : vector<8x32xf32>
    %164 = vector.extract_strided_slice %20 {offsets = [0, 4, 0], sizes = [8, 1, 96], strides = [1, 1, 1]} : vector<8x8x96xf32> to vector<8x1x96xf32>
    %165 = vector.shape_cast %164 : vector<8x1x96xf32> to vector<8x96xf32>
    %cst_29 = arith.constant dense<0.000000e+00> : vector<8x96xf32>
    %166 = tpu.matmul %163, %4, %cst_29 {dimension_numbers = #tpu.dot_dimension_numbers<[1], [0], [0], [1], [0, 0, 1, 1], [], []>} : vector<8x32xf32>, vector<32x96xf32>, vector<8x96xf32> -> vector<8x96xf32>
    %167 = vector.extract_strided_slice %165 {offsets = [0, 0], sizes = [8, 32], strides = [1, 1]} : vector<8x96xf32> to vector<8x32xf32>
    %168 = vector.extract_strided_slice %166 {offsets = [0, 0], sizes = [8, 32], strides = [1, 1]} : vector<8x96xf32> to vector<8x32xf32>
    %169 = arith.addf %167, %168 : vector<8x32xf32>
    %170 = arith.negf %169 : vector<8x32xf32>
    %171 = math.exp %170 : vector<8x32xf32>
    %cst_30 = arith.constant 1.000000e+00 : f32
    %172 = vector.broadcast %cst_30 : f32 to vector<8x32xf32>
    %173 = arith.addf %172, %171 : vector<8x32xf32>
    %174 = arith.divf %172, %173 : vector<8x32xf32>
    %175 = vector.extract_strided_slice %165 {offsets = [0, 32], sizes = [8, 32], strides = [1, 1]} : vector<8x96xf32> to vector<8x32xf32>
    %176 = vector.extract_strided_slice %166 {offsets = [0, 32], sizes = [8, 32], strides = [1, 1]} : vector<8x96xf32> to vector<8x32xf32>
    %177 = arith.addf %175, %176 : vector<8x32xf32>
    %178 = arith.negf %177 : vector<8x32xf32>
    %179 = math.exp %178 : vector<8x32xf32>
    %cst_31 = arith.constant 1.000000e+00 : f32
    %180 = vector.broadcast %cst_31 : f32 to vector<8x32xf32>
    %181 = arith.addf %180, %179 : vector<8x32xf32>
    %182 = arith.divf %180, %181 : vector<8x32xf32>
    %183 = vector.extract_strided_slice %165 {offsets = [0, 64], sizes = [8, 32], strides = [1, 1]} : vector<8x96xf32> to vector<8x32xf32>
    %184 = vector.extract_strided_slice %166 {offsets = [0, 64], sizes = [8, 32], strides = [1, 1]} : vector<8x96xf32> to vector<8x32xf32>
    %185 = vector.broadcast %8 : vector<1x32xf32> to vector<8x32xf32>
    %186 = arith.addf %184, %185 : vector<8x32xf32>
    %187 = arith.mulf %174, %186 : vector<8x32xf32>
    %188 = arith.addf %183, %187 : vector<8x32xf32>
    %189 = math.tanh %188 : vector<8x32xf32>
    %cst_32 = arith.constant 1.000000e+00 : f32
    %190 = vector.broadcast %cst_32 : f32 to vector<8x32xf32>
    %191 = arith.subf %190, %182 : vector<8x32xf32>
    %192 = arith.mulf %191, %189 : vector<8x32xf32>
    %193 = arith.mulf %182, %163 : vector<8x32xf32>
    %194 = arith.addf %192, %193 : vector<8x32xf32>
    %c4_i32 = arith.constant 4 : i32
    %195 = arith.cmpi sgt, %1, %c4_i32 : i32
    %196 = arith.extui %195 : i1 to i32
    %197 = arith.sitofp %196 : i32 to f32
    %198 = vector.broadcast %197 : f32 to vector<8x32xf32>
    %199 = arith.mulf %198, %194 : vector<8x32xf32>
    %cst_33 = arith.constant 1.000000e+00 : f32
    %200 = arith.subf %cst_33, %197 : f32
    %201 = vector.broadcast %200 : f32 to vector<8x32xf32>
    %202 = arith.mulf %201, %163 : vector<8x32xf32>
    %203 = arith.addf %199, %202 : vector<8x32xf32>
    %204 = vector.extract_strided_slice %20 {offsets = [0, 5, 0], sizes = [8, 1, 96], strides = [1, 1, 1]} : vector<8x8x96xf32> to vector<8x1x96xf32>
    %205 = vector.shape_cast %204 : vector<8x1x96xf32> to vector<8x96xf32>
    %cst_34 = arith.constant dense<0.000000e+00> : vector<8x96xf32>
    %206 = tpu.matmul %203, %4, %cst_34 {dimension_numbers = #tpu.dot_dimension_numbers<[1], [0], [0], [1], [0, 0, 1, 1], [], []>} : vector<8x32xf32>, vector<32x96xf32>, vector<8x96xf32> -> vector<8x96xf32>
    %207 = vector.extract_strided_slice %205 {offsets = [0, 0], sizes = [8, 32], strides = [1, 1]} : vector<8x96xf32> to vector<8x32xf32>
    %208 = vector.extract_strided_slice %206 {offsets = [0, 0], sizes = [8, 32], strides = [1, 1]} : vector<8x96xf32> to vector<8x32xf32>
    %209 = arith.addf %207, %208 : vector<8x32xf32>
    %210 = arith.negf %209 : vector<8x32xf32>
    %211 = math.exp %210 : vector<8x32xf32>
    %cst_35 = arith.constant 1.000000e+00 : f32
    %212 = vector.broadcast %cst_35 : f32 to vector<8x32xf32>
    %213 = arith.addf %212, %211 : vector<8x32xf32>
    %214 = arith.divf %212, %213 : vector<8x32xf32>
    %215 = vector.extract_strided_slice %205 {offsets = [0, 32], sizes = [8, 32], strides = [1, 1]} : vector<8x96xf32> to vector<8x32xf32>
    %216 = vector.extract_strided_slice %206 {offsets = [0, 32], sizes = [8, 32], strides = [1, 1]} : vector<8x96xf32> to vector<8x32xf32>
    %217 = arith.addf %215, %216 : vector<8x32xf32>
    %218 = arith.negf %217 : vector<8x32xf32>
    %219 = math.exp %218 : vector<8x32xf32>
    %cst_36 = arith.constant 1.000000e+00 : f32
    %220 = vector.broadcast %cst_36 : f32 to vector<8x32xf32>
    %221 = arith.addf %220, %219 : vector<8x32xf32>
    %222 = arith.divf %220, %221 : vector<8x32xf32>
    %223 = vector.extract_strided_slice %205 {offsets = [0, 64], sizes = [8, 32], strides = [1, 1]} : vector<8x96xf32> to vector<8x32xf32>
    %224 = vector.extract_strided_slice %206 {offsets = [0, 64], sizes = [8, 32], strides = [1, 1]} : vector<8x96xf32> to vector<8x32xf32>
    %225 = vector.broadcast %8 : vector<1x32xf32> to vector<8x32xf32>
    %226 = arith.addf %224, %225 : vector<8x32xf32>
    %227 = arith.mulf %214, %226 : vector<8x32xf32>
    %228 = arith.addf %223, %227 : vector<8x32xf32>
    %229 = math.tanh %228 : vector<8x32xf32>
    %cst_37 = arith.constant 1.000000e+00 : f32
    %230 = vector.broadcast %cst_37 : f32 to vector<8x32xf32>
    %231 = arith.subf %230, %222 : vector<8x32xf32>
    %232 = arith.mulf %231, %229 : vector<8x32xf32>
    %233 = arith.mulf %222, %203 : vector<8x32xf32>
    %234 = arith.addf %232, %233 : vector<8x32xf32>
    %c5_i32 = arith.constant 5 : i32
    %235 = arith.cmpi sgt, %1, %c5_i32 : i32
    %236 = arith.extui %235 : i1 to i32
    %237 = arith.sitofp %236 : i32 to f32
    %238 = vector.broadcast %237 : f32 to vector<8x32xf32>
    %239 = arith.mulf %238, %234 : vector<8x32xf32>
    %cst_38 = arith.constant 1.000000e+00 : f32
    %240 = arith.subf %cst_38, %237 : f32
    %241 = vector.broadcast %240 : f32 to vector<8x32xf32>
    %242 = arith.mulf %241, %203 : vector<8x32xf32>
    %243 = arith.addf %239, %242 : vector<8x32xf32>
    %244 = vector.extract_strided_slice %20 {offsets = [0, 6, 0], sizes = [8, 1, 96], strides = [1, 1, 1]} : vector<8x8x96xf32> to vector<8x1x96xf32>
    %245 = vector.shape_cast %244 : vector<8x1x96xf32> to vector<8x96xf32>
    %cst_39 = arith.constant dense<0.000000e+00> : vector<8x96xf32>
    %246 = tpu.matmul %243, %4, %cst_39 {dimension_numbers = #tpu.dot_dimension_numbers<[1], [0], [0], [1], [0, 0, 1, 1], [], []>} : vector<8x32xf32>, vector<32x96xf32>, vector<8x96xf32> -> vector<8x96xf32>
    %247 = vector.extract_strided_slice %245 {offsets = [0, 0], sizes = [8, 32], strides = [1, 1]} : vector<8x96xf32> to vector<8x32xf32>
    %248 = vector.extract_strided_slice %246 {offsets = [0, 0], sizes = [8, 32], strides = [1, 1]} : vector<8x96xf32> to vector<8x32xf32>
    %249 = arith.addf %247, %248 : vector<8x32xf32>
    %250 = arith.negf %249 : vector<8x32xf32>
    %251 = math.exp %250 : vector<8x32xf32>
    %cst_40 = arith.constant 1.000000e+00 : f32
    %252 = vector.broadcast %cst_40 : f32 to vector<8x32xf32>
    %253 = arith.addf %252, %251 : vector<8x32xf32>
    %254 = arith.divf %252, %253 : vector<8x32xf32>
    %255 = vector.extract_strided_slice %245 {offsets = [0, 32], sizes = [8, 32], strides = [1, 1]} : vector<8x96xf32> to vector<8x32xf32>
    %256 = vector.extract_strided_slice %246 {offsets = [0, 32], sizes = [8, 32], strides = [1, 1]} : vector<8x96xf32> to vector<8x32xf32>
    %257 = arith.addf %255, %256 : vector<8x32xf32>
    %258 = arith.negf %257 : vector<8x32xf32>
    %259 = math.exp %258 : vector<8x32xf32>
    %cst_41 = arith.constant 1.000000e+00 : f32
    %260 = vector.broadcast %cst_41 : f32 to vector<8x32xf32>
    %261 = arith.addf %260, %259 : vector<8x32xf32>
    %262 = arith.divf %260, %261 : vector<8x32xf32>
    %263 = vector.extract_strided_slice %245 {offsets = [0, 64], sizes = [8, 32], strides = [1, 1]} : vector<8x96xf32> to vector<8x32xf32>
    %264 = vector.extract_strided_slice %246 {offsets = [0, 64], sizes = [8, 32], strides = [1, 1]} : vector<8x96xf32> to vector<8x32xf32>
    %265 = vector.broadcast %8 : vector<1x32xf32> to vector<8x32xf32>
    %266 = arith.addf %264, %265 : vector<8x32xf32>
    %267 = arith.mulf %254, %266 : vector<8x32xf32>
    %268 = arith.addf %263, %267 : vector<8x32xf32>
    %269 = math.tanh %268 : vector<8x32xf32>
    %cst_42 = arith.constant 1.000000e+00 : f32
    %270 = vector.broadcast %cst_42 : f32 to vector<8x32xf32>
    %271 = arith.subf %270, %262 : vector<8x32xf32>
    %272 = arith.mulf %271, %269 : vector<8x32xf32>
    %273 = arith.mulf %262, %243 : vector<8x32xf32>
    %274 = arith.addf %272, %273 : vector<8x32xf32>
    %c6_i32 = arith.constant 6 : i32
    %275 = arith.cmpi sgt, %1, %c6_i32 : i32
    %276 = arith.extui %275 : i1 to i32
    %277 = arith.sitofp %276 : i32 to f32
    %278 = vector.broadcast %277 : f32 to vector<8x32xf32>
    %279 = arith.mulf %278, %274 : vector<8x32xf32>
    %cst_43 = arith.constant 1.000000e+00 : f32
    %280 = arith.subf %cst_43, %277 : f32
    %281 = vector.broadcast %280 : f32 to vector<8x32xf32>
    %282 = arith.mulf %281, %243 : vector<8x32xf32>
    %283 = arith.addf %279, %282 : vector<8x32xf32>
    %284 = vector.extract_strided_slice %20 {offsets = [0, 7, 0], sizes = [8, 1, 96], strides = [1, 1, 1]} : vector<8x8x96xf32> to vector<8x1x96xf32>
    %285 = vector.shape_cast %284 : vector<8x1x96xf32> to vector<8x96xf32>
    %cst_44 = arith.constant dense<0.000000e+00> : vector<8x96xf32>
    %286 = tpu.matmul %283, %4, %cst_44 {dimension_numbers = #tpu.dot_dimension_numbers<[1], [0], [0], [1], [0, 0, 1, 1], [], []>} : vector<8x32xf32>, vector<32x96xf32>, vector<8x96xf32> -> vector<8x96xf32>
    %287 = vector.extract_strided_slice %285 {offsets = [0, 0], sizes = [8, 32], strides = [1, 1]} : vector<8x96xf32> to vector<8x32xf32>
    %288 = vector.extract_strided_slice %286 {offsets = [0, 0], sizes = [8, 32], strides = [1, 1]} : vector<8x96xf32> to vector<8x32xf32>
    %289 = arith.addf %287, %288 : vector<8x32xf32>
    %290 = arith.negf %289 : vector<8x32xf32>
    %291 = math.exp %290 : vector<8x32xf32>
    %cst_45 = arith.constant 1.000000e+00 : f32
    %292 = vector.broadcast %cst_45 : f32 to vector<8x32xf32>
    %293 = arith.addf %292, %291 : vector<8x32xf32>
    %294 = arith.divf %292, %293 : vector<8x32xf32>
    %295 = vector.extract_strided_slice %285 {offsets = [0, 32], sizes = [8, 32], strides = [1, 1]} : vector<8x96xf32> to vector<8x32xf32>
    %296 = vector.extract_strided_slice %286 {offsets = [0, 32], sizes = [8, 32], strides = [1, 1]} : vector<8x96xf32> to vector<8x32xf32>
    %297 = arith.addf %295, %296 : vector<8x32xf32>
    %298 = arith.negf %297 : vector<8x32xf32>
    %299 = math.exp %298 : vector<8x32xf32>
    %cst_46 = arith.constant 1.000000e+00 : f32
    %300 = vector.broadcast %cst_46 : f32 to vector<8x32xf32>
    %301 = arith.addf %300, %299 : vector<8x32xf32>
    %302 = arith.divf %300, %301 : vector<8x32xf32>
    %303 = vector.extract_strided_slice %285 {offsets = [0, 64], sizes = [8, 32], strides = [1, 1]} : vector<8x96xf32> to vector<8x32xf32>
    %304 = vector.extract_strided_slice %286 {offsets = [0, 64], sizes = [8, 32], strides = [1, 1]} : vector<8x96xf32> to vector<8x32xf32>
    %305 = vector.broadcast %8 : vector<1x32xf32> to vector<8x32xf32>
    %306 = arith.addf %304, %305 : vector<8x32xf32>
    %307 = arith.mulf %294, %306 : vector<8x32xf32>
    %308 = arith.addf %303, %307 : vector<8x32xf32>
    %309 = math.tanh %308 : vector<8x32xf32>
    %cst_47 = arith.constant 1.000000e+00 : f32
    %310 = vector.broadcast %cst_47 : f32 to vector<8x32xf32>
    %311 = arith.subf %310, %302 : vector<8x32xf32>
    %312 = arith.mulf %311, %309 : vector<8x32xf32>
    %313 = arith.mulf %302, %283 : vector<8x32xf32>
    %314 = arith.addf %312, %313 : vector<8x32xf32>
    %c7_i32 = arith.constant 7 : i32
    %315 = arith.cmpi sgt, %1, %c7_i32 : i32
    %316 = arith.extui %315 : i1 to i32
    %317 = arith.sitofp %316 : i32 to f32
    %318 = vector.broadcast %317 : f32 to vector<8x32xf32>
    %319 = arith.mulf %318, %314 : vector<8x32xf32>
    %cst_48 = arith.constant 1.000000e+00 : f32
    %320 = arith.subf %cst_48, %317 : f32
    %321 = vector.broadcast %320 : f32 to vector<8x32xf32>
    %322 = arith.mulf %321, %283 : vector<8x32xf32>
    %323 = arith.addf %319, %322 : vector<8x32xf32>
    %c0_49 = arith.constant 0 : index
    %c0_50 = arith.constant 0 : index
    %c0_51 = arith.constant 0 : index
    %324 = vector.load %arg6[%c0_49, %c0_50, %c0_51] : memref<1x40x32xf32, #tpu.memory_space<vmem>>, vector<1x40x32xf32>
    %325 = vector.shape_cast %324 : vector<1x40x32xf32> to vector<40x32xf32>
    %326 = vector.extract_strided_slice %325 {offsets = [0, 0], sizes = [32, 32], strides = [1, 1]} : vector<40x32xf32> to vector<32x32xf32>
    %327 = vector.extract_strided_slice %325 {offsets = [32, 0], sizes = [4, 32], strides = [1, 1]} : vector<40x32xf32> to vector<4x32xf32>
    %328 = vector.extract_strided_slice %325 {offsets = [36, 0], sizes = [1, 32], strides = [1, 1]} : vector<40x32xf32> to vector<1x32xf32>
    %329 = vector.extract_strided_slice %325 {offsets = [37, 0], sizes = [1, 32], strides = [1, 1]} : vector<40x32xf32> to vector<1x32xf32>
    %330 = vector.extract_strided_slice %325 {offsets = [38, 0], sizes = [1, 1], strides = [1, 1]} : vector<40x32xf32> to vector<1x1xf32>
    %c0_52 = arith.constant 0 : index
    %c0_53 = arith.constant 0 : index
    %c0_54 = arith.constant 0 : index
    %c0_55 = arith.constant 0 : index
    %331 = vector.load %arg4[%c0_52, %c0_53, %c0_54, %c0_55] : memref<1x8x8x4xf32, #tpu.memory_space<vmem>>, vector<1x8x8x4xf32>
    %332 = vector.shape_cast %331 : vector<1x8x8x4xf32> to vector<64x4xf32>
    %cst_56 = arith.constant dense<0.000000e+00> : vector<64x32xf32>
    %333 = tpu.matmul %332, %327, %cst_56 {dimension_numbers = #tpu.dot_dimension_numbers<[1], [0], [0], [1], [0, 0, 1, 1], [], []>} : vector<64x4xf32>, vector<4x32xf32>, vector<64x32xf32> -> vector<64x32xf32>
    %334 = vector.shape_cast %333 : vector<64x32xf32> to vector<8x8x32xf32>
    %cst_57 = arith.constant dense<0.000000e+00> : vector<8x32xf32>
    %335 = tpu.matmul %323, %326, %cst_57 {dimension_numbers = #tpu.dot_dimension_numbers<[1], [0], [0], [1], [0, 0, 1, 1], [], []>} : vector<8x32xf32>, vector<32x32xf32>, vector<8x32xf32> -> vector<8x32xf32>
    %336 = vector.shape_cast %335 : vector<8x32xf32> to vector<8x1x32xf32>
    %337 = vector.broadcast %336 : vector<8x1x32xf32> to vector<8x8x32xf32>
    %338 = arith.addf %334, %337 : vector<8x8x32xf32>
    %339 = vector.shape_cast %328 : vector<1x32xf32> to vector<1x1x32xf32>
    %340 = vector.broadcast %339 : vector<1x1x32xf32> to vector<8x8x32xf32>
    %341 = arith.addf %338, %340 : vector<8x8x32xf32>
    %cst_58 = arith.constant 0.000000e+00 : f32
    %342 = vector.broadcast %cst_58 : f32 to vector<8x8x32xf32>
    %343 = arith.maximumf %341, %342 : vector<8x8x32xf32>
    %344 = vector.shape_cast %329 : vector<1x32xf32> to vector<1x1x32xf32>
    %345 = vector.broadcast %344 : vector<1x1x32xf32> to vector<8x8x32xf32>
    %346 = arith.mulf %343, %345 : vector<8x8x32xf32>
    %cst_59 = arith.constant dense<0.000000e+00> : vector<8x8xf32>
    %347 = vector.multi_reduction <add>, %346, %cst_59 [2] : vector<8x8x32xf32> to vector<8x8xf32>
    %348 = vector.broadcast %330 : vector<1x1xf32> to vector<8x8xf32>
    %349 = arith.addf %347, %348 : vector<8x8xf32>
    %c0_60 = arith.constant 0 : index
    %c0_61 = arith.constant 0 : index
    %c0_62 = arith.constant 0 : index
    %350 = vector.load %arg7[%c0_60, %c0_61, %c0_62] : memref<1x8x8xf32, #tpu.memory_space<vmem>>, vector<1x8x8xf32>
    %351 = vector.shape_cast %350 : vector<1x8x8xf32> to vector<8x8xf32>
    %352 = vector.shape_cast %349 : vector<8x8xf32> to vector<1x8x8xf32>
    tpu.vector_store %arg7[%c0_60, %c0_61, %c0_62], %352 {strides = array<i32>} : memref<1x8x8xf32, #tpu.memory_space<vmem>>, vector<1x8x8xf32>,
    return
  }
  func.func @transform_0(%arg0: i32, %arg1: memref<4xi32, #tpu.memory_space<smem>>) -> (i32, i32, i32, i32) {
    %c0_i32 = arith.constant 0 : i32
    %c0_i32_0 = arith.constant 0 : i32
    %c0_i32_1 = arith.constant 0 : i32
    %c0_i32_2 = arith.constant 0 : i32
    return %arg0, %c0_i32, %c0_i32_0, %c0_i32_1 : i32, i32, i32, i32
  }
  func.func @transform_1(%arg0: i32, %arg1: memref<4xi32, #tpu.memory_space<smem>>) -> (i32, i32, i32, i32) {
    %c0_i32 = arith.constant 0 : i32
    %c0_i32_0 = arith.constant 0 : i32
    %c0_i32_1 = arith.constant 0 : i32
    %c0_i32_2 = arith.constant 0 : i32
    return %arg0, %c0_i32, %c0_i32_0, %c0_i32_1 : i32, i32, i32, i32
  }
  func.func @transform_2(%arg0: i32, %arg1: memref<4xi32, #tpu.memory_space<smem>>) -> (i32, i32, i32, i32) {
    %c0_i32 = arith.constant 0 : i32
    %c0_i32_0 = arith.constant 0 : i32
    %c0_i32_1 = arith.constant 0 : i32
    %c0_i32_2 = arith.constant 0 : i32
    return %arg0, %c0_i32, %c0_i32_0, %c0_i32_1 : i32, i32, i32, i32
  }
  func.func @transform_3(%arg0: i32, %arg1: memref<4xi32, #tpu.memory_space<smem>>) -> (i32, i32, i32) {
    %c0_i32 = arith.constant 0 : i32
    %c0_i32_0 = arith.constant 0 : i32
    %c0_i32_1 = arith.constant 0 : i32
    %c0_i32_2 = arith.constant 0 : i32
    return %c0_i32, %c0_i32_0, %c0_i32_1 : i32, i32, i32
  }
  func.func @transform_4(%arg0: i32, %arg1: memref<4xi32, #tpu.memory_space<smem>>) -> (i32, i32, i32) {
    %c0_i32 = arith.constant 0 : i32
    %c0_i32_0 = arith.constant 0 : i32
    %c0_i32_1 = arith.constant 0 : i32
    %c0_i32_2 = arith.constant 0 : i32
    return %c0_i32, %c0_i32_0, %c0_i32_1 : i32, i32, i32
  }
  func.func @transform_5(%arg0: i32, %arg1: memref<4xi32, #tpu.memory_space<smem>>) -> (i32, i32, i32) {
    %c0_i32 = arith.constant 0 : i32
    %c0_i32_0 = arith.constant 0 : i32
    %c0_i32_1 = arith.constant 0 : i32
    return %arg0, %c0_i32, %c0_i32_0 : i32, i32, i32
  }
}

</mosaic_0001>

<bundles_post_ra>
// kernel: _batched_gru_nar.1
= control target key start
LH: loop header
LB: loop body
LE: loop exit
PB: predicated region body
PF: predicated region fallthrough
CT: control target
= control target key end

     0   :  { %s6264_s0 = inlined_call_operand.vmem [shape: s32[4], index: 0, kind: input, shape index: {}]   ;;  %s6265_s1 = inlined_call_operand.vmem [shape: f32[4,8,8,1], index: 1, kind: input, shape index: {}]   ;;  %s6266_s2 = inlined_call_operand.vmem [shape: f32[4,8,8,4], index: 2, kind: input, shape index: {}]   ;;  %s6267_s3 = inlined_call_operand.vmem [shape: f32[4,8,8,4], index: 3, kind: input, shape index: {}]   ;;  %s6268_s4 = inlined_call_operand.vmem [shape: f32[1,40,96], index: 4, kind: input, shape index: {}]   ;;  %s6269_s5 = inlined_call_operand.vmem [shape: f32[1,40,32], index: 5, kind: input, shape index: {}]   ;;  %s6270_s6 = inlined_call_operand.vmem [shape: f32[4,8,8], index: 6, kind: output, shape index: {}]  }
   0x1   :  { %s11_s23 = sshll.u32 %s6264_s0, 4  ;;  %s12_s23 = int_to_ptr.vmem [resolvable:$true] %s11_s23 }
   0x2   :  { %s4733_s24 = scalar_lea.vmem %s12_s23, 16  ;;  %p4738_p1 = scmp.lt.s32.totalorder %s12_s23, %s12_s23 }
   0x3   :  { %p4734_p0 = scmp.ne.s32.totalorder %s12_s23, %s4733_s24  ;;  %p4739_p2 = scmp.lt.s32.totalorder %s4733_s24, %s4733_s24 }
   0x5   :  { %p4740_p3 = por %p4739_p2, %p4738_p1 }
   0x7   :  { %p4741_p4 = pnand %p4740_p3, %p4734_p0 }
   0x9   :  { %4744 = shalt.err (!%p4741_p4)  }
   0xa   :  { %s4755_s25 = smov [#allocation3]  }
   0xb   :  { %14 = dma.vmem_to_smem %s12_s23, 16, %s4755_s25, [#allocation2] }
   0xc   :  { %4749 = dma.done.wait [#allocation2], 16 }
   0xd   :  { %4750 = vsyncadd [#allocation2], 4294967280 }
   0xe   :  { %16 = sfence }
   0xf   :  { %s4800_s26 = smov 0  }
  0x10 LB: > { %s4806_s0 = sadd.s32 4294967295, %s4753_s26   ;;  %p4029_p5 = scmp.ge.s32.totalorder %s4753_s26, 1  ;;  %s4753_s26 = sphi %s4800_s26, %s22_s26  }
  0x11   : > { %p214_p6 = scmp.lt.s32.totalorder %s4753_s26, 5 }
  0x13   : > { %p215_p7 = pnand %p4029_p5, %p214_p6 }
  0x14   : > { %p251_p8 = scmp.lt.s32.totalorder (!%p215_p7), %s4806_s0, 3  ;;  %s4759_s21 = smov (!%p215_p7), 64  }
  0x15   : > { %218 = sbr.rel (%p215_p7) target bundleno = 5987 (0x1763), region = 40  ;;  %s4760_s22 = smov (!%p215_p7), 96  }
  0x16   : > { %s5305_s8 = sld [smem:[#allocation3 + %s4806_s0]] (!%p215_p7) }
  0x1a   : > { %v4813_v0 = vld [vmem:[%s6268_s4 + $0x18] sm:$0xff]  ;;  %v4818_v1 = vld [vmem:[%s6268_s4 + $0x20] sm:$0xff]  ;;  %v332_v2 = vlaneseq  ;;  %vm371_vm0 = vcmask 1043456   ;;  %v4756_v3 = vmov 0.0   ;;  %v4825_v4 = vld [vmem:[%s6268_s4 + $0x10] sm:$0xff]  ;;  %s4833_s9 = scalar_select %p251_p8, %s4806_s0, 3 }
  0x1b   : > { %4209 = vmatprep.subr.mxu1 %v4756_v3  ;;  %v345_v5 = vrot.slane %v4818_v1, 1  ;;  %vm4757_vm1 = vmmov 0   ;;  %v4842_v7 = vld [vmem:[%s6268_s4 + $0x8] sm:$0xff]  ;;  %vm346_vm2 = vcmask 31744   ;;  %v4860_v9 = vld [vmem:[%s6268_s4] sm:$0xff]  ;;  %v4758_v10 = vmov 0  }
  0x1c   : > { %4210 = vmatpush3.msra.mxu1 %v4813_v0  ;;  %v4830_v6 = vshrl.u32 %v332_v2, 7  ;;  %4217 = vmatprep.mubr.msk.f32.mxu1 %vm4757_vm1, %v4756_v3  ;;  %s4847_s12 = sshll.u32 %s4833_s9, 6  ;;  %vm815_vm3 = vcmask 1041409   ;;  %vm818_vm4 = vcmask 1042434   ;;  %vm821_vm5 = vcmask 1043459   ;;  %p1485_p9 = scmp.gt.s32.totalorder %s5305_s8, 2 }
  0x1d   : > { %4211 = vmatprep.subr.mxu1 %v4756_v3  ;;  %4195 = vmatprep.subr.msk.mxu0 %vm371_vm0, %v345_v5  ;;  %s4855_s15 = scalar_lea.vmem %s6266_s2, %s4847_s12  ;;  %s4866_s20 = scalar_lea.vmem %s6265_s1, %s4847_s12  ;;  %vm824_vm6 = vcmask 1044484   ;;  %vm827_vm7 = vcmask 1045509   ;;  %vm830_vm8 = vcmask 1046534   ;;  %vm833_vm9 = vcmask 1047559  }
  0x1e   : > { %4212 = vmatpush3.msra.mxu1 %v4825_v4  ;;  %4196 = vmatpush3.msk.msra.mxu0 %vm371_vm0, %v345_v5  ;;  %v647_v8 = vsub.s32 6, %v4830_v6  ;;  %v284_v11 = vld [vmem:[%s4855_s15] sm:$0xff]  ;;  %v285_v12 = vld [vmem:[%s4855_s15 + $0x8] sm:$0xff]  ;;  %v286_v13 = vld [vmem:[%s4855_s15 + $0x10] sm:$0xff]  ;;  %v4935_v44 = vsub.s32 0, %v4830_v6  ;;  %v489_v51 = vsub.s32 5, %v4830_v6  ;;  %s6127_s19 = scalar_lea.vmem %s6267_s3, %s4847_s12 }
  0x1f   : > { %4213 = vmatprep.subr.mxu1 %v4756_v3  ;;  %4340 = vset.pattern.permute.xlu1 %v4758_v10  ;;  %v278_v15 = vld [vmem:[%s4866_s20 + $0x10] sm:$0xff]  ;;  %v287_v16 = vld [vmem:[%s4855_s15 + $0x18] sm:$0xff]  ;;  %v288_v17 = vld [vmem:[%s4855_s15 + $0x20] sm:$0xff]  ;;  %vm499_vm10 = vcmask 261120   ;;  %s5308_s10 = scalar_select %p1485_p9, 1, 0 }
  0x20   : > { %4214 = vmatpush3.msra.mxu1 %v4842_v7  ;;  %v648_v14 = vrot.slane %v4818_v1, %v647_v8  ;;  %4339 = vset.pattern.permute.xlu0 %v4758_v10  ;;  %v277_v18 = vld [vmem:[%s4866_s20 + $0x8] sm:$0xff]  ;;  %v276_v19 = vld [vmem:[%s4866_s20] sm:$0xff]  ;;  %v290_v21 = vld [vmem:[%s4855_s15 + $0x30] sm:$0xff]  ;;  %v335_v46 = vrot.slane %v4818_v1, %v4935_v44  ;;  %v490_v58 = vrot.slane %v4818_v1, %v489_v51  ;;  %p1875_p10 = scmp.gt.s32.totalorder %s5305_s8, 3  ;;  %p2265_p11 = scmp.gt.s32.totalorder %s5305_s8, 4  ;;  %vm3946_vm11 = vcmask 64512  }
  0x21   : > { %4197 = vmatprep.mubr.msk.f32.mxu0 %vm346_vm2, %v284_v11  ;;  %4215 = vmatprep.subr.mxu1 %v4756_v3  ;;  %v289_v20 = vld [vmem:[%s4855_s15 + $0x28] sm:$0xff]  ;;  %v279_v22 = vld [vmem:[%s4866_s20 + $0x18] sm:$0xff]  ;;  %v280_v23 = vld [vmem:[%s4866_s20 + $0x20] sm:$0xff]  ;;  %s1487_s11 = scvt.s32.f32 %s5308_s10  ;;  %p2655_p12 = scmp.gt.s32.totalorder %s5305_s8, 5 }
  0x22   : > { %4198 = vmatmul.mubr.msk.f32.vlgmr.msra.gmra.mxu0 %vm346_vm2, %v285_v12  ;;  %4216 = vmatpush3.msra.mxu1 %v4860_v9  ;;  %v291_v24 = vld [vmem:[%s4855_s15 + $0x38] sm:$0xff]  ;;  %v281_v25 = vld [vmem:[%s4866_s20 + $0x28] sm:$0xff]  ;;  %v282_v26 = vld [vmem:[%s4866_s20 + $0x30] sm:$0xff]  ;;  %s5468_s0 = scalar_select %p1875_p10, 1, 0 }
  0x23   : > { %4218 = vmatmul.mubr.f32.vlgmr.msra.gmra.mxu1 %v4756_v3  ;;  %4200 = vmatprep.mubr.msk.f32.mxu0 %vm346_vm2, %v286_v13  ;;  %v283_v27 = vld [vmem:[%s4866_s20 + $0x38] sm:$0xff]  ;;  %s1497_s13 = ssub.f32 1.0, %s1487_s11  ;;  %p3045_p13 = scmp.gt.s32.totalorder %s5305_s8, 6 }
  0x24   : > { %650 = vrot.lane.b32.xlu0 %v648_v14, %s4759_s21  ;;  %304 = vperm.xlu1 %4340, %v278_v15   ;;  %s1877_s14 = scvt.s32.f32 %s5468_s0  ;;  %p3435_p0 = scmp.gt.s32.totalorder %s5305_s8, 7 }
  0x25   : > { %4220 = vmatprep.subr.mxu1 %v4756_v3  ;;  %4228 = vmatprep.mubr.msk.f32.mxu1 %vm4757_vm1, %v4756_v3  ;;  %s5650_s27 = scalar_select %p2265_p11, 1, 0 }
  0x26   : > { %4201 = vmatmul.mubr.msk.f32.gmra.mxu0 %vm346_vm2, %v287_v16  ;;  %4221 = vmatpush3.msra.mxu1 %v4813_v0  ;;  %s1887_s15 = ssub.f32 1.0, %s1877_s14  ;;  %s4036_s8 = sshll.u32 %s4833_s9, 3 }
  0x27   : > { %4203 = vmatprep.mubr.msk.f32.mxu0 %vm346_vm2, %v288_v17  ;;  %4222 = vmatprep.subr.mxu1 %v4756_v3  ;;  %s2267_s28 = scvt.s32.f32 %s5650_s27 }
  0x28   : > { %299 = vperm.xlu0 %4339, %v277_v18   ;;  %294 = vperm.xlu1 %4340, %v276_v19   ;;  %s2656_s30 = scalar_select %p2655_p12, 1, 0 }
  0x29   : > { %4223 = vmatpush3.msra.mxu1 %v4825_v4  ;;  %4231 = vmatprep.subr.mxu0 %v4756_v3  ;;  %s2277_s29 = ssub.f32 1.0, %s2267_s28 }
  0x2a   : > { %4204 = vmatmul.mubr.msk.f32.gmra.mxu0 %vm346_vm2, %v289_v20  ;;  %4224 = vmatprep.subr.mxu1 %v4756_v3  ;;  %s2657_s7 = scvt.s32.f32 %s2656_s30 }
  0x2b   : > { %4206 = vmatprep.mubr.msk.f32.mxu0 %vm346_vm2, %v290_v21  ;;  %4225 = vmatpush3.msra.mxu1 %v4842_v7 }
  0x2c   : > { %309 = vperm.xlu1 %4340, %v279_v22   ;;  %314 = vperm.xlu0 %4339, %v280_v23   ;;  %s2667_s10 = ssub.f32 1.0, %s2657_s7 }
  0x2d   : > { %4226 = vmatprep.subr.mxu1 %v4756_v3  ;;  %4232 = vmatpush3.msra.mxu0 %v4813_v0 }
  0x2e   : > { %4207 = vmatmul.mubr.msk.f32.gmra.mxu0 %vm346_vm2, %v291_v24  ;;  %4227 = vmatpush3.msra.mxu1 %v4860_v9 }
  0x2f   : > { %4233 = vmatprep.subr.mxu0 %v4756_v3  ;;  %4239 = vmatprep.mubr.msk.f32.mxu0 %vm4757_vm1, %v4756_v3 }
  0x30   : > { %319 = vperm.xlu1 %4340, %v281_v25   ;;  %324 = vperm.xlu0 %4339, %v282_v26  }
  0x31   : > { %4234 = vmatpush3.msra.mxu0 %v4825_v4  ;;  %4242 = vmatprep.subr.mxu1 %v4756_v3 }
  0x32   : > { %4235 = vmatprep.subr.mxu0 %v4756_v3 }
  0x33   : > { %4236 = vmatpush3.msra.mxu0 %v4842_v7 }
  0x34   : > { %329 = vperm.xlu1 %4340, %v283_v27   ;;  %4237 = vmatprep.subr.mxu0 %v4756_v3 }
  0x35   : > { %4238 = vmatpush3.msra.mxu0 %v4860_v9 }
  0x36   : > { %4253 = vmatprep.subr.mxu0 %v4756_v3 }
  0x96   : > { %v4922_v29 = vpop.permute.xlu0 %650 }
  0x9f   : > { %v305_v40 = vpop.permute.xlu1 %304 }
  0xa0   : > { %v338_v52 = vmul.f32 %v335_v46, %v305_v40 }
  0xa3   : > { %v295_v42 = vpop.permute.xlu1 %294  ;;  %v300_v47 = vpop.permute.xlu0 %299 }
  0xa4   : > { %v336_v49 = vmul.f32 %v335_v46, %v295_v42  ;;  %v337_v54 = vmul.f32 %v335_v46, %v300_v47 }
  0xa7   : > { %v310_v48 = vpop.permute.xlu1 %309  ;;  %v315_v53 = vpop.permute.xlu0 %314 }
  0xa8   : > { %v339_v59 = vmul.f32 %v335_v46, %v310_v48  ;;  %v340_v63 = vmul.f32 %v335_v46, %v315_v53 }
  0xab   : > { %v320_v56 = vpop.permute.xlu1 %319  ;;  %v325_v5 = vpop.permute.xlu0 %324 }
  0xac   : > { %v341_v12 = vmul.f32 %v335_v46, %v320_v56  ;;  %v342_v15 = vmul.f32 %v335_v46, %v325_v5 }
  0xaf   : > { %v330_v14 = vpop.permute.xlu1 %329 }
  0xb0   : > { %v343_v22 = vmul.f32 %v335_v46, %v330_v14 }
  0xe2   : > { %v4199_v39 = vpop.f32.mrf.mxu0 }
  0xe3   : > { %v4920_v28 = vpop.f32.mrf.mxu1  ;;  %v480_v61 = vadd.f32 %v4199_v39, %v337_v54 }
  0xe4   : > { %v653_v31 = vadd.f32 %v4922_v29, %v4920_v28  ;;  %v440_v41 = vpop.f32.mrf.mxu0  ;;  %v574_v13 = vrot.slane %v4920_v28, 1  ;;  %v575_v1 = vrot.slane %v4920_v28, 2  ;;  %v576_v24 = vrot.slane %v4920_v28, 3 }
  0xe5   : > { %v4219_v30 = vpop.f32.mrf.mxu1  ;;  %v479_v55 = vadd.f32 %v440_v41, %v336_v49  ;;  %v4948_v16 = vadd.f32 %v490_v58, %v480_v61  ;;  %v579_v40 = vrot.slane %v4920_v28, 6 }
  0xe6   : > { %662 = vrot.lane.b32.xlu0 %v653_v31, %s4759_s21  ;;  %v656_v32 = vrot.slane %v653_v31, 2  ;;  %v655_v33 = vrot.slane %v653_v31, 1  ;;  %v657_v34 = vrot.slane %v653_v31, 3  ;;  %v658_v35 = vrot.slane %v653_v31, 4  ;;  %v4202_v43 = vpop.f32.mrf.mxu0 }
  0xe7   : > { %v659_v36 = vrot.slane %v653_v31, 5  ;;  %v660_v37 = vrot.slane %v653_v31, 6  ;;  %v661_v38 = vrot.slane %v653_v31, 7  ;;  %v4943_v62 = vadd.f32 %v490_v58, %v479_v55 }
  0xe8   : > { %666 = vrot.lane.b32.xlu1 %v656_v32, %s4759_s21  ;;  %v450_v45 = vpop.f32.mrf.mxu0  ;;  %v482_v10 = vadd.f32 %v4202_v43, %v339_v59  ;;  %v590_v25 = vadd.f32 %v574_v13, %v4948_v16  ;;  %v577_v31 = vrot.slane %v4920_v28, 4 }
  0xe9   : > { %v481_v60 = vadd.f32 %v450_v45, %v338_v52  ;;  %v589_v18 = vadd.f32 %v4920_v28, %v4943_v62  ;;  %v580_v45 = vrot.slane %v4920_v28, 7 }
  0xea   : > { %664 = vrot.lane.b32.xlu0 %v655_v33, %s4759_s21  ;;  %v4205_v50 = vpop.f32.mrf.mxu0  ;;  %v4953_v20 = vadd.f32 %v490_v58, %v482_v10 }
  0xeb   : > { %v4945_v11 = vadd.f32 %v490_v58, %v481_v60  ;;  %v484_v21 = vadd.f32 %v4205_v50, %v341_v12  ;;  %v4046_v30 = vmul.f32 -1.442695, %v589_v18 }
  0xec   : > { %668 = vrot.lane.b32.xlu1 %v657_v34, %s4759_s21  ;;  %v460_v57 = vpop.f32.mrf.mxu0 }
  0xed   : > { %v483_v17 = vadd.f32 %v460_v57, %v340_v63  ;;  %v591_v23 = vadd.f32 %v575_v1, %v4945_v11  ;;  %v4961_v32 = vadd.f32 %v490_v58, %v484_v21  ;;  %4341 = vpow2.f32 %v4046_v30 }
  0xee   : > { %670 = vrot.lane.b32.xlu0 %v658_v35, %s4759_s21  ;;  %v4208_v8 = vpop.f32.mrf.mxu0  ;;  %v592_v35 = vadd.f32 %v576_v24, %v4953_v20 }
  0xef   : > { %v4958_v26 = vadd.f32 %v490_v58, %v483_v17  ;;  %v486_v33 = vadd.f32 %v4208_v8, %v343_v22  ;;  %v4048_v34 = vmul.f32 -1.442695, %v591_v23 }
  0xf0   : > { %672 = vrot.lane.b32.xlu1 %v659_v36, %s4759_s21  ;;  %v470_v19 = vpop.f32.mrf.mxu0  ;;  %v578_v36 = vrot.slane %v4920_v28, 5  ;;  %v4049_v42 = vmul.f32 -1.442695, %v592_v35 }
  0xf1   : > { %v485_v27 = vadd.f32 %v470_v19, %v342_v15  ;;  %v593_v39 = vadd.f32 %v577_v31, %v4958_v26  ;;  %v4969_v41 = vadd.f32 %v490_v58, %v486_v33  ;;  %4343 = vpow2.f32 %v4048_v34 }
  0xf2   : > { %674 = vrot.lane.b32.xlu0 %v660_v37, %s4759_s21  ;;  %v4047_v37 = vmul.f32 -1.442695, %v590_v25  ;;  %v594_v43 = vadd.f32 %v578_v36, %v4961_v32 }
  0xf3   : > { %v4050_v46 = vmul.f32 -1.442695, %v593_v39  ;;  %v596_v49 = vadd.f32 %v580_v45, %v4969_v41 }
  0xf4   : > { %676 = vrot.lane.b32.xlu1 %v661_v38, %s4759_s21  ;;  %v4965_v38 = vadd.f32 %v490_v58, %v485_v27  ;;  %4345 = vpow2.f32 %v4047_v37  ;;  %v4051_v48 = vmul.f32 -1.442695, %v594_v43 }
  0xf5   : > { %4347 = vpow2.f32 %v4049_v42  ;;  %v4053_v52 = vmul.f32 -1.442695, %v596_v49 }
  0xf6   : > { %v595_v47 = vadd.f32 %v579_v40, %v4965_v38  ;;  %4349 = vpow2.f32 %v4050_v46 }
  0xf7   : > { %4351 = vpow2.f32 %v4051_v48 }
  0xf8   : > { %v4052_v50 = vmul.f32 -1.442695, %v595_v47 }
  0xfa   : > { %4353 = vpow2.f32 %v4052_v50  ;;  %v4342_v53 = vpop.eup %4341 }
  0xfb   : > { %4355 = vpow2.f32 %v4053_v52  ;;  %v621_v55 = vadd.f32 1.0, %v4342_v53 }
  0xfd   : > { %4357 = vrcp.f32 %v621_v55 }
  0xfe   : > { %v4344_v54 = vpop.eup %4343 }
  0xff   : > { %v623_v57 = vadd.f32 1.0, %v4344_v54 }
 0x101   : > { %v4346_v56 = vpop.eup %4345  ;;  %4359 = vrcp.f32 %v623_v57 }
 0x102   : > { %v4348_v28 = vpop.eup %4347  ;;  %v622_v58 = vadd.f32 1.0, %v4346_v56 }
 0x103   : > { %v4350_v59 = vpop.eup %4349  ;;  %v624_v60 = vadd.f32 1.0, %v4348_v28 }
 0x104   : > { %v4352_v61 = vpop.eup %4351  ;;  %4361 = vrcp.f32 %v622_v58  ;;  %v625_v63 = vadd.f32 1.0, %v4350_v59 }
 0x105   : > { %4363 = vrcp.f32 %v624_v60  ;;  %v626_v8 = vadd.f32 1.0, %v4352_v61 }
 0x106   : > { %4365 = vrcp.f32 %v625_v63 }
 0x107   : > { %v4354_v5 = vpop.eup %4353  ;;  %4367 = vrcp.f32 %v626_v8 }
 0x108   : > { %v4356_v10 = vpop.eup %4355  ;;  %v627_v12 = vadd.f32 1.0, %v4354_v5 }
 0x109   : > { %v628_v13 = vadd.f32 1.0, %v4356_v10 }
 0x10a   : > { %4369 = vrcp.f32 %v627_v12  ;;  %v4975_v14 = vpop.eup %4357 }
 0x10b   : > { %4371 = vrcp.f32 %v628_v13 }
 0x10e   : > { %v4978_v17 = vpop.eup %4359 }
 0x111   : > { %v4982_v21 = vpop.eup %4361 }
 0x112   : > { %v4986_v24 = vpop.eup %4363 }
 0x113   : > { %v4990_v30 = vpop.eup %4365 }
 0x114   : > { %v4994_v34 = vpop.eup %4367 }
 0x117   : > { %v4998_v37 = vpop.eup %4369 }
 0x118   : > { %v5002_v42 = vpop.eup %4371 }
 0x158   : > { %v663_v15 = vpop.permute.xlu0 %662 }
 0x159   : > { %v686_v1 = vmul.f32 %v4975_v14, %v663_v15 }
 0x15a   : > { %v667_v18 = vpop.permute.xlu1 %666 }
 0x15b   : > { %v688_v19 = vmul.f32 %v4978_v17, %v667_v18  ;;  %702 = vrot.lane.b32.xlu0 %v686_v1, %s4759_s21 }
 0x15c   : > { %v665_v22 = vpop.permute.xlu0 %664 }
 0x15d   : > { %v687_v23 = vmul.f32 %v4982_v21, %v665_v22  ;;  %706 = vrot.lane.b32.xlu1 %v688_v19, %s4759_s21  ;;  %v744_v19 = vsub.f32 1.0, %v4978_v17 }
 0x15e   : > { %v669_v25 = vpop.permute.xlu1 %668 }
 0x15f   : > { %v689_v27 = vmul.f32 %v4986_v24, %v669_v25  ;;  %704 = vrot.lane.b32.xlu0 %v687_v23, %s4759_s21  ;;  %v742_v23 = vsub.f32 1.0, %v4975_v14 }
 0x160   : > { %v671_v31 = vpop.permute.xlu0 %670 }
 0x161   : > { %v690_v33 = vmul.f32 %v4990_v30, %v671_v31  ;;  %708 = vrot.lane.b32.xlu1 %v689_v27, %s4759_s21  ;;  %v743_v27 = vsub.f32 1.0, %v4982_v21  ;;  %v792_v31 = vmul.f32 0.0, %v4978_v17  ;;  %v794_v17 = vmul.f32 0.0, %v4990_v30 }
 0x162   : > { %v673_v35 = vpop.permute.xlu1 %672 }
 0x163   : > { %v691_v36 = vmul.f32 %v4994_v34, %v673_v35  ;;  %710 = vrot.lane.b32.xlu0 %v690_v33, %s4759_s21 }
 0x164   : > { %v675_v39 = vpop.permute.xlu0 %674 }
 0x165   : > { %v692_v40 = vmul.f32 %v4998_v37, %v675_v39  ;;  %712 = vrot.lane.b32.xlu1 %v691_v36, %s4759_s21  ;;  %v791_v36 = vmul.f32 0.0, %v4982_v21 }
 0x166   : > { %v677_v43 = vpop.permute.xlu1 %676 }
 0x167   : > { %v693_v45 = vmul.f32 %v5002_v42, %v677_v43  ;;  %714 = vrot.lane.b32.xlu0 %v692_v40, %s4759_s21  ;;  %v745_v40 = vsub.f32 1.0, %v4986_v24  ;;  %v790_v43 = vmul.f32 0.0, %v4975_v14 }
 0x169   : > { %716 = vrot.lane.b32.xlu1 %v693_v45, %s4759_s21 }
 0x1cd   : > { %v703_v46 = vpop.permute.xlu0 %702 }
 0x1ce   : > { %v726_v47 = vadd.f32 %v703_v46, %v4943_v62 }
 0x1cf   : > { %v707_v48 = vpop.permute.xlu1 %706 }
 0x1d0   : > { %4373 = vtanh.f32 %v726_v47  ;;  %v728_v49 = vadd.f32 %v707_v48, %v4945_v11  ;;  %v793_v48 = vmul.f32 0.0, %v4986_v24  ;;  %v747_v24 = vsub.f32 1.0, %v4994_v34 }
 0x1d1   : > { %v705_v50 = vpop.permute.xlu0 %704 }
 0x1d2   : > { %4375 = vtanh.f32 %v728_v49  ;;  %v727_v52 = vadd.f32 %v705_v50, %v4948_v16  ;;  %v746_v50 = vsub.f32 1.0, %v4990_v30 }
 0x1d3   : > { %v709_v53 = vpop.permute.xlu1 %708 }
 0x1d4   : > { %4377 = vtanh.f32 %v727_v52  ;;  %v729_v54 = vadd.f32 %v709_v53, %v4953_v20 }
 0x1d5   : > { %v711_v55 = vpop.permute.xlu0 %710 }
 0x1d6   : > { %4379 = vtanh.f32 %v729_v54  ;;  %v730_v56 = vadd.f32 %v711_v55, %v4958_v26 }
 0x1d7   : > { %v713_v57 = vpop.permute.xlu1 %712 }
 0x1d8   : > { %4381 = vtanh.f32 %v730_v56  ;;  %v731_v28 = vadd.f32 %v713_v57, %v4961_v32  ;;  %v795_v56 = vmul.f32 0.0, %v4994_v34 }
 0x1d9   : > { %v715_v58 = vpop.permute.xlu0 %714 }
 0x1da   : > { %4383 = vtanh.f32 %v731_v28  ;;  %v732_v59 = vadd.f32 %v715_v58, %v4965_v38 }
 0x1db   : > { %v717_v60 = vpop.permute.xlu1 %716 }
 0x1dc   : > { %4385 = vtanh.f32 %v732_v59  ;;  %v733_v61 = vadd.f32 %v717_v60, %v4969_v41  ;;  %v748_v59 = vsub.f32 1.0, %v4998_v37 }
 0x1dd   : > { %v4374_v63 = vpop.eup %4373 }
 0x1de   : > { %4387 = vtanh.f32 %v733_v61  ;;  %758 = vrot.lane.b32.xlu0 %v4374_v63, %s4760_s22 }
 0x1df   : > { %v4376_v5 = vpop.eup %4375 }
 0x1e0   : > { %762 = vrot.lane.b32.xlu1 %v4376_v5, %s4760_s22  ;;  %v749_v5 = vsub.f32 1.0, %v5002_v42 }
 0x1e1   : > { %v4378_v8 = vpop.eup %4377 }
 0x1e2   : > { %760 = vrot.lane.b32.xlu0 %v4378_v8, %s4760_s22 }
 0x1e3   : > { %v4380_v10 = vpop.eup %4379 }
 0x1e4   : > { %764 = vrot.lane.b32.xlu1 %v4380_v10, %s4760_s22  ;;  %v796_v10 = vmul.f32 0.0, %v4998_v37 }
 0x1e5   : > { %v4382_v12 = vpop.eup %4381 }
 0x1e6   : > { %766 = vrot.lane.b32.xlu0 %v4382_v12, %s4760_s22 }
 0x1e7   : > { %v4384_v13 = vpop.eup %4383 }
 0x1e8   : > { %768 = vrot.lane.b32.xlu1 %v4384_v13, %s4760_s22 }
 0x1e9   : > { %v4386_v15 = vpop.eup %4385 }
 0x1ea   : > { %770 = vrot.lane.b32.xlu0 %v4386_v15, %s4760_s22  ;;  %v797_v15 = vmul.f32 0.0, %v5002_v42 }
 0x1eb   : > { %v4388_v1 = vpop.eup %4387 }
 0x1ec   : > { %772 = vrot.lane.b32.xlu1 %v4388_v1, %s4760_s22 }
 0x250   : > { %v759_v18 = vpop.permute.xlu0 %758 }
 0x251   : > { %v782_v35 = vmul.f32 %v759_v18, %v742_v23 }
 0x252   : > { %v763_v22 = vpop.permute.xlu1 %762 }
 0x253   : > { %v784_v25 = vmul.f32 %v763_v22, %v744_v19  ;;  %v5037_v52 = vadd.f32 %v790_v43, %v782_v35 }
 0x254   : > { %v761_v33 = vpop.permute.xlu0 %760 }
 0x255   : > { %v783_v39 = vmul.f32 %v761_v33, %v743_v27  ;;  %v5030_v45 = vadd.f32 %v792_v31, %v784_v25 }
 0x256   : > { %v765_v46 = vpop.permute.xlu1 %764 }
 0x257   : > { %v5032_v47 = vadd.f32 %v791_v36, %v783_v39  ;;  %v785_v49 = vmul.f32 %v765_v46, %v745_v40  ;;  %v817_v55 = vrot.slane %v5030_v45, 6 }
 0x258   : > { %v767_v21 = vpop.permute.xlu0 %766 }
 0x259   : > { %v814_v53 = vrot.slane %v5032_v47, 7  ;;  %v5040_v14 = vadd.f32 %v793_v48, %v785_v49  ;;  %v786_v54 = vmul.f32 %v767_v21, %v746_v50 }
 0x25a   : > { %v769_v57 = vpop.permute.xlu1 %768 }
 0x25b   : > { %v816_v30 = vsel %vm815_vm3, %v814_v53, %v5037_v52  ;;  %v820_v28 = vrot.slane %v5040_v14, 5  ;;  %v5050_v58 = vadd.f32 %v794_v17, %v786_v54  ;;  %v787_v61 = vmul.f32 %v769_v57, %v747_v24 }
 0x25c   : > { %v819_v60 = vsel %vm818_vm4, %v817_v55, %v816_v30  ;;  %v771_v63 = vpop.permute.xlu0 %770 }
 0x25d   : > { %v822_v34 = vsel %vm821_vm5, %v820_v28, %v819_v60  ;;  %v823_v8 = vrot.slane %v5050_v58, 4  ;;  %v788_v12 = vmul.f32 %v771_v63, %v748_v59  ;;  %v5058_v13 = vadd.f32 %v795_v56, %v787_v61 }
 0x25e   : > { %v773_v1 = vpop.permute.xlu1 %772 }
 0x25f   : > { %v5061_v18 = vadd.f32 %v796_v10, %v788_v12  ;;  %v789_v19 = vmul.f32 %v773_v1, %v749_v5  ;;  %v825_v22 = vsel %vm824_vm6, %v823_v8, %v822_v34  ;;  %v826_v23 = vrot.slane %v5058_v13, 3 }
 0x261   : > { %v829_v25 = vrot.slane %v5061_v18, 2  ;;  %v5066_v27 = vadd.f32 %v797_v15, %v789_v19  ;;  %v828_v37 = vsel %vm827_vm7, %v826_v23, %v825_v22 }
 0x263   : > { %v832_v31 = vrot.slane %v5066_v27, 1  ;;  %v831_v42 = vsel %vm830_vm8, %v829_v25, %v828_v37 }
 0x265   : > { %v834_v33 = vsel %vm833_vm9, %v832_v31, %v831_v42 }
 0x266   : > { %835 = vrot.lane.b32.xlu0 %v834_v33, %s4760_s22 }
 0x2d8   : > { %v836_v35 = vpop.permute.xlu0 %835 }
 0x2d9   : > { %4229 = vmatmul.mubr.msk.f32.vlgmr.msra.gmra.mxu1 %vm499_vm10, %v836_v35 }
 0x2da   : > { %4243 = vmatpush3.msra.mxu1 %v4813_v0  ;;  %4250 = vmatprep.mubr.msk.f32.mxu1 %vm4757_vm1, %v4756_v3 }
 0x2db   : > { %4244 = vmatprep.subr.mxu1 %v4756_v3 }
 0x2dc   : > { %4245 = vmatpush3.msra.mxu1 %v4825_v4 }
 0x2dd   : > { %4246 = vmatprep.subr.mxu1 %v4756_v3 }
 0x2de   : > { %4247 = vmatpush3.msra.mxu1 %v4842_v7 }
 0x2df   : > { %4248 = vmatprep.subr.mxu1 %v4756_v3 }
 0x2e0   : > { %4249 = vmatpush3.msra.mxu1 %v4860_v9 }
 0x2e1   : > { %4264 = vmatprep.subr.mxu1 %v4756_v3 }
 0x399   : > { %v905_v36 = vpop.f32.mrf.mxu1 }
 0x39a   : > { %v981_v0 = vadd.f32 %v905_v36, %v4922_v29  ;;  %v911_v49 = vrot.slane %v905_v36, 1  ;;  %v910_v50 = vrot.slane %v905_v36, 7  ;;  %v926_v17 = vadd.f32 %v905_v36, %v4948_v16 }
 0x39b   : > { %v4230_v39 = vpop.f32.mrf.mxu1  ;;  %v912_v21 = vrot.slane %v905_v36, 2  ;;  %v913_v55 = vrot.slane %v905_v36, 3  ;;  %v914_v57 = vrot.slane %v905_v36, 4  ;;  %v915_v59 = vrot.slane %v905_v36, 5 }
 0x39c   : > { %992 = vrot.lane.b32.xlu1 %v981_v0, %s4759_s21  ;;  %v984_v40 = vrot.slane %v981_v0, 1  ;;  %v983_v4 = vrot.slane %v981_v0, 7  ;;  %v985_v43 = vrot.slane %v981_v0, 2  ;;  %v986_v7 = vrot.slane %v981_v0, 3 }
 0x39d   : > { %v987_v9 = vrot.slane %v981_v0, 4  ;;  %v988_v46 = vrot.slane %v981_v0, 5  ;;  %v989_v48 = vrot.slane %v981_v0, 6  ;;  %v927_v54 = vadd.f32 %v911_v49, %v4945_v11 }
 0x39e   : > { %994 = vrot.lane.b32.xlu0 %v984_v40, %s4759_s21  ;;  %v925_v24 = vadd.f32 %v910_v50, %v4943_v62  ;;  %v4056_v56 = vmul.f32 -1.442695, %v926_v17  ;;  %v928_v30 = vadd.f32 %v912_v21, %v4953_v20  ;;  %v929_v60 = vadd.f32 %v913_v55, %v4958_v26 }
 0x39f   : > { %v4057_v28 = vmul.f32 -1.442695, %v927_v54  ;;  %v916_v63 = vrot.slane %v905_v36, 6  ;;  %v930_v5 = vadd.f32 %v914_v57, %v4961_v32  ;;  %v931_v8 = vadd.f32 %v915_v59, %v4965_v38 }
 0x3a0   : > { %990 = vrot.lane.b32.xlu1 %v983_v4, %s4759_s21  ;;  %v4055_v61 = vmul.f32 -1.442695, %v925_v24  ;;  %4389 = vpow2.f32 %v4056_v56  ;;  %v4058_v34 = vmul.f32 -1.442695, %v928_v30  ;;  %v4059_v10 = vmul.f32 -1.442695, %v929_v60 }
 0x3a1   : > { %4391 = vpow2.f32 %v4057_v28  ;;  %v932_v12 = vadd.f32 %v916_v63, %v4969_v41  ;;  %v4060_v15 = vmul.f32 -1.442695, %v930_v5  ;;  %v4061_v1 = vmul.f32 -1.442695, %v931_v8 }
 0x3a2   : > { %996 = vrot.lane.b32.xlu0 %v985_v43, %s4759_s21  ;;  %4393 = vpow2.f32 %v4055_v61 }
 0x3a3   : > { %4395 = vpow2.f32 %v4058_v34  ;;  %v4062_v19 = vmul.f32 -1.442695, %v932_v12 }
 0x3a4   : > { %998 = vrot.lane.b32.xlu1 %v986_v7, %s4759_s21  ;;  %4397 = vpow2.f32 %v4059_v10 }
 0x3a5   : > { %4399 = vpow2.f32 %v4060_v15 }
 0x3a6   : > { %1000 = vrot.lane.b32.xlu0 %v987_v9, %s4759_s21  ;;  %4401 = vpow2.f32 %v4061_v1 }
 0x3a7   : > { %4403 = vpow2.f32 %v4062_v19 }
 0x3a8   : > { %1002 = vrot.lane.b32.xlu1 %v988_v46, %s4759_s21 }
 0x3aa   : > { %1004 = vrot.lane.b32.xlu0 %v989_v48, %s4759_s21 }
 0x3ad   : > { %v4390_v22 = vpop.eup %4389 }
 0x3ae   : > { %v4392_v23 = vpop.eup %4391  ;;  %v958_v25 = vadd.f32 1.0, %v4390_v22 }
 0x3af   : > { %v4394_v37 = vpop.eup %4393  ;;  %v959_v31 = vadd.f32 1.0, %v4392_v23 }
 0x3b0   : > { %v4396_v42 = vpop.eup %4395  ;;  %v957_v33 = vadd.f32 1.0, %v4394_v37  ;;  %4405 = vrcp.f32 %v958_v25 }
 0x3b1   : > { %v4398_v35 = vpop.eup %4397  ;;  %v960_v36 = vadd.f32 1.0, %v4396_v42  ;;  %4407 = vrcp.f32 %v959_v31 }
 0x3b2   : > { %v4400_v39 = vpop.eup %4399  ;;  %v961_v0 = vadd.f32 1.0, %v4398_v35  ;;  %4409 = vrcp.f32 %v957_v33 }
 0x3b3   : > { %v4402_v40 = vpop.eup %4401  ;;  %v962_v4 = vadd.f32 1.0, %v4400_v39  ;;  %4411 = vrcp.f32 %v960_v36 }
 0x3b4   : > { %v4404_v43 = vpop.eup %4403  ;;  %v963_v7 = vadd.f32 1.0, %v4402_v40  ;;  %4413 = vrcp.f32 %v961_v0 }
 0x3b5   : > { %v964_v9 = vadd.f32 1.0, %v4404_v43  ;;  %4415 = vrcp.f32 %v962_v4 }
 0x3b6   : > { %4417 = vrcp.f32 %v963_v7 }
 0x3b7   : > { %4419 = vrcp.f32 %v964_v9 }
 0x3bd   : > { %v5101_v46 = vpop.eup %4405 }
 0x3be   : > { %v5104_v50 = vpop.eup %4407 }
 0x3bf   : > { %v5108_v54 = vpop.eup %4409 }
 0x3c0   : > { %v5112_v56 = vpop.eup %4411 }
 0x3c1   : > { %v5116_v28 = vpop.eup %4413 }
 0x3c2   : > { %v5120_v61 = vpop.eup %4415 }
 0x3c3   : > { %v5124_v34 = vpop.eup %4417  ;;  %v1075_v47 = vsub.f32 1.0, %v5120_v61 }
 0x3c4   : > { %v5128_v12 = vpop.eup %4419 }
 0x40e   : > { %v993_v48 = vpop.permute.xlu1 %992 }
 0x40f   : > { %v1015_v49 = vmul.f32 %v5101_v46, %v993_v48 }
 0x410   : > { %v995_v17 = vpop.permute.xlu0 %994 }
 0x411   : > { %v1016_v21 = vmul.f32 %v5104_v50, %v995_v17  ;;  %1032 = vrot.lane.b32.xlu1 %v1015_v49, %s4759_s21 }
 0x412   : > { %v991_v55 = vpop.permute.xlu1 %990 }
 0x413   : > { %v1014_v24 = vmul.f32 %v5108_v54, %v991_v55  ;;  %1034 = vrot.lane.b32.xlu0 %v1016_v21, %s4759_s21 }
 0x414   : > { %v997_v57 = vpop.permute.xlu0 %996 }
 0x415   : > { %v1017_v30 = vmul.f32 %v5112_v56, %v997_v57  ;;  %1030 = vrot.lane.b32.xlu1 %v1014_v24, %s4759_s21 }
 0x416   : > { %v999_v59 = vpop.permute.xlu1 %998 }
 0x417   : > { %v1018_v60 = vmul.f32 %v5116_v28, %v999_v59  ;;  %1036 = vrot.lane.b32.xlu0 %v1017_v30, %s4759_s21  ;;  %v1072_v59 = vsub.f32 1.0, %v5104_v50 }
 0x418   : > { %v1001_v63 = vpop.permute.xlu0 %1000 }
 0x419   : > { %v1019_v5 = vmul.f32 %v5120_v61, %v1001_v63  ;;  %1038 = vrot.lane.b32.xlu1 %v1018_v60, %s4759_s21  ;;  %v1119_v60 = vrot.slane %v5030_v45, 7 }
 0x41a   : > { %v1003_v8 = vpop.permute.xlu1 %1002 }
 0x41b   : > { %v1020_v10 = vmul.f32 %v5124_v34, %v1003_v8  ;;  %1040 = vrot.lane.b32.xlu0 %v1019_v5, %s4759_s21  ;;  %v1118_v5 = vrot.slane %v5037_v52, 7  ;;  %v1071_v8 = vsub.f32 1.0, %v5101_v46  ;;  %v1073_v52 = vsub.f32 1.0, %v5112_v56 }
 0x41c   : > { %v1005_v15 = vpop.permute.xlu0 %1004 }
 0x41d   : > { %v1021_v1 = vmul.f32 %v5128_v12, %v1005_v15  ;;  %1042 = vrot.lane.b32.xlu1 %v1020_v10, %s4759_s21  ;;  %v1070_v15 = vsub.f32 1.0, %v5108_v54 }
 0x41f   : > { %1044 = vrot.lane.b32.xlu0 %v1021_v1, %s4759_s21  ;;  %v1135_v1 = vmul.f32 %v5104_v50, %v1119_v60  ;;  %v1074_v50 = vsub.f32 1.0, %v5116_v28 }
 0x483   : > { %v1033_v19 = vpop.permute.xlu1 %1032 }
 0x484   : > { %v1055_v22 = vadd.f32 %v1033_v19, %v4948_v16 }
 0x485   : > { %v1035_v23 = vpop.permute.xlu0 %1034 }
 0x486   : > { %4421 = vtanh.f32 %v1055_v22  ;;  %v1056_v25 = vadd.f32 %v1035_v23, %v4945_v11  ;;  %v1133_v23 = vmul.f32 %v5108_v54, %v1118_v5  ;;  %v1122_v54 = vrot.slane %v5058_v13, 7 }
 0x487   : > { %v1031_v37 = vpop.permute.xlu1 %1030 }
 0x488   : > { %4423 = vtanh.f32 %v1056_v25  ;;  %v1054_v31 = vadd.f32 %v1031_v37, %v4943_v62  ;;  %v1120_v37 = vrot.slane %v5040_v14, 7  ;;  %v1138_v13 = vmul.f32 %v5120_v61, %v1122_v54 }
 0x489   : > { %v1037_v42 = vpop.permute.xlu0 %1036 }
 0x48a   : > { %4425 = vtanh.f32 %v1054_v31  ;;  %v1057_v33 = vadd.f32 %v1037_v42, %v4953_v20  ;;  %v1121_v31 = vrot.slane %v5050_v58, 7 }
 0x48b   : > { %v1039_v35 = vpop.permute.xlu1 %1038 }
 0x48c   : > { %4427 = vtanh.f32 %v1057_v33  ;;  %v1058_v36 = vadd.f32 %v1039_v35, %v4958_v26  ;;  %v1134_v33 = vmul.f32 %v5101_v46, %v814_v53  ;;  %v1137_v58 = vmul.f32 %v5116_v28, %v1121_v31  ;;  %v5228_v31 = vld [vmem:[%s6268_s4 + $0x8] sm:$0xff] }
 0x48d   : > { %v1041_v39 = vpop.permute.xlu0 %1040  ;;  %v1123_v53 = vrot.slane %v5061_v18, 7 }
 0x48e   : > { %4429 = vtanh.f32 %v1058_v36  ;;  %v1059_v0 = vadd.f32 %v1041_v39, %v4961_v32  ;;  %v1136_v36 = vmul.f32 %v5112_v56, %v1120_v37  ;;  %v5221_v37 = vld [vmem:[%s6268_s4 + $0x10] sm:$0xff] }
 0x48f   : > { %v1043_v40 = vpop.permute.xlu1 %1042  ;;  %v1139_v61 = vmul.f32 %v5124_v34, %v1123_v53 }
 0x490   : > { %4431 = vtanh.f32 %v1059_v0  ;;  %v1060_v4 = vadd.f32 %v1043_v40, %v4965_v38 }
 0x491   : > { %v1045_v43 = vpop.permute.xlu0 %1044 }
 0x492   : > { %4433 = vtanh.f32 %v1060_v4  ;;  %v1061_v7 = vadd.f32 %v1045_v43, %v4969_v41 }
 0x493   : > { %v4422_v9 = vpop.eup %4421 }
 0x494   : > { %4435 = vtanh.f32 %v1061_v7  ;;  %1088 = vrot.lane.b32.xlu1 %v4422_v9, %s4760_s22 }
 0x495   : > { %v4424_v48 = vpop.eup %4423 }
 0x496   : > { %1090 = vrot.lane.b32.xlu0 %v4424_v48, %s4760_s22  ;;  %v1076_v48 = vsub.f32 1.0, %v5124_v34 }
 0x497   : > { %v4426_v49 = vpop.eup %4425 }
 0x498   : > { %1086 = vrot.lane.b32.xlu1 %v4426_v49, %s4760_s22 }
 0x499   : > { %v4428_v17 = vpop.eup %4427 }
 0x49a   : > { %1092 = vrot.lane.b32.xlu0 %v4428_v17, %s4760_s22 }
 0x49b   : > { %v4430_v21 = vpop.eup %4429 }
 0x49c   : > { %1094 = vrot.lane.b32.xlu1 %v4430_v21, %s4760_s22 }
 0x49d   : > { %v4432_v55 = vpop.eup %4431 }
 0x49e   : > { %1096 = vrot.lane.b32.xlu0 %v4432_v55, %s4760_s22 }
 0x49f   : > { %v4434_v24 = vpop.eup %4433 }
 0x4a0   : > { %1098 = vrot.lane.b32.xlu1 %v4434_v24, %s4760_s22 }
 0x4a1   : > { %v4436_v57 = vpop.eup %4435 }
 0x4a2   : > { %1100 = vrot.lane.b32.xlu0 %v4436_v57, %s4760_s22  ;;  %v1124_v57 = vrot.slane %v5066_v27, 7 }
 0x506   : > { %v1089_v30 = vpop.permute.xlu1 %1088 }
 0x507   : > { %v1111_v22 = vmul.f32 %v1089_v30, %v1071_v8  ;;  %v1077_v30 = vsub.f32 1.0, %v5128_v12  ;;  %v1140_v8 = vmul.f32 %v5128_v12, %v1124_v57  ;;  %v5212_v12 = vld [vmem:[%s6268_s4 + $0x18] sm:$0xff] }
 0x508   : > { %v1091_v63 = vpop.permute.xlu0 %1090 }
 0x509   : > { %v1112_v10 = vmul.f32 %v1091_v63, %v1072_v59  ;;  %v5170_v0 = vadd.f32 %v1134_v33, %v1111_v22 }
 0x50a   : > { %v1087_v19 = vpop.permute.xlu1 %1086 }
 0x50b   : > { %v1110_v25 = vmul.f32 %v1087_v19, %v1070_v15  ;;  %v5158_v45 = vadd.f32 %v1135_v1, %v1112_v10 }
 0x50c   : > { %v1093_v42 = vpop.permute.xlu0 %1092 }
 0x50d   : > { %v5164_v35 = vadd.f32 %v1133_v23, %v1110_v25  ;;  %v1113_v14 = vmul.f32 %v1093_v42, %v1073_v52  ;;  %v1159_v46 = vrot.slane %v5158_v45, 7  ;;  %v5235_v52 = vld [vmem:[%s6268_s4] sm:$0xff] }
 0x50e   : > { %v1095_v39 = vpop.permute.xlu1 %1094 }
 0x50f   : > { %v1157_v40 = vrot.slane %v5164_v35, 1  ;;  %v1114_v4 = vmul.f32 %v1095_v39, %v1074_v50  ;;  %v5176_v43 = vadd.f32 %v1136_v36, %v1113_v14 }
 0x510   : > { %v1097_v56 = vpop.permute.xlu0 %1096 }
 0x511   : > { %v1158_v28 = vsel %vm815_vm3, %v5170_v0, %v1157_v40  ;;  %v5181_v7 = vadd.f32 %v1137_v58, %v1114_v4  ;;  %v1115_v9 = vmul.f32 %v1097_v56, %v1075_v47  ;;  %v1161_v49 = vrot.slane %v5176_v43, 6 }
 0x512   : > { %v1099_v17 = vpop.permute.xlu1 %1098  ;;  %v1160_v18 = vsel %vm818_vm4, %v1159_v46, %v1158_v28 }
 0x513   : > { %v1163_v21 = vrot.slane %v5181_v7, 5  ;;  %v5189_v55 = vadd.f32 %v1138_v13, %v1115_v9  ;;  %v1116_v24 = vmul.f32 %v1099_v17, %v1076_v48  ;;  %v1162_v60 = vsel %vm821_vm5, %v1161_v49, %v1160_v18 }
 0x514   : > { %v1101_v59 = vpop.permute.xlu0 %1100 }
 0x515   : > { %v1165_v63 = vrot.slane %v5189_v55, 4  ;;  %v5196_v5 = vadd.f32 %v1139_v61, %v1116_v24  ;;  %v1117_v10 = vmul.f32 %v1101_v59, %v1077_v30  ;;  %v1164_v15 = vsel %vm824_vm6, %v1163_v21, %v1162_v60 }
 0x517   : > { %v1167_v1 = vrot.slane %v5196_v5, 3  ;;  %v1166_v34 = vsel %vm827_vm7, %v1165_v63, %v1164_v15  ;;  %v5202_v19 = vadd.f32 %v1140_v8, %v1117_v10 }
 0x519   : > { %v1168_v27 = vsel %vm830_vm8, %v1167_v1, %v1166_v34  ;;  %v1169_v22 = vrot.slane %v5202_v19, 2 }
 0x51b   : > { %v1170_v23 = vsel %vm833_vm9, %v1169_v22, %v1168_v27 }
 0x51c   : > { %1171 = vrot.lane.b32.xlu1 %v1170_v23, %s4760_s22 }
 0x58e   : > { %v1172_v25 = vpop.permute.xlu1 %1171 }
 0x58f   : > { %4240 = vmatmul.mubr.msk.f32.vlgmr.msra.gmra.mxu0 %vm499_vm10, %v1172_v25 }
 0x590   : > { %4254 = vmatpush3.msra.mxu0 %v5212_v12  ;;  %4261 = vmatprep.mubr.msk.f32.mxu0 %vm4757_vm1, %v4756_v3 }
 0x591   : > { %4255 = vmatprep.subr.mxu0 %v4756_v3 }
 0x592   : > { %4256 = vmatpush3.msra.mxu0 %v5221_v37 }
 0x593   : > { %4257 = vmatprep.subr.mxu0 %v4756_v3 }
 0x594   : > { %4258 = vmatpush3.msra.mxu0 %v5228_v31 }
 0x595   : > { %4259 = vmatprep.subr.mxu0 %v4756_v3 }
 0x596   : > { %4260 = vmatpush3.msra.mxu0 %v5235_v52 }
 0x597   : > { %4275 = vmatprep.subr.mxu0 %v4756_v3 }
 0x64f   : > { %v1241_v42 = vpop.f32.mrf.mxu0 }
 0x650   : > { %v1317_v50 = vadd.f32 %v1241_v42, %v4922_v29  ;;  %v1246_v47 = vrot.slane %v1241_v42, 6  ;;  %v1247_v53 = vrot.slane %v1241_v42, 7  ;;  %v1263_v13 = vadd.f32 %v1241_v42, %v4945_v11 }
 0x651   : > { %v4241_v33 = vpop.f32.mrf.mxu0  ;;  %v1248_v56 = vrot.slane %v1241_v42, 1  ;;  %v1250_v9 = vrot.slane %v1241_v42, 3  ;;  %v1249_v17 = vrot.slane %v1241_v42, 2  ;;  %v1252_v61 = vrot.slane %v1241_v42, 5 }
 0x652   : > { %1330 = vrot.lane.b32.xlu1 %v1317_v50, %s4759_s21  ;;  %v1319_v54 = vrot.slane %v1317_v50, 6  ;;  %v1320_v36 = vrot.slane %v1317_v50, 7  ;;  %v1321_v14 = vrot.slane %v1317_v50, 1  ;;  %v1323_v58 = vrot.slane %v1317_v50, 3 }
 0x653   : > { %v1322_v39 = vrot.slane %v1317_v50, 2  ;;  %v1325_v40 = vrot.slane %v1317_v50, 5  ;;  %v1324_v4 = vrot.slane %v1317_v50, 4  ;;  %v1261_v28 = vadd.f32 %v1246_v47, %v4943_v62 }
 0x654   : > { %1326 = vrot.lane.b32.xlu0 %v1319_v54, %s4759_s21  ;;  %v1262_v48 = vadd.f32 %v1247_v53, %v4948_v16  ;;  %v4066_v49 = vmul.f32 -1.442695, %v1263_v13  ;;  %v1264_v18 = vadd.f32 %v1248_v56, %v4953_v20  ;;  %v1266_v24 = vadd.f32 %v1250_v9, %v4961_v32 }
 0x655   : > { %v4064_v21 = vmul.f32 -1.442695, %v1261_v28  ;;  %v1251_v30 = vrot.slane %v1241_v42, 4  ;;  %v1265_v59 = vadd.f32 %v1249_v17, %v4958_v26  ;;  %v1268_v63 = vadd.f32 %v1252_v61, %v4969_v41 }
 0x656   : > { %1328 = vrot.lane.b32.xlu1 %v1320_v36, %s4759_s21  ;;  %v4065_v57 = vmul.f32 -1.442695, %v1262_v48  ;;  %4437 = vpow2.f32 %v4066_v49  ;;  %v4067_v60 = vmul.f32 -1.442695, %v1264_v18  ;;  %v4069_v8 = vmul.f32 -1.442695, %v1266_v24 }
 0x657   : > { %4439 = vpow2.f32 %v4064_v21  ;;  %v1267_v10 = vadd.f32 %v1251_v30, %v4965_v38  ;;  %v4068_v15 = vmul.f32 -1.442695, %v1265_v59  ;;  %v4071_v1 = vmul.f32 -1.442695, %v1268_v63 }
 0x658   : > { %1332 = vrot.lane.b32.xlu0 %v1321_v14, %s4759_s21  ;;  %4441 = vpow2.f32 %v4065_v57 }
 0x659   : > { %4443 = vpow2.f32 %v4067_v60  ;;  %v4070_v34 = vmul.f32 -1.442695, %v1267_v10 }
 0x65a   : > { %1336 = vrot.lane.b32.xlu1 %v1323_v58, %s4759_s21  ;;  %4445 = vpow2.f32 %v4069_v8 }
 0x65b   : > { %4447 = vpow2.f32 %v4068_v15 }
 0x65c   : > { %1334 = vrot.lane.b32.xlu0 %v1322_v39, %s4759_s21  ;;  %4449 = vpow2.f32 %v4071_v1 }
 0x65d   : > { %4451 = vpow2.f32 %v4070_v34 }
 0x65e   : > { %1340 = vrot.lane.b32.xlu1 %v1325_v40, %s4759_s21 }
 0x660   : > { %1338 = vrot.lane.b32.xlu0 %v1324_v4, %s4759_s21 }
 0x663   : > { %v4438_v27 = vpop.eup %4437 }
 0x664   : > { %v4440_v22 = vpop.eup %4439  ;;  %v1295_v23 = vadd.f32 1.0, %v4438_v27 }
 0x665   : > { %v4442_v25 = vpop.eup %4441  ;;  %v1293_v42 = vadd.f32 1.0, %v4440_v22 }
 0x666   : > { %v4444_v33 = vpop.eup %4443  ;;  %v1294_v50 = vadd.f32 1.0, %v4442_v25  ;;  %4453 = vrcp.f32 %v1295_v23 }
 0x667   : > { %v4446_v54 = vpop.eup %4445  ;;  %v1296_v36 = vadd.f32 1.0, %v4444_v33  ;;  %4455 = vrcp.f32 %v1293_v42 }
 0x668   : > { %v4448_v14 = vpop.eup %4447  ;;  %v1298_v58 = vadd.f32 1.0, %v4446_v54  ;;  %4457 = vrcp.f32 %v1294_v50 }
 0x669   : > { %v4450_v39 = vpop.eup %4449  ;;  %v1297_v40 = vadd.f32 1.0, %v4448_v14  ;;  %4459 = vrcp.f32 %v1296_v36 }
 0x66a   : > { %v4452_v4 = vpop.eup %4451  ;;  %v1300_v47 = vadd.f32 1.0, %v4450_v39  ;;  %4461 = vrcp.f32 %v1298_v58 }
 0x66b   : > { %v1299_v53 = vadd.f32 1.0, %v4452_v4  ;;  %4463 = vrcp.f32 %v1297_v40 }
 0x66c   : > { %4465 = vrcp.f32 %v1300_v47 }
 0x66d   : > { %4467 = vrcp.f32 %v1299_v53 }
 0x673   : > { %v5256_v13 = vpop.eup %4453 }
 0x674   : > { %v5259_v9 = vpop.eup %4455 }
 0x675   : > { %v5263_v17 = vpop.eup %4457 }
 0x676   : > { %v5267_v61 = vpop.eup %4459 }
 0x677   : > { %v5271_v30 = vpop.eup %4461 }
 0x678   : > { %v5275_v63 = vpop.eup %4463 }
 0x679   : > { %v5279_v15 = vpop.eup %4465 }
 0x67a   : > { %v5283_v27 = vpop.eup %4467 }
 0x6c4   : > { %v1331_v56 = vpop.permute.xlu1 %1330 }
 0x6c5   : > { %v1352_v28 = vmul.f32 %v5256_v13, %v1331_v56 }
 0x6c6   : > { %v1327_v48 = vpop.permute.xlu0 %1326 }
 0x6c7   : > { %v1350_v49 = vmul.f32 %v5259_v9, %v1327_v48  ;;  %1370 = vrot.lane.b32.xlu1 %v1352_v28, %s4759_s21 }
 0x6c8   : > { %v1329_v18 = vpop.permute.xlu1 %1328 }
 0x6c9   : > { %v1351_v21 = vmul.f32 %v5263_v17, %v1329_v18  ;;  %1366 = vrot.lane.b32.xlu0 %v1350_v49, %s4759_s21 }
 0x6ca   : > { %v1333_v24 = vpop.permute.xlu0 %1332 }
 0x6cb   : > { %v1353_v57 = vmul.f32 %v5267_v61, %v1333_v24  ;;  %1368 = vrot.lane.b32.xlu1 %v1351_v21, %s4759_s21 }
 0x6cc   : > { %v1337_v59 = vpop.permute.xlu1 %1336 }
 0x6cd   : > { %v1355_v60 = vmul.f32 %v5271_v30, %v1337_v59  ;;  %1372 = vrot.lane.b32.xlu0 %v1353_v57, %s4759_s21 }
 0x6ce   : > { %v1335_v8 = vpop.permute.xlu0 %1334 }
 0x6cf   : > { %v1354_v10 = vmul.f32 %v5275_v63, %v1335_v8  ;;  %1376 = vrot.lane.b32.xlu1 %v1355_v60, %s4759_s21 }
 0x6d0   : > { %v1341_v1 = vpop.permute.xlu1 %1340 }
 0x6d1   : > { %v1357_v34 = vmul.f32 %v5279_v15, %v1341_v1  ;;  %1374 = vrot.lane.b32.xlu0 %v1354_v10, %s4759_s21  ;;  %v5311_v10 = vstv %s1497_s13 }
 0x6d2   : > { %v1339_v22 = vpop.permute.xlu0 %1338  ;;  %v1500_v1 = vmul.f32 %v5311_v10, %v5170_v0 }
 0x6d3   : > { %v1356_v23 = vmul.f32 %v5283_v27, %v1339_v22  ;;  %1380 = vrot.lane.b32.xlu1 %v1357_v34, %s4759_s21  ;;  %v5317_v34 = vmul.f32 %v5311_v10, %v5158_v45  ;;  %v1499_v22 = vmul.f32 %v5311_v10, %v5164_v35 }
 0x6d5   : > { %1378 = vrot.lane.b32.xlu0 %v1356_v23, %s4759_s21 }
 0x739   : > { %v1371_v25 = vpop.permute.xlu1 %1370 }
 0x73a   : > { %v1392_v42 = vadd.f32 %v1371_v25, %v4945_v11  ;;  %v1408_v25 = vsub.f32 1.0, %v5256_v13 }
 0x73b   : > { %v1367_v33 = vpop.permute.xlu0 %1366 }
 0x73c   : > { %4469 = vtanh.f32 %v1392_v42  ;;  %v1390_v50 = vadd.f32 %v1367_v33, %v4943_v62  ;;  %v1406_v42 = vsub.f32 1.0, %v5259_v9  ;;  %v1454_v33 = vrot.slane %v5164_v35, 7 }
 0x73d   : > { %v1369_v54 = vpop.permute.xlu1 %1368  ;;  %v1471_v35 = vmul.f32 %v5256_v13, %v1159_v46 }
 0x73e   : > { %4471 = vtanh.f32 %v1390_v50  ;;  %v1391_v36 = vadd.f32 %v1369_v54, %v4948_v16  ;;  %v1516_v50 = vrot.slane %v1500_v1, 7  ;;  %v1517_v54 = vrot.slane %v5317_v34, 7 }
 0x73f   : > { %v1373_v14 = vpop.permute.xlu0 %1372 }
 0x740   : > { %4473 = vtanh.f32 %v1391_v36  ;;  %v1393_v58 = vadd.f32 %v1373_v14, %v4953_v20  ;;  %v1515_v36 = vrot.slane %v1499_v22, 7  ;;  %v1457_v22 = vrot.slane %v5181_v7, 7 }
 0x741   : > { %v1377_v39 = vpop.permute.xlu1 %1376 }
 0x742   : > { %4475 = vtanh.f32 %v1393_v58  ;;  %v1395_v40 = vadd.f32 %v1377_v39, %v4961_v32  ;;  %v1455_v58 = vrot.slane %v5170_v0, 7 }
 0x743   : > { %v1375_v4 = vpop.permute.xlu0 %1374 }
 0x744   : > { %4477 = vtanh.f32 %v1395_v40  ;;  %v1394_v47 = vadd.f32 %v1375_v4, %v4958_v26  ;;  %v1469_v40 = vmul.f32 %v5259_v9, %v1454_v33 }
 0x745   : > { %v1381_v53 = vpop.permute.xlu1 %1380 }
 0x746   : > { %4479 = vtanh.f32 %v1394_v47  ;;  %v1397_v56 = vadd.f32 %v1381_v53, %v4969_v41  ;;  %v1407_v47 = vsub.f32 1.0, %v5263_v17  ;;  %v1502_v53 = vmul.f32 %v5311_v10, %v5176_v43 }
 0x747   : > { %v1379_v28 = vpop.permute.xlu0 %1378 }
 0x748   : > { %4481 = vtanh.f32 %v1397_v56  ;;  %v1396_v48 = vadd.f32 %v1379_v28, %v4965_v38  ;;  %v1503_v56 = vmul.f32 %v5311_v10, %v5181_v7  ;;  %v1518_v1 = vrot.slane %v1502_v53, 7 }
 0x749   : > { %v4470_v49 = vpop.eup %4469 }
 0x74a   : > { %4483 = vtanh.f32 %v1396_v48  ;;  %1426 = vrot.lane.b32.xlu1 %v4470_v49, %s4760_s22  ;;  %v1456_v48 = vrot.slane %v5176_v43, 7  ;;  %v1470_v49 = vmul.f32 %v5263_v17, %v1455_v58  ;;  %v1519_v43 = vrot.slane %v1503_v56, 7 }
 0x74b   : > { %v4472_v18 = vpop.eup %4471  ;;  %v1504_v17 = vmul.f32 %v5311_v10, %v5189_v55  ;;  %v1473_v56 = vmul.f32 %v5275_v63, %v1457_v22 }
 0x74c   : > { %1422 = vrot.lane.b32.xlu0 %v4472_v18, %s4760_s22  ;;  %v1409_v18 = vsub.f32 1.0, %v5267_v61 }
 0x74d   : > { %v4474_v21 = vpop.eup %4473  ;;  %v1520_v7 = vrot.slane %v1504_v17, 7 }
 0x74e   : > { %1424 = vrot.lane.b32.xlu1 %v4474_v21, %s4760_s22  ;;  %v1488_v21 = vstv %s1487_s11  ;;  %s3046_s11 = scalar_select %p3045_p13, 1, 0 }
 0x74f   : > { %v4476_v24 = vpop.eup %4475 }
 0x750   : > { %1428 = vrot.lane.b32.xlu0 %v4476_v24, %s4760_s22  ;;  %v1472_v24 = vmul.f32 %v5267_v61, %v1456_v48  ;;  %s3047_s13 = scvt.s32.f32 %s3046_s11  ;;  %s269_s11 = scalar_lea.vmem %s6270_s6, %s4036_s8 }
 0x751   : > { %v4478_v57 = vpop.eup %4477 }
 0x752   : > { %1432 = vrot.lane.b32.xlu1 %v4478_v57, %s4760_s22  ;;  %s3057_s0 = ssub.f32 1.0, %s3047_s13 }
 0x753   : > { %v4480_v59 = vpop.eup %4479 }
 0x754   : > { %1430 = vrot.lane.b32.xlu0 %v4480_v59, %s4760_s22  ;;  %v1411_v59 = vsub.f32 1.0, %v5271_v30 }
 0x755   : > { %v4482_v60 = vpop.eup %4481 }
 0x756   : > { %1436 = vrot.lane.b32.xlu1 %v4482_v60, %s4760_s22  ;;  %v1458_v60 = vrot.slane %v5189_v55, 7 }
 0x757   : > { %v4484_v8 = vpop.eup %4483 }
 0x758   : > { %1434 = vrot.lane.b32.xlu0 %v4484_v8, %s4760_s22  ;;  %v1474_v61 = vmul.f32 %v5271_v30, %v1458_v60 }
 0x7bc   : > { %v1427_v23 = vpop.permute.xlu1 %1426 }
 0x7bd   : > { %v1448_v39 = vmul.f32 %v1427_v23, %v1408_v25 }
 0x7be   : > { %v1423_v14 = vpop.permute.xlu0 %1422 }
 0x7bf   : > { %v1446_v4 = vmul.f32 %v1423_v14, %v1406_v42  ;;  %v1479_v45 = vadd.f32 %v1471_v35, %v1448_v39  ;;  %v1410_v14 = vsub.f32 1.0, %v5275_v63  ;;  %v1413_v39 = vsub.f32 1.0, %v5279_v15 }
 0x7c0   : > { %v1425_v28 = vpop.permute.xlu1 %1424  ;;  %v1505_v63 = vmul.f32 %v5311_v10, %v5196_v5 }
 0x7c1   : > { %v1477_v0 = vadd.f32 %v1469_v40, %v1446_v4  ;;  %v1447_v9 = vmul.f32 %v1425_v28, %v1407_v47  ;;  %v1460_v40 = vrot.slane %v5202_v19, 7  ;;  %v1491_v4 = vmul.f32 %v1488_v21, %v1479_v45 }
 0x7c2   : > { %v1429_v57 = vpop.permute.xlu0 %1428 }
 0x7c3   : > { %v1489_v8 = vmul.f32 %v1488_v21, %v1477_v0  ;;  %v1478_v46 = vadd.f32 %v1470_v49, %v1447_v9  ;;  %v1449_v13 = vmul.f32 %v1429_v57, %v1409_v18  ;;  %v1476_v30 = vmul.f32 %v5279_v15, %v1460_v40 }
 0x7c4   : > { %v1433_v34 = vpop.permute.xlu1 %1432  ;;  %v1506_v15 = vmul.f32 %v5311_v10, %v5202_v19 }
 0x7c5   : > { %v1490_v23 = vmul.f32 %v1488_v21, %v1478_v46  ;;  %v1480_v25 = vadd.f32 %v1472_v24, %v1449_v13  ;;  %v1451_v42 = vmul.f32 %v1433_v34, %v1411_v59  ;;  %v5345_v33 = vadd.f32 %v1515_v36, %v1489_v8 }
 0x7c6   : > { %v1431_v58 = vpop.permute.xlu0 %1430  ;;  %v1459_v24 = vrot.slane %v5196_v5, 7  ;;  %v5364_v59 = vadd.f32 %v1517_v54, %v1491_v4  ;;  %v1522_v10 = vrot.slane %v1506_v15, 7  ;;  %v1521_v54 = vrot.slane %v1505_v63, 7 }
 0x7c7   : > { %v5350_v47 = vadd.f32 %v1516_v50, %v1490_v23  ;;  %v1492_v55 = vmul.f32 %v1488_v21, %v1480_v25  ;;  %v1482_v53 = vadd.f32 %v1474_v61, %v1451_v42  ;;  %v1450_v35 = vmul.f32 %v1431_v58, %v1410_v14 }
 0x7c8   : > { %v1437_v36 = vpop.permute.xlu1 %1436  ;;  %v1547_v9 = vrot.slane %v5345_v33, 2  ;;  %v1412_v50 = vsub.f32 1.0, %v5283_v27  ;;  %v1475_v8 = vmul.f32 %v5283_v27, %v1459_v24 }
 0x7c9   : > { %v1548_v28 = vrot.slane %v5350_v47, 1  ;;  %v5355_v48 = vadd.f32 %v1518_v1, %v1492_v55  ;;  %v1494_v0 = vmul.f32 %v1488_v21, %v1482_v53  ;;  %v1453_v49 = vmul.f32 %v1437_v36, %v1413_v39 }
 0x7ca   : > { %v1481_v18 = vadd.f32 %v1473_v56, %v1450_v35  ;;  %v1435_v57 = vpop.permute.xlu0 %1434 }
 0x7cb   : > { %v1484_v60 = vadd.f32 %v1476_v30, %v1453_v49  ;;  %v1452_v46 = vmul.f32 %v1435_v57, %v1412_v50  ;;  %v1549_v13 = vsel %vm815_vm3, %v1548_v28, %v1547_v9  ;;  %v1551_v1 = vrot.slane %v5355_v48, 7 }
 0x7cc   : > { %v1493_v45 = vmul.f32 %v1488_v21, %v1481_v18  ;;  %v5369_v17 = vadd.f32 %v1520_v7, %v1494_v0  ;;  %v1550_v5 = vsel %vm818_vm4, %v5364_v59, %v1549_v13 }
 0x7cd   : > { %v1496_v34 = vmul.f32 %v1488_v21, %v1484_v60  ;;  %v1483_v19 = vadd.f32 %v1475_v8, %v1452_v46  ;;  %v1552_v61 = vsel %vm821_vm5, %v1551_v1, %v1550_v5 }
 0x7ce   : > { %v5373_v22 = vadd.f32 %v1519_v43, %v1493_v45  ;;  %v1555_v42 = vrot.slane %v5369_v17, 5 }
 0x7cf   : > { %v1495_v25 = vmul.f32 %v1488_v21, %v1483_v19  ;;  %v5376_v27 = vadd.f32 %v1522_v10, %v1496_v34 }
 0x7d0   : > { %v1553_v23 = vrot.slane %v5373_v22, 6 }
 0x7d1   : > { %v5382_v14 = vadd.f32 %v1521_v54, %v1495_v25  ;;  %v1559_v40 = vrot.slane %v5376_v27, 3 }
 0x7d2   : > { %v1554_v58 = vsel %vm824_vm6, %v1553_v23, %v1552_v61 }
 0x7d3   : > { %v1556_v43 = vsel %vm827_vm7, %v1555_v42, %v1554_v58  ;;  %v1557_v39 = vrot.slane %v5382_v14, 4 }
 0x7d5   : > { %v1558_v21 = vsel %vm830_vm8, %v1557_v39, %v1556_v43 }
 0x7d6   : > { %v1560_v4 = vsel %vm833_vm9, %v1559_v40, %v1558_v21 }
 0x7d7   : > { %1561 = vrot.lane.b32.xlu0 %v1560_v4, %s4760_s22 }
 0x849   : > { %v1562_v55 = vpop.permute.xlu0 %1561 }
 0x84a   : > { %4251 = vmatmul.mubr.msk.f32.vlgmr.msra.gmra.mxu1 %vm499_vm10, %v1562_v55 }
 0x84b   : > { %4265 = vmatpush3.msra.mxu1 %v5212_v12  ;;  %4272 = vmatprep.mubr.msk.f32.mxu1 %vm4757_vm1, %v4756_v3 }
 0x84c   : > { %4266 = vmatprep.subr.mxu1 %v4756_v3 }
 0x84d   : > { %4267 = vmatpush3.msra.mxu1 %v5221_v37 }
 0x84e   : > { %4268 = vmatprep.subr.mxu1 %v4756_v3 }
 0x84f   : > { %4269 = vmatpush3.msra.mxu1 %v5228_v31 }
 0x850   : > { %4270 = vmatprep.subr.mxu1 %v4756_v3 }
 0x851   : > { %4271 = vmatpush3.msra.mxu1 %v5235_v52 }
 0x852   : > { %4286 = vmatprep.subr.mxu1 %v4756_v3 }
 0x90a   : > { %v1631_v53 = vpop.f32.mrf.mxu1 }
 0x90b   : > { %v1707_v12 = vadd.f32 %v1631_v53, %v4922_v29  ;;  %v1637_v28 = vrot.slane %v1631_v53, 6  ;;  %v1636_v0 = vrot.slane %v1631_v53, 5  ;;  %v1654_v49 = vadd.f32 %v1631_v53, %v4953_v20 }
 0x90c   : > { %v4252_v7 = vpop.f32.mrf.mxu1  ;;  %v1639_v9 = vrot.slane %v1631_v53, 1  ;;  %v1638_v50 = vrot.slane %v1631_v53, 7  ;;  %v1640_v63 = vrot.slane %v1631_v53, 2  ;;  %v1641_v45 = vrot.slane %v1631_v53, 3 }
 0x90d   : > { %1722 = vrot.lane.b32.xlu1 %v1707_v12, %s4759_s21  ;;  %v1710_v56 = vrot.slane %v1707_v12, 6  ;;  %v1709_v37 = vrot.slane %v1707_v12, 5  ;;  %v1712_v35 = vrot.slane %v1707_v12, 1  ;;  %v1711_v31 = vrot.slane %v1707_v12, 7 }
 0x90e   : > { %v1713_v52 = vrot.slane %v1707_v12, 2  ;;  %v1714_v30 = vrot.slane %v1707_v12, 3  ;;  %v1715_v36 = vrot.slane %v1707_v12, 4  ;;  %v1652_v18 = vadd.f32 %v1637_v28, %v4948_v16 }
 0x90f   : > { %1718 = vrot.lane.b32.xlu0 %v1710_v56, %s4759_s21  ;;  %v1651_v24 = vadd.f32 %v1636_v0, %v4943_v62  ;;  %v4076_v57 = vmul.f32 -1.442695, %v1654_v49  ;;  %v1655_v15 = vadd.f32 %v1639_v9, %v4958_v26  ;;  %v1653_v8 = vadd.f32 %v1638_v50, %v4945_v11 }
 0x910   : > { %v4074_v60 = vmul.f32 -1.442695, %v1652_v18  ;;  %v1642_v13 = vrot.slane %v1631_v53, 4  ;;  %v1656_v34 = vadd.f32 %v1640_v63, %v4961_v32  ;;  %v1657_v19 = vadd.f32 %v1641_v45, %v4965_v38 }
 0x911   : > { %1716 = vrot.lane.b32.xlu1 %v1709_v37, %s4759_s21  ;;  %v4073_v46 = vmul.f32 -1.442695, %v1651_v24  ;;  %4485 = vpow2.f32 %v4076_v57  ;;  %v4077_v5 = vmul.f32 -1.442695, %v1655_v15  ;;  %v4075_v10 = vmul.f32 -1.442695, %v1653_v8 }
 0x912   : > { %4487 = vpow2.f32 %v4074_v60  ;;  %v1658_v54 = vadd.f32 %v1642_v13, %v4969_v41  ;;  %v4078_v23 = vmul.f32 -1.442695, %v1656_v34  ;;  %v4079_v25 = vmul.f32 -1.442695, %v1657_v19 }
 0x913   : > { %1724 = vrot.lane.b32.xlu0 %v1712_v35, %s4759_s21  ;;  %4489 = vpow2.f32 %v4073_v46 }
 0x914   : > { %4491 = vpow2.f32 %v4077_v5  ;;  %v4080_v61 = vmul.f32 -1.442695, %v1658_v54 }
 0x915   : > { %1720 = vrot.lane.b32.xlu1 %v1711_v31, %s4759_s21  ;;  %4493 = vpow2.f32 %v4075_v10 }
 0x916   : > { %4495 = vpow2.f32 %v4078_v23 }
 0x917   : > { %1726 = vrot.lane.b32.xlu0 %v1713_v52, %s4759_s21  ;;  %4497 = vpow2.f32 %v4079_v25 }
 0x918   : > { %4499 = vpow2.f32 %v4080_v61 }
 0x919   : > { %1728 = vrot.lane.b32.xlu1 %v1714_v30, %s4759_s21 }
 0x91b   : > { %1730 = vrot.lane.b32.xlu0 %v1715_v36, %s4759_s21 }
 0x91e   : > { %v4486_v42 = vpop.eup %4485 }
 0x91f   : > { %v4488_v58 = vpop.eup %4487  ;;  %v1686_v43 = vadd.f32 1.0, %v4486_v42 }
 0x920   : > { %v4490_v39 = vpop.eup %4489  ;;  %v1684_v40 = vadd.f32 1.0, %v4488_v58 }
 0x921   : > { %v4492_v21 = vpop.eup %4491  ;;  %v1683_v4 = vadd.f32 1.0, %v4490_v39  ;;  %4501 = vrcp.f32 %v1686_v43 }
 0x922   : > { %v4494_v55 = vpop.eup %4493  ;;  %v1687_v53 = vadd.f32 1.0, %v4492_v21  ;;  %4503 = vrcp.f32 %v1684_v40 }
 0x923   : > { %v4496_v7 = vpop.eup %4495  ;;  %v1685_v12 = vadd.f32 1.0, %v4494_v55  ;;  %4505 = vrcp.f32 %v1683_v4 }
 0x924   : > { %v4498_v56 = vpop.eup %4497  ;;  %v1688_v37 = vadd.f32 1.0, %v4496_v7  ;;  %4507 = vrcp.f32 %v1687_v53 }
 0x925   : > { %v4500_v35 = vpop.eup %4499  ;;  %v1689_v31 = vadd.f32 1.0, %v4498_v56  ;;  %4509 = vrcp.f32 %v1685_v12 }
 0x926   : > { %v1690_v52 = vadd.f32 1.0, %v4500_v35  ;;  %4511 = vrcp.f32 %v1688_v37 }
 0x927   : > { %4513 = vrcp.f32 %v1689_v31 }
 0x928   : > { %4515 = vrcp.f32 %v1690_v52 }
 0x92e   : > { %v5419_v30 = vpop.eup %4501 }
 0x92f   : > { %v5422_v0 = vpop.eup %4503 }
 0x930   : > { %v5426_v18 = vpop.eup %4505 }
 0x931   : > { %v5430_v57 = vpop.eup %4507 }
 0x932   : > { %v5434_v60 = vpop.eup %4509 }
 0x933   : > { %v5438_v46 = vpop.eup %4511 }
 0x934   : > { %v5442_v5 = vpop.eup %4513 }
 0x935   : > { %v5446_v54 = vpop.eup %4515 }
 0x97f   : > { %v1723_v36 = vpop.permute.xlu1 %1722 }
 0x980   : > { %v1743_v28 = vmul.f32 %v5419_v30, %v1723_v36 }
 0x981   : > { %v1719_v49 = vpop.permute.xlu0 %1718 }
 0x982   : > { %v1741_v9 = vmul.f32 %v5422_v0, %v1719_v49  ;;  %1762 = vrot.lane.b32.xlu1 %v1743_v28, %s4759_s21 }
 0x983   : > { %v1717_v50 = vpop.permute.xlu1 %1716 }
 0x984   : > { %v1740_v24 = vmul.f32 %v5426_v18, %v1717_v50  ;;  %1758 = vrot.lane.b32.xlu0 %v1741_v9, %s4759_s21 }
 0x985   : > { %v1725_v63 = vpop.permute.xlu0 %1724 }
 0x986   : > { %v1744_v15 = vmul.f32 %v5430_v57, %v1725_v63  ;;  %1756 = vrot.lane.b32.xlu1 %v1740_v24, %s4759_s21 }
 0x987   : > { %v1721_v45 = vpop.permute.xlu1 %1720 }
 0x988   : > { %v1742_v8 = vmul.f32 %v5434_v60, %v1721_v45  ;;  %1764 = vrot.lane.b32.xlu0 %v1744_v15, %s4759_s21  ;;  %v5471_v15 = vstv %s1887_s15 }
 0x989   : > { %v1727_v13 = vpop.permute.xlu0 %1726  ;;  %v1889_v45 = vmul.f32 %v5471_v15, %v5345_v33 }
 0x98a   : > { %v1745_v34 = vmul.f32 %v5438_v46, %v1727_v13  ;;  %1760 = vrot.lane.b32.xlu1 %v1742_v8, %s4759_s21  ;;  %v5477_v8 = vmul.f32 %v5471_v15, %v5364_v59  ;;  %v1890_v13 = vmul.f32 %v5471_v15, %v5350_v47 }
 0x98b   : > { %v1729_v19 = vpop.permute.xlu1 %1728 }
 0x98c   : > { %v1746_v10 = vmul.f32 %v5442_v5, %v1729_v19  ;;  %1766 = vrot.lane.b32.xlu0 %v1745_v34, %s4759_s21  ;;  %v5483_v34 = vmul.f32 %v5471_v15, %v5355_v48  ;;  %v1849_v48 = vrot.slane %v5382_v14, 7 }
 0x98d   : > { %v1731_v23 = vpop.permute.xlu0 %1730 }
 0x98e   : > { %v1747_v25 = vmul.f32 %v5446_v54, %v1731_v23  ;;  %1768 = vrot.lane.b32.xlu1 %v1746_v10, %s4759_s21  ;;  %v1797_v10 = vsub.f32 1.0, %v5422_v0  ;;  %v1845_v23 = vrot.slane %v5350_v47, 7  ;;  %v1847_v47 = vrot.slane %v5373_v22, 7 }
 0x990   : > { %1770 = vrot.lane.b32.xlu0 %v1747_v25, %s4759_s21 }
 0x9f4   : > { %v1763_v61 = vpop.permute.xlu1 %1762 }
 0x9f5   : > { %v1783_v42 = vadd.f32 %v1763_v61, %v4953_v20  ;;  %v1844_v61 = vrot.slane %v5345_v33, 7  ;;  %v1894_v33 = vmul.f32 %v5471_v15, %v5369_v17 }
 0x9f6   : > { %v1759_v58 = vpop.permute.xlu0 %1758 }
 0x9f7   : > { %4517 = vtanh.f32 %v1783_v42  ;;  %v1781_v43 = vadd.f32 %v1759_v58, %v4948_v16  ;;  %v1905_v42 = vrot.slane %v1889_v45, 7  ;;  %v1846_v58 = vrot.slane %v5364_v59, 7 }
 0x9f8   : > { %v1757_v39 = vpop.permute.xlu1 %1756  ;;  %v1859_v59 = vmul.f32 %v5426_v18, %v1844_v61  ;;  %v1848_v45 = vrot.slane %v5369_v17, 7 }
 0x9f9   : > { %4519 = vtanh.f32 %v1781_v43  ;;  %v1780_v40 = vadd.f32 %v1757_v39, %v4943_v62  ;;  %v1907_v43 = vrot.slane %v5477_v8, 7  ;;  %v1860_v39 = vmul.f32 %v5422_v0, %v1845_v23 }
 0x9fa   : > { %v1765_v21 = vpop.permute.xlu0 %1764  ;;  %v1800_v0 = vsub.f32 1.0, %v5430_v57  ;;  %v1910_v8 = vrot.slane %v1894_v33, 7  ;;  %v1864_v17 = vmul.f32 %v5438_v46, %v1848_v45 }
 0x9fb   : > { %4521 = vtanh.f32 %v1780_v40  ;;  %v1784_v4 = vadd.f32 %v1765_v21, %v4958_v26  ;;  %v1906_v40 = vrot.slane %v1890_v13, 7 }
 0x9fc   : > { %v1761_v55 = vpop.permute.xlu1 %1760 }
 0x9fd   : > { %4523 = vtanh.f32 %v1784_v4  ;;  %v1782_v53 = vadd.f32 %v1761_v55, %v4945_v11  ;;  %v1796_v4 = vsub.f32 1.0, %v5426_v18  ;;  %v1799_v55 = vsub.f32 1.0, %v5419_v30 }
 0x9fe   : > { %v1767_v7 = vpop.permute.xlu0 %1766  ;;  %v1862_v18 = vmul.f32 %v5419_v30, %v1551_v1 }
 0x9ff   : > { %4525 = vtanh.f32 %v1782_v53  ;;  %v1785_v12 = vadd.f32 %v1767_v7, %v4961_v32  ;;  %v1908_v53 = vrot.slane %v5483_v34, 7 }
 0xa00   : > { %v1769_v56 = vpop.permute.xlu1 %1768 }
 0xa01   : > { %4527 = vtanh.f32 %v1785_v12  ;;  %v1786_v37 = vadd.f32 %v1769_v56, %v4965_v38 }
 0xa02   : > { %v1771_v35 = vpop.permute.xlu0 %1770 }
 0xa03   : > { %4529 = vtanh.f32 %v1786_v37  ;;  %v1787_v31 = vadd.f32 %v1771_v35, %v4969_v41  ;;  %v1878_v37 = vstv %s1877_s14 }
 0xa04   : > { %v4518_v52 = vpop.eup %4517 }
 0xa05   : > { %4531 = vtanh.f32 %v1787_v31  ;;  %1818 = vrot.lane.b32.xlu1 %v4518_v52, %s4760_s22  ;;  %v1893_v31 = vmul.f32 %v5471_v15, %v5373_v22 }
 0xa06   : > { %v4520_v36 = vpop.eup %4519 }
 0xa07   : > { %1814 = vrot.lane.b32.xlu0 %v4520_v36, %s4760_s22  ;;  %v1798_v36 = vsub.f32 1.0, %v5434_v60  ;;  %v1909_v23 = vrot.slane %v1893_v31, 7 }
 0xa08   : > { %v4522_v28 = vpop.eup %4521 }
 0xa09   : > { %1812 = vrot.lane.b32.xlu1 %v4522_v28, %s4760_s22 }
 0xa0a   : > { %v4524_v49 = vpop.eup %4523 }
 0xa0b   : > { %1820 = vrot.lane.b32.xlu0 %v4524_v49, %s4760_s22 }
 0xa0c   : > { %v4526_v9 = vpop.eup %4525 }
 0xa0d   : > { %1816 = vrot.lane.b32.xlu1 %v4526_v9, %s4760_s22  ;;  %v1863_v9 = vmul.f32 %v5430_v57, %v1847_v47  ;;  %v1801_v57 = vsub.f32 1.0, %v5438_v46 }
 0xa0e   : > { %v4528_v50 = vpop.eup %4527 }
 0xa0f   : > { %1822 = vrot.lane.b32.xlu0 %v4528_v50, %s4760_s22 }
 0xa10   : > { %v4530_v24 = vpop.eup %4529 }
 0xa11   : > { %1824 = vrot.lane.b32.xlu1 %v4530_v24, %s4760_s22  ;;  %v1861_v24 = vmul.f32 %v5434_v60, %v1846_v58  ;;  %v1802_v60 = vsub.f32 1.0, %v5442_v5 }
 0xa12   : > { %v4532_v63 = vpop.eup %4531 }
 0xa13   : > { %1826 = vrot.lane.b32.xlu0 %v4532_v63, %s4760_s22 }
 0xa77   : > { %v1819_v19 = vpop.permute.xlu1 %1818 }
 0xa78   : > { %v1839_v35 = vmul.f32 %v1819_v19, %v1799_v55 }
 0xa79   : > { %v1815_v25 = vpop.permute.xlu0 %1814 }
 0xa7a   : > { %v1837_v21 = vmul.f32 %v1815_v25, %v1797_v10  ;;  %v1870_v10 = vadd.f32 %v1862_v18, %v1839_v35 }
 0xa7b   : > { %v1813_v7 = vpop.permute.xlu1 %1812 }
 0xa7c   : > { %v1868_v12 = vadd.f32 %v1860_v39, %v1837_v21  ;;  %v1836_v56 = vmul.f32 %v1813_v7, %v1796_v4  ;;  %v1865_v39 = vmul.f32 %v5442_v5, %v1849_v48  ;;  %v1882_v47 = vmul.f32 %v1878_v37, %v1870_v10  ;;  %v5567_v48 = vld [vmem:[%s6268_s4 + $0x10] sm:$0xff] }
 0xa7d   : > { %v1821_v52 = vpop.permute.xlu0 %1820 }
 0xa7e   : > { %v1880_v28 = vmul.f32 %v1878_v37, %v1868_v12  ;;  %v1867_v49 = vadd.f32 %v1859_v59, %v1836_v56  ;;  %v1840_v50 = vmul.f32 %v1821_v52, %v1800_v0  ;;  %v1803_v12 = vsub.f32 1.0, %v5446_v54 }
 0xa7f   : > { %v1817_v63 = vpop.permute.xlu1 %1816  ;;  %v1850_v59 = vrot.slane %v5376_v27, 7  ;;  %v1896_v52 = vmul.f32 %v5471_v15, %v5376_v27 }
 0xa80   : > { %v5508_v13 = vadd.f32 %v1906_v40, %v1880_v28  ;;  %v1879_v22 = vmul.f32 %v1878_v37, %v1867_v49  ;;  %v1871_v34 = vadd.f32 %v1863_v9, %v1840_v50  ;;  %v1838_v19 = vmul.f32 %v1817_v63, %v1798_v36 }
 0xa81   : > { %v1823_v25 = vpop.permute.xlu0 %1822  ;;  %v1895_v40 = vmul.f32 %v5471_v15, %v5382_v14  ;;  %v1866_v31 = vmul.f32 %v5446_v54, %v1850_v59  ;;  %v5532_v50 = vadd.f32 %v1908_v53, %v1882_v47 }
 0xa82   : > { %v5512_v61 = vadd.f32 %v1905_v42, %v1879_v22  ;;  %v1883_v1 = vmul.f32 %v1878_v37, %v1871_v34  ;;  %v1869_v30 = vadd.f32 %v1861_v24, %v1838_v19  ;;  %v1841_v58 = vmul.f32 %v1823_v25, %v1801_v57  ;;  %v5558_v25 = vld [vmem:[%s6268_s4 + $0x18] sm:$0xff] }
 0xa83   : > { %v1825_v21 = vpop.permute.xlu1 %1824  ;;  %v1938_v4 = vrot.slane %v5508_v13, 2  ;;  %v1911_v49 = vrot.slane %v1895_v40, 7  ;;  %v1912_v22 = vrot.slane %v1896_v52, 7 }
 0xa84   : > { %v1937_v55 = vrot.slane %v5512_v61, 3  ;;  %v1881_v7 = vmul.f32 %v1878_v37, %v1869_v30  ;;  %v1842_v42 = vmul.f32 %v1825_v21, %v1802_v60  ;;  %v1872_v33 = vadd.f32 %v1864_v17, %v1841_v58  ;;  %v5581_v30 = vld [vmem:[%s6268_s4] sm:$0xff] }
 0xa85   : > { %v1827_v46 = vpop.permute.xlu0 %1826  ;;  %v5524_v5 = vadd.f32 %v1909_v23, %v1883_v1  ;;  %v5574_v1 = vld [vmem:[%s6268_s4 + $0x8] sm:$0xff] }
 0xa86   : > { %v1939_v56 = vsel %vm815_vm3, %v1938_v4, %v1937_v55  ;;  %v5526_v0 = vadd.f32 %v1907_v43, %v1881_v7  ;;  %v1873_v14 = vadd.f32 %v1865_v39, %v1842_v42  ;;  %v1884_v35 = vmul.f32 %v1878_v37, %v1872_v33 }
 0xa87   : > { %v1843_v36 = vmul.f32 %v1827_v46, %v1803_v12  ;;  %v1943_v43 = vrot.slane %v5524_v5, 7 }
 0xa88   : > { %v1940_v28 = vrot.slane %v5526_v0, 1  ;;  %v1885_v9 = vmul.f32 %v1878_v37, %v1873_v14  ;;  %v5534_v18 = vadd.f32 %v1910_v8, %v1884_v35 }
 0xa89   : > { %v1874_v24 = vadd.f32 %v1866_v31, %v1843_v36 }
 0xa8a   : > { %v5537_v63 = vadd.f32 %v1911_v49, %v1885_v9  ;;  %v1941_v45 = vsel %vm818_vm4, %v1940_v28, %v1939_v56  ;;  %v1945_v54 = vrot.slane %v5534_v18, 6 }
 0xa8b   : > { %v1886_v27 = vmul.f32 %v1878_v37, %v1874_v24  ;;  %v1942_v15 = vsel %vm821_vm5, %v5532_v50, %v1941_v45 }
 0xa8c   : > { %v1944_v53 = vsel %vm824_vm6, %v1943_v43, %v1942_v15  ;;  %v1947_v8 = vrot.slane %v5537_v63, 5 }
 0xa8d   : > { %v5547_v34 = vadd.f32 %v1912_v22, %v1886_v27  ;;  %v1946_v19 = vsel %vm827_vm7, %v1945_v54, %v1944_v53 }
 0xa8e   : > { %v1948_v10 = vsel %vm830_vm8, %v1947_v8, %v1946_v19 }
 0xa8f   : > { %v1949_v23 = vrot.slane %v5547_v34, 4 }
 0xa91   : > { %v1950_v57 = vsel %vm833_vm9, %v1949_v23, %v1948_v10 }
 0xa92   : > { %1951 = vrot.lane.b32.xlu1 %v1950_v57, %s4760_s22 }
 0xb04   : > { %v1952_v37 = vpop.permute.xlu1 %1951 }
 0xb05   : > { %4262 = vmatmul.mubr.msk.f32.vlgmr.msra.gmra.mxu0 %vm499_vm10, %v1952_v37 }
 0xb06   : > { %4276 = vmatpush3.msra.mxu0 %v5558_v25  ;;  %4283 = vmatprep.mubr.msk.f32.mxu0 %vm4757_vm1, %v4756_v3 }
 0xb07   : > { %4277 = vmatprep.subr.mxu0 %v4756_v3 }
 0xb08   : > { %4278 = vmatpush3.msra.mxu0 %v5567_v48 }
 0xb09   : > { %4279 = vmatprep.subr.mxu0 %v4756_v3 }
 0xb0a   : > { %4280 = vmatpush3.msra.mxu0 %v5574_v1 }
 0xb0b   : > { %4281 = vmatprep.subr.mxu0 %v4756_v3 }
 0xb0c   : > { %4282 = vmatpush3.msra.mxu0 %v5581_v30 }
 0xbc5   : > { %v2021_v60 = vpop.f32.mrf.mxu0 }
 0xbc6   : > { %v2097_v58 = vadd.f32 %v2021_v60, %v4922_v29  ;;  %v2026_v47 = vrot.slane %v2021_v60, 4  ;;  %v2027_v33 = vrot.slane %v2021_v60, 5  ;;  %v2045_v12 = vadd.f32 %v2021_v60, %v4958_v26 }
 0xbc7   : > { %v4263_v17 = vpop.f32.mrf.mxu0  ;;  %v2028_v59 = vrot.slane %v2021_v60, 6  ;;  %v2029_v56 = vrot.slane %v2021_v60, 7  ;;  %v2030_v31 = vrot.slane %v2021_v60, 1  ;;  %v2032_v28 = vrot.slane %v2021_v60, 3 }
 0xbc8   : > { %2114 = vrot.lane.b32.xlu1 %v2097_v58, %s4759_s21  ;;  %v2099_v39 = vrot.slane %v2097_v58, 4  ;;  %v2100_v40 = vrot.slane %v2097_v58, 5  ;;  %v2101_v21 = vrot.slane %v2097_v58, 6  ;;  %v2102_v4 = vrot.slane %v2097_v58, 7 }
 0xbc9   : > { %v2103_v55 = vrot.slane %v2097_v58, 1  ;;  %v2105_v7 = vrot.slane %v2097_v58, 3  ;;  %v2104_v42 = vrot.slane %v2097_v58, 2  ;;  %v2041_v46 = vadd.f32 %v2026_v47, %v4943_v62 }
 0xbca   : > { %2106 = vrot.lane.b32.xlu0 %v2099_v39, %s4759_s21  ;;  %v2042_v14 = vadd.f32 %v2027_v33, %v4948_v16  ;;  %v4086_v35 = vmul.f32 -1.442695, %v2045_v12  ;;  %v2043_v52 = vadd.f32 %v2028_v59, %v4945_v11  ;;  %v2044_v49 = vadd.f32 %v2029_v56, %v4953_v20 }
 0xbcb   : > { %v4082_v36 = vmul.f32 -1.442695, %v2041_v46  ;;  %v2031_v24 = vrot.slane %v2021_v60, 2  ;;  %v2046_v45 = vadd.f32 %v2030_v31, %v4961_v32  ;;  %v2048_v22 = vadd.f32 %v2032_v28, %v4969_v41 }
 0xbcc   : > { %2108 = vrot.lane.b32.xlu1 %v2100_v40, %s4759_s21  ;;  %v4083_v9 = vmul.f32 -1.442695, %v2042_v14  ;;  %4533 = vpow2.f32 %v4086_v35  ;;  %v4084_v54 = vmul.f32 -1.442695, %v2043_v52  ;;  %v4085_v27 = vmul.f32 -1.442695, %v2044_v49 }
 0xbcd   : > { %4535 = vpow2.f32 %v4082_v36  ;;  %v2047_v15 = vadd.f32 %v2031_v24, %v4965_v38  ;;  %v4087_v53 = vmul.f32 -1.442695, %v2046_v45  ;;  %v4089_v8 = vmul.f32 -1.442695, %v2048_v22 }
 0xbce   : > { %2110 = vrot.lane.b32.xlu0 %v2101_v21, %s4759_s21  ;;  %4537 = vpow2.f32 %v4083_v9 }
 0xbcf   : > { %4539 = vpow2.f32 %v4084_v54  ;;  %v4088_v19 = vmul.f32 -1.442695, %v2047_v15 }
 0xbd0   : > { %2112 = vrot.lane.b32.xlu1 %v2102_v4, %s4759_s21  ;;  %4541 = vpow2.f32 %v4085_v27 }
 0xbd1   : > { %4543 = vpow2.f32 %v4087_v53 }
 0xbd2   : > { %2116 = vrot.lane.b32.xlu0 %v2103_v55, %s4759_s21  ;;  %4545 = vpow2.f32 %v4089_v8 }
 0xbd3   : > { %4547 = vpow2.f32 %v4088_v19 }
 0xbd4   : > { %2120 = vrot.lane.b32.xlu1 %v2105_v7, %s4759_s21 }
 0xbd6   : > { %2118 = vrot.lane.b32.xlu0 %v2104_v42, %s4759_s21 }
 0xbd9   : > { %v4534_v10 = vpop.eup %4533 }
 0xbda   : > { %v4536_v23 = vpop.eup %4535  ;;  %v2077_v57 = vadd.f32 1.0, %v4534_v10 }
 0xbdb   : > { %v4538_v37 = vpop.eup %4537  ;;  %v2073_v60 = vadd.f32 1.0, %v4536_v23 }
 0xbdc   : > { %v4540_v17 = vpop.eup %4539  ;;  %v2074_v58 = vadd.f32 1.0, %v4538_v37  ;;  %4549 = vrcp.f32 %v2077_v57 }
 0xbdd   : > { %v4542_v39 = vpop.eup %4541  ;;  %v2075_v40 = vadd.f32 1.0, %v4540_v17  ;;  %4551 = vrcp.f32 %v2073_v60 }
 0xbde   : > { %v4544_v21 = vpop.eup %4543  ;;  %v2076_v4 = vadd.f32 1.0, %v4542_v39  ;;  %4553 = vrcp.f32 %v2074_v58 }
 0xbdf   : > { %v4546_v55 = vpop.eup %4545  ;;  %v2078_v7 = vadd.f32 1.0, %v4544_v21  ;;  %4555 = vrcp.f32 %v2075_v40 }
 0xbe0   : > { %v4548_v42 = vpop.eup %4547  ;;  %v2080_v47 = vadd.f32 1.0, %v4546_v55  ;;  %4557 = vrcp.f32 %v2076_v4 }
 0xbe1   : > { %v2079_v33 = vadd.f32 1.0, %v4548_v42  ;;  %4559 = vrcp.f32 %v2078_v7 }
 0xbe2   : > { %4561 = vrcp.f32 %v2080_v47 }
 0xbe3   : > { %4563 = vrcp.f32 %v2079_v33 }
 0xbe9   : > { %v5601_v12 = vpop.eup %4549 }
 0xbea   : > { %v5604_v56 = vpop.eup %4551 }
 0xbeb   : > { %v5608_v31 = vpop.eup %4553 }
 0xbec   : > { %v5612_v28 = vpop.eup %4555 }
 0xbed   : > { %v5616_v24 = vpop.eup %4557 }
 0xbee   : > { %v5620_v22 = vpop.eup %4559 }
 0xbef   : > { %v5624_v53 = vpop.eup %4561 }
 0xbf0   : > { %v5628_v10 = vpop.eup %4563 }
 0xc3a   : > { %v2115_v59 = vpop.permute.xlu1 %2114 }
 0xc3b   : > { %v2134_v46 = vmul.f32 %v5601_v12, %v2115_v59 }
 0xc3c   : > { %v2107_v14 = vpop.permute.xlu0 %2106 }
 0xc3d   : > { %v2130_v35 = vmul.f32 %v5604_v56, %v2107_v14  ;;  %2154 = vrot.lane.b32.xlu1 %v2134_v46, %s4759_s21 }
 0xc3e   : > { %v2109_v52 = vpop.permute.xlu1 %2108 }
 0xc3f   : > { %v2131_v36 = vmul.f32 %v5608_v31, %v2109_v52  ;;  %2146 = vrot.lane.b32.xlu0 %v2130_v35, %s4759_s21 }
 0xc40   : > { %v2111_v49 = vpop.permute.xlu0 %2110 }
 0xc41   : > { %v2132_v9 = vmul.f32 %v5612_v28, %v2111_v49  ;;  %2148 = vrot.lane.b32.xlu1 %v2131_v36, %s4759_s21 }
 0xc42   : > { %v2113_v45 = vpop.permute.xlu1 %2112 }
 0xc43   : > { %v2133_v54 = vmul.f32 %v5616_v24, %v2113_v45  ;;  %2150 = vrot.lane.b32.xlu0 %v2132_v9, %s4759_s21 }
 0xc44   : > { %v2117_v27 = vpop.permute.xlu0 %2116 }
 0xc45   : > { %v2135_v15 = vmul.f32 %v5620_v22, %v2117_v27  ;;  %2152 = vrot.lane.b32.xlu1 %v2133_v54, %s4759_s21 }
 0xc46   : > { %v2121_v8 = vpop.permute.xlu1 %2120 }
 0xc47   : > { %v2137_v19 = vmul.f32 %v5624_v53, %v2121_v8  ;;  %2156 = vrot.lane.b32.xlu0 %v2135_v15, %s4759_s21  ;;  %v5653_v15 = vstv %s2277_s29 }
 0xc48   : > { %v2119_v23 = vpop.permute.xlu0 %2118  ;;  %v2280_v8 = vmul.f32 %v5653_v15, %v5508_v13 }
 0xc49   : > { %v2136_v57 = vmul.f32 %v5628_v10, %v2119_v23  ;;  %2160 = vrot.lane.b32.xlu1 %v2137_v19, %s4759_s21  ;;  %v5659_v19 = vmul.f32 %v5653_v15, %v5532_v50  ;;  %v2279_v23 = vmul.f32 %v5653_v15, %v5512_v61 }
 0xc4b   : > { %2158 = vrot.lane.b32.xlu0 %v2136_v57, %s4759_s21  ;;  %v5665_v57 = vmul.f32 %v5653_v15, %v5524_v5  ;;  %v2240_v5 = vrot.slane %v5547_v34, 7 }
 0xcaf   : > { %v2155_v37 = vpop.permute.xlu1 %2154 }
 0xcb0   : > { %v2174_v60 = vadd.f32 %v2155_v37, %v4958_v26 }
 0xcb1   : > { %v2147_v17 = vpop.permute.xlu0 %2146 }
 0xcb2   : > { %4565 = vtanh.f32 %v2174_v60  ;;  %v2170_v58 = vadd.f32 %v2147_v17, %v4943_v62  ;;  %v2281_v60 = vmul.f32 %v5653_v15, %v5526_v0  ;;  %v2186_v17 = vsub.f32 1.0, %v5604_v56 }
 0xcb3   : > { %v2149_v39 = vpop.permute.xlu1 %2148 }
 0xcb4   : > { %4567 = vtanh.f32 %v2170_v58  ;;  %v2171_v40 = vadd.f32 %v2149_v39, %v4948_v16  ;;  %v2234_v58 = vrot.slane %v5512_v61, 7  ;;  %v2236_v61 = vrot.slane %v5526_v0, 7 }
 0xcb5   : > { %v2151_v21 = vpop.permute.xlu0 %2150  ;;  %v2253_v0 = vmul.f32 %v5601_v12, %v1943_v43  ;;  %v2285_v43 = vmul.f32 %v5653_v15, %v5537_v63 }
 0xcb6   : > { %4569 = vtanh.f32 %v2171_v40  ;;  %v2172_v4 = vadd.f32 %v2151_v21, %v4945_v11  ;;  %v2235_v40 = vrot.slane %v5508_v13, 7  ;;  %v2296_v21 = vrot.slane %v2280_v8, 7 }
 0xcb7   : > { %v2153_v55 = vpop.permute.xlu1 %2152 }
 0xcb8   : > { %4571 = vtanh.f32 %v2172_v4  ;;  %v2173_v7 = vadd.f32 %v2153_v55, %v4953_v20  ;;  %v2237_v4 = vrot.slane %v5532_v50, 7  ;;  %v2298_v55 = vrot.slane %v5659_v19, 7 }
 0xcb9   : > { %v2157_v42 = vpop.permute.xlu0 %2156 }
 0xcba   : > { %4573 = vtanh.f32 %v2173_v7  ;;  %v2175_v47 = vadd.f32 %v2157_v42, %v4961_v32  ;;  %v2249_v7 = vmul.f32 %v5604_v56, %v2234_v58  ;;  %v2295_v42 = vrot.slane %v2279_v23, 7 }
 0xcbb   : > { %v2161_v33 = vpop.permute.xlu1 %2160  ;;  %v2189_v23 = vsub.f32 1.0, %v5616_v24 }
 0xcbc   : > { %4575 = vtanh.f32 %v2175_v47  ;;  %v2177_v59 = vadd.f32 %v2161_v33, %v4969_v41  ;;  %v2187_v33 = vsub.f32 1.0, %v5608_v31 }
 0xcbd   : > { %v2159_v46 = vpop.permute.xlu0 %2158 }
 0xcbe   : > { %4577 = vtanh.f32 %v2177_v59  ;;  %v2176_v14 = vadd.f32 %v2159_v46, %v4965_v38  ;;  %v2190_v59 = vsub.f32 1.0, %v5601_v12  ;;  %v2299_v46 = vrot.slane %v5665_v57, 7 }
 0xcbf   : > { %v4566_v35 = vpop.eup %4565 }
 0xcc0   : > { %4579 = vtanh.f32 %v2176_v14  ;;  %2210 = vrot.lane.b32.xlu1 %v4566_v35, %s4760_s22  ;;  %v2297_v35 = vrot.slane %v2281_v60, 7 }
 0xcc1   : > { %v4568_v52 = vpop.eup %4567 }
 0xcc2   : > { %2202 = vrot.lane.b32.xlu0 %v4568_v52, %s4760_s22  ;;  %v2250_v52 = vmul.f32 %v5608_v31, %v2235_v40  ;;  %v2252_v31 = vmul.f32 %v5616_v24, %v2237_v4  ;;  %v2193_v4 = vsub.f32 1.0, %v5624_v53 }
 0xcc3   : > { %v4570_v36 = vpop.eup %4569 }
 0xcc4   : > { %2204 = vrot.lane.b32.xlu1 %v4570_v36, %s4760_s22  ;;  %v2188_v36 = vsub.f32 1.0, %v5612_v28 }
 0xcc5   : > { %v4572_v49 = vpop.eup %4571 }
 0xcc6   : > { %2206 = vrot.lane.b32.xlu0 %v4572_v49, %s4760_s22  ;;  %v2268_v49 = vstv %s2267_s28  ;;  %s3436_s28 = scalar_select %p3435_p0, 1, 0 }
 0xcc7   : > { %v4574_v9 = vpop.eup %4573 }
 0xcc8   : > { %2208 = vrot.lane.b32.xlu1 %v4574_v9, %s4760_s22  ;;  %v2251_v9 = vmul.f32 %v5612_v28, %v2236_v61  ;;  %v2239_v28 = vrot.slane %v5537_v63, 7  ;;  %s3437_s29 = scvt.s32.f32 %s3436_s28 }
 0xcc9   : > { %v4576_v45 = vpop.eup %4575 }
 0xcca   : > { %2212 = vrot.lane.b32.xlu0 %v4576_v45, %s4760_s22  ;;  %s3447_s30 = ssub.f32 1.0, %s3437_s29 }
 0xccb   : > { %v4578_v54 = vpop.eup %4577 }
 0xccc   : > { %2216 = vrot.lane.b32.xlu1 %v4578_v54, %s4760_s22  ;;  %v2238_v54 = vrot.slane %v5534_v18, 7 }
 0xccd   : > { %v4580_v27 = vpop.eup %4579 }
 0xcce   : > { %2214 = vrot.lane.b32.xlu0 %v4580_v27, %s4760_s22 }
 0xd32   : > { %v2211_v37 = vpop.permute.xlu1 %2210 }
 0xd33   : > { %v2230_v56 = vmul.f32 %v2211_v37, %v2190_v59  ;;  %v2284_v37 = vmul.f32 %v5653_v15, %v5534_v18 }
 0xd34   : > { %v2203_v39 = vpop.permute.xlu0 %2202 }
 0xd35   : > { %v2226_v47 = vmul.f32 %v2203_v39, %v2186_v17  ;;  %v2261_v40 = vadd.f32 %v2253_v0, %v2230_v56  ;;  %v2286_v56 = vmul.f32 %v5653_v15, %v5547_v34 }
 0xd36   : > { %v2205_v14 = vpop.permute.xlu1 %2204 }
 0xd37   : > { %v2257_v13 = vadd.f32 %v2249_v7, %v2226_v47  ;;  %v2227_v50 = vmul.f32 %v2205_v14, %v2187_v33  ;;  %v2191_v7 = vsub.f32 1.0, %v5620_v22  ;;  %v2254_v33 = vmul.f32 %v5620_v22, %v2238_v54 }
 0xd38   : > { %v2207_v45 = vpop.permute.xlu0 %2206  ;;  %v2256_v14 = vmul.f32 %v5624_v53, %v2240_v5 }
 0xd39   : > { %v2269_v27 = vmul.f32 %v2268_v49, %v2257_v13  ;;  %v2258_v8 = vadd.f32 %v2250_v52, %v2227_v50  ;;  %v2228_v19 = vmul.f32 %v2207_v45, %v2188_v36 }
 0xd3a   : > { %v2209_v57 = vpop.permute.xlu1 %2208 }
 0xd3b   : > { %v5691_v60 = vadd.f32 %v2295_v42, %v2269_v27  ;;  %v2270_v17 = vmul.f32 %v2268_v49, %v2258_v8  ;;  %v2259_v58 = vadd.f32 %v2251_v9, %v2228_v19  ;;  %v2229_v39 = vmul.f32 %v2209_v57, %v2189_v23 }
 0xd3c   : > { %v2213_v47 = vpop.permute.xlu0 %2212  ;;  %v2192_v9 = vsub.f32 1.0, %v5628_v10  ;;  %v2300_v8 = vrot.slane %v2284_v37, 7  ;;  %v2255_v19 = vmul.f32 %v5628_v10, %v2239_v28 }
 0xd3d   : > { %v5697_v12 = vadd.f32 %v2296_v21, %v2270_v17  ;;  %v2271_v24 = vmul.f32 %v2268_v49, %v2259_v58  ;;  %v2260_v18 = vadd.f32 %v2252_v31, %v2229_v39  ;;  %v2327_v42 = vrot.slane %v5691_v60, 4 }
 0xd3e   : > { %v2231_v59 = vmul.f32 %v2213_v47, %v2191_v7  ;;  %v2217_v61 = vpop.permute.xlu1 %2216  ;;  %v2273_v21 = vmul.f32 %v2268_v49, %v2261_v40  ;;  %v2302_v58 = vrot.slane %v2286_v56, 7  ;;  %v2301_v39 = vrot.slane %v2285_v43, 7 }
 0xd3f   : > { %v2328_v13 = vrot.slane %v5697_v12, 3  ;;  %v5704_v52 = vadd.f32 %v2297_v35, %v2271_v24  ;;  %v2272_v50 = vmul.f32 %v2268_v49, %v2260_v18  ;;  %v2233_v63 = vmul.f32 %v2217_v61, %v2193_v4 }
 0xd40   : > { %v2262_v36 = vadd.f32 %v2254_v33, %v2231_v59  ;;  %v2215_v45 = vpop.permute.xlu0 %2214  ;;  %v5716_v15 = vadd.f32 %v2299_v46, %v2273_v21 }
 0xd41   : > { %v2329_v22 = vsel %vm815_vm3, %v2328_v13, %v2327_v42  ;;  %v2330_v54 = vrot.slane %v5704_v52, 2  ;;  %v5711_v53 = vadd.f32 %v2298_v55, %v2272_v50  ;;  %v2264_v27 = vadd.f32 %v2256_v14, %v2233_v63 }
 0xd42   : > { %v2274_v35 = vmul.f32 %v2268_v49, %v2262_v36  ;;  %v2232_v23 = vmul.f32 %v2215_v45, %v2192_v9 }
 0xd43   : > { %v2332_v0 = vrot.slane %v5711_v53, 1  ;;  %v2276_v31 = vmul.f32 %v2268_v49, %v2264_v27  ;;  %v2331_v34 = vsel %vm818_vm4, %v2330_v54, %v2329_v22 }
 0xd44   : > { %v5718_v57 = vadd.f32 %v2300_v8, %v2274_v35  ;;  %v2263_v17 = vadd.f32 %v2255_v19, %v2232_v23 }
 0xd45   : > { %v2333_v55 = vsel %vm821_vm5, %v2332_v0, %v2331_v34  ;;  %v5724_v28 = vadd.f32 %v2302_v58, %v2276_v31 }
 0xd46   : > { %v2275_v40 = vmul.f32 %v2268_v49, %v2263_v17  ;;  %v2334_v37 = vsel %vm824_vm6, %v5716_v15, %v2333_v55  ;;  %v2335_v10 = vrot.slane %v5718_v57, 7 }
 0xd47   : > { %v2339_v5 = vrot.slane %v5724_v28, 5 }
 0xd48   : > { %v5726_v7 = vadd.f32 %v2301_v39, %v2275_v40  ;;  %v2336_v47 = vsel %vm827_vm7, %v2335_v10, %v2334_v37 }
 0xd4a   : > { %v2337_v46 = vrot.slane %v5726_v7, 6 }
 0xd4c   : > { %v2338_v43 = vsel %vm830_vm8, %v2337_v46, %v2336_v47 }
 0xd4d   : > { %v2340_v49 = vsel %vm833_vm9, %v2339_v5, %v2338_v43 }
 0xd4e   : > { %2341 = vrot.lane.b32.xlu0 %v2340_v49, %s4760_s22 }
 0xdc0   : > { %v2342_v24 = vpop.permute.xlu0 %2341 }
 0xdc1   : > { %4273 = vmatmul.mubr.msk.f32.vlgmr.msra.gmra.mxu1 %vm499_vm10, %v2342_v24 }
 0xdc2   : > { %4287 = vmatpush3.msra.mxu1 %v5558_v25  ;;  %4294 = vmatprep.mubr.msk.f32.mxu1 %vm4757_vm1, %v4756_v3 }
 0xdc3   : > { %4288 = vmatprep.subr.mxu1 %v4756_v3 }
 0xdc4   : > { %4289 = vmatpush3.msra.mxu1 %v5567_v48 }
 0xdc5   : > { %4290 = vmatprep.subr.mxu1 %v4756_v3 }
 0xdc6   : > { %4291 = vmatpush3.msra.mxu1 %v5574_v1 }
 0xdc7   : > { %4292 = vmatprep.subr.mxu1 %v4756_v3 }
 0xdc8   : > { %4293 = vmatpush3.msra.mxu1 %v5581_v30 }
 0xdc9   : > { %4311 = vmatprep.subr.mxu1 %v4756_v3 }
 0xe81   : > { %v2411_v18 = vpop.f32.mrf.mxu1 }
 0xe82   : > { %v2487_v25 = vadd.f32 %v2411_v18, %v4922_v29  ;;  %v2416_v61 = vrot.slane %v2411_v18, 3  ;;  %v2417_v13 = vrot.slane %v2411_v18, 4  ;;  %v2418_v50 = vrot.slane %v2411_v18, 5 }
 0xe83   : > { %v4274_v4 = vpop.f32.mrf.mxu1  ;;  %v2419_v21 = vrot.slane %v2411_v18, 6  ;;  %v2420_v56 = vrot.slane %v2411_v18, 7  ;;  %v2421_v22 = vrot.slane %v2411_v18, 1  ;;  %v2422_v19 = vrot.slane %v2411_v18, 2 }
 0xe84   : > { %v2490_v42 = vrot.slane %v2487_v25, 4  ;;  %v2489_v33 = vrot.slane %v2487_v25, 3  ;;  %v2492_v48 = vrot.slane %v2487_v25, 6  ;;  %v2491_v59 = vrot.slane %v2487_v25, 5 }
 0xe85   : > { %v2494_v1 = vrot.slane %v2487_v25, 1  ;;  %v2493_v30 = vrot.slane %v2487_v25, 7  ;;  %v2495_v14 = vrot.slane %v2487_v25, 2  ;;  %v2431_v63 = vadd.f32 %v2416_v61, %v4943_v62 }
 0xe86   : > { %2498 = vrot.lane.b32.xlu0 %v2490_v42, %s4759_s21  ;;  %2496 = vrot.lane.b32.xlu1 %v2489_v33, %s4759_s21  ;;  %v2432_v36 = vadd.f32 %v2417_v13, %v4948_v16  ;;  %v2433_v9 = vadd.f32 %v2418_v50, %v4945_v11  ;;  %v2434_v54 = vadd.f32 %v2419_v21, %v4953_v20 }
 0xe87   : > { %v4091_v45 = vmul.f32 -1.442695, %v2431_v63  ;;  %v2435_v8 = vadd.f32 %v2420_v56, %v4958_v26  ;;  %v2437_v23 = vadd.f32 %v2421_v22, %v4965_v38  ;;  %v2436_v31 = vadd.f32 %v2411_v18, %v4961_v32 }
 0xe88   : > { %v4092_v27 = vmul.f32 -1.442695, %v2432_v36  ;;  %v4093_v35 = vmul.f32 -1.442695, %v2433_v9  ;;  %v4094_v0 = vmul.f32 -1.442695, %v2434_v54  ;;  %v2438_v17 = vadd.f32 %v2422_v19, %v4969_v41 }
 0xe89   : > { %4581 = vpow2.f32 %v4091_v45  ;;  %v4095_v34 = vmul.f32 -1.442695, %v2435_v8  ;;  %v4097_v58 = vmul.f32 -1.442695, %v2437_v23  ;;  %v4096_v55 = vmul.f32 -1.442695, %v2436_v31 }
 0xe8a   : > { %2502 = vrot.lane.b32.xlu0 %v2492_v48, %s4759_s21  ;;  %2500 = vrot.lane.b32.xlu1 %v2491_v59, %s4759_s21  ;;  %4583 = vpow2.f32 %v4092_v27  ;;  %v4098_v39 = vmul.f32 -1.442695, %v2438_v17 }
 0xe8b   : > { %4585 = vpow2.f32 %v4093_v35 }
 0xe8c   : > { %4587 = vpow2.f32 %v4094_v0 }
 0xe8d   : > { %4589 = vpow2.f32 %v4095_v34 }
 0xe8e   : > { %2508 = vrot.lane.b32.xlu0 %v2494_v1, %s4759_s21  ;;  %2504 = vrot.lane.b32.xlu1 %v2493_v30, %s4759_s21  ;;  %4591 = vpow2.f32 %v4097_v58 }
 0xe8f   : > { %4593 = vpow2.f32 %v4096_v55 }
 0xe90   : > { %4595 = vpow2.f32 %v4098_v39 }
 0xe92   : > { %2510 = vrot.lane.b32.xlu0 %v2495_v14, %s4759_s21  ;;  %2506 = vrot.lane.b32.xlu1 %v2487_v25, %s4759_s21 }
 0xe96   : > { %v4582_v40 = vpop.eup %4581 }
 0xe97   : > { %v4584_v37 = vpop.eup %4583  ;;  %v2463_v46 = vadd.f32 1.0, %v4582_v40 }
 0xe98   : > { %v4586_v47 = vpop.eup %4585  ;;  %v2464_v5 = vadd.f32 1.0, %v4584_v37 }
 0xe99   : > { %v4588_v43 = vpop.eup %4587  ;;  %v2465_v49 = vadd.f32 1.0, %v4586_v47  ;;  %4597 = vrcp.f32 %v2463_v46 }
 0xe9a   : > { %v4590_v24 = vpop.eup %4589  ;;  %v2466_v18 = vadd.f32 1.0, %v4588_v43  ;;  %4599 = vrcp.f32 %v2464_v5 }
 0xe9b   : > { %v4592_v4 = vpop.eup %4591  ;;  %v2467_v25 = vadd.f32 1.0, %v4590_v24  ;;  %4601 = vrcp.f32 %v2465_v49 }
 0xe9c   : > { %v4594_v42 = vpop.eup %4593  ;;  %v2469_v33 = vadd.f32 1.0, %v4592_v4  ;;  %4603 = vrcp.f32 %v2466_v18 }
 0xe9d   : > { %v4596_v48 = vpop.eup %4595  ;;  %v2468_v59 = vadd.f32 1.0, %v4594_v42  ;;  %4605 = vrcp.f32 %v2467_v25 }
 0xe9e   : > { %v2470_v1 = vadd.f32 1.0, %v4596_v48  ;;  %4607 = vrcp.f32 %v2469_v33 }
 0xe9f   : > { %4609 = vrcp.f32 %v2468_v59 }
 0xea0   : > { %4611 = vrcp.f32 %v2470_v1 }
 0xea6   : > { %v5764_v30 = vpop.eup %4597 }
 0xea7   : > { %v5766_v14 = vpop.eup %4599 }
 0xea8   : > { %v5770_v21 = vpop.eup %4601 }
 0xea9   : > { %v5774_v36 = vpop.eup %4603 }
 0xeaa   : > { %v5778_v54 = vpop.eup %4605 }
 0xeab   : > { %v5782_v27 = vpop.eup %4607 }
 0xeac   : > { %v5786_v0 = vpop.eup %4609 }
 0xead   : > { %v5790_v31 = vpop.eup %4611 }
 0xef8   : > { %v2499_v61 = vpop.permute.xlu0 %2498  ;;  %v2497_v13 = vpop.permute.xlu1 %2496 }
 0xef9   : > { %v2521_v50 = vmul.f32 %v5766_v14, %v2499_v61  ;;  %v2520_v63 = vmul.f32 %v5764_v30, %v2497_v13 }
 0xefb   : > { %2538 = vrot.lane.b32.xlu0 %v2521_v50, %s4759_s21  ;;  %2536 = vrot.lane.b32.xlu1 %v2520_v63, %s4759_s21 }
 0xefc   : > { %v2503_v56 = vpop.permute.xlu0 %2502  ;;  %v2501_v9 = vpop.permute.xlu1 %2500 }
 0xefd   : > { %v2523_v45 = vmul.f32 %v5774_v36, %v2503_v56  ;;  %v2522_v22 = vmul.f32 %v5770_v21, %v2501_v9 }
 0xeff   : > { %2542 = vrot.lane.b32.xlu0 %v2523_v45, %s4759_s21  ;;  %2540 = vrot.lane.b32.xlu1 %v2522_v22, %s4759_s21  ;;  %v2668_v22 = vstv %s2667_s10 }
 0xf00   : > { %v2509_v8 = vpop.permute.xlu0 %2508  ;;  %v2505_v35 = vpop.permute.xlu1 %2504 }
 0xf01   : > { %v2526_v19 = vmul.f32 %v5782_v27, %v2509_v8  ;;  %v2524_v23 = vmul.f32 %v5778_v54, %v2505_v35  ;;  %v5814_v8 = vmul.f32 %v2668_v22, %v5716_v15  ;;  %v2669_v35 = vmul.f32 %v2668_v22, %v5691_v60 }
 0xf03   : > { %2548 = vrot.lane.b32.xlu0 %v2526_v19, %s4759_s21  ;;  %2544 = vrot.lane.b32.xlu1 %v2524_v23, %s4759_s21  ;;  %v2670_v19 = vmul.f32 %v2668_v22, %v5697_v12  ;;  %v2577_v23 = vsub.f32 1.0, %v5766_v14 }
 0xf04   : > { %v2511_v34 = vpop.permute.xlu0 %2510  ;;  %v2507_v17 = vpop.permute.xlu1 %2506 }
 0xf05   : > { %v2527_v58 = vmul.f32 %v5790_v31, %v2511_v34  ;;  %v2525_v55 = vmul.f32 %v5786_v0, %v2507_v17  ;;  %v2625_v34 = vrot.slane %v5697_v12, 7  ;;  %v2628_v17 = vrot.slane %v5716_v15, 7 }
 0xf06   : > { %v2686_v12 = vrot.slane %v2670_v19, 7  ;;  %v2582_v19 = vsub.f32 1.0, %v5782_v27 }
 0xf07   : > { %2550 = vrot.lane.b32.xlu0 %v2527_v58, %s4759_s21  ;;  %2546 = vrot.lane.b32.xlu1 %v2525_v55, %s4759_s21  ;;  %v2576_v55 = vsub.f32 1.0, %v5764_v30 }
 0xf6d   : > { %v2539_v39 = vpop.permute.xlu0 %2538  ;;  %v2537_v40 = vpop.permute.xlu1 %2536 }
 0xf6e   : > { %v2561_v37 = vadd.f32 %v2539_v39, %v4948_v16  ;;  %v2560_v46 = vadd.f32 %v2537_v40, %v4943_v62  ;;  %v2624_v39 = vrot.slane %v5691_v60, 7  ;;  %v2672_v40 = vmul.f32 %v2668_v22, %v5711_v53 }
 0xf6f   : > { %v2579_v60 = vsub.f32 1.0, %v5774_v36 }
 0xf70   : > { %4613 = vtanh.f32 %v2561_v37  ;;  %v2689_v37 = vrot.slane %v5814_v8, 7  ;;  %v2639_v15 = vmul.f32 %v5764_v30, %v2624_v39  ;;  %v2676_v39 = vmul.f32 %v2668_v22, %v5724_v28 }
 0xf71   : > { %4615 = vtanh.f32 %v2560_v46  ;;  %v2543_v47 = vpop.permute.xlu0 %2542  ;;  %v2541_v5 = vpop.permute.xlu1 %2540  ;;  %v2640_v46 = vmul.f32 %v5766_v14, %v2625_v34  ;;  %v5834_v14 = vmul.f32 %v2668_v22, %v5718_v57 }
 0xf72   : > { %v2563_v43 = vadd.f32 %v2543_v47, %v4953_v20  ;;  %v2562_v49 = vadd.f32 %v2541_v5, %v4945_v11  ;;  %v2685_v5 = vrot.slane %v2669_v35, 7 }
 0xf74   : > { %4617 = vtanh.f32 %v2563_v43 }
 0xf75   : > { %4619 = vtanh.f32 %v2562_v49  ;;  %v2549_v24 = vpop.permute.xlu0 %2548  ;;  %v2545_v18 = vpop.permute.xlu1 %2544  ;;  %v2671_v49 = vmul.f32 %v2668_v22, %v5704_v52 }
 0xf76   : > { %v2566_v4 = vadd.f32 %v2549_v24, %v4965_v38  ;;  %v2564_v25 = vadd.f32 %v2545_v18, %v4958_v26  ;;  %v5827_v24 = vstv %s2657_s7 }
 0xf78   : > { %4621 = vtanh.f32 %v2566_v4 }
 0xf79   : > { %4623 = vtanh.f32 %v2564_v25  ;;  %v2551_v42 = vpop.permute.xlu0 %2550  ;;  %v2547_v33 = vpop.permute.xlu1 %2546  ;;  %v2627_v25 = vrot.slane %v5711_v53, 7 }
 0xf7a   : > { %v2567_v48 = vadd.f32 %v2551_v42, %v4969_v41  ;;  %v2565_v59 = vadd.f32 %v2547_v33, %v4961_v32  ;;  %v2626_v42 = vrot.slane %v5704_v52, 7 }
 0xf7b   : > { %v2642_v30 = vmul.f32 %v5774_v36, %v2627_v25 }
 0xf7c   : > { %4625 = vtanh.f32 %v2567_v48  ;;  %v2688_v48 = vrot.slane %v2672_v40, 7  ;;  %v2641_v53 = vmul.f32 %v5770_v21, %v2626_v42 }
 0xf7d   : > { %v4614_v1 = vpop.eup %4613  ;;  %4627 = vtanh.f32 %v2565_v59 }
 0xf7e   : > { %v4616_v61 = vpop.eup %4615  ;;  %2594 = vrot.lane.b32.xlu0 %v4614_v1, %s4760_s22  ;;  %v2578_v1 = vsub.f32 1.0, %v5770_v21 }
 0xf7f   : > { %2592 = vrot.lane.b32.xlu1 %v4616_v61, %s4760_s22 }
 0xf81   : > { %v4618_v13 = vpop.eup %4617 }
 0xf82   : > { %v4620_v50 = vpop.eup %4619  ;;  %2598 = vrot.lane.b32.xlu0 %v4618_v13, %s4760_s22 }
 0xf83   : > { %2596 = vrot.lane.b32.xlu1 %v4620_v50, %s4760_s22  ;;  %v2687_v50 = vrot.slane %v2671_v49, 7 }
 0xf85   : > { %v4622_v63 = vpop.eup %4621 }
 0xf86   : > { %v4624_v56 = vpop.eup %4623  ;;  %2604 = vrot.lane.b32.xlu0 %v4622_v63, %s4760_s22 }
 0xf87   : > { %2600 = vrot.lane.b32.xlu1 %v4624_v56, %s4760_s22 }
 0xf89   : > { %v4626_v9 = vpop.eup %4625 }
 0xf8a   : > { %v4628_v45 = vpop.eup %4627  ;;  %2606 = vrot.lane.b32.xlu0 %v4626_v9, %s4760_s22  ;;  %v2630_v9 = vrot.slane %v5724_v28, 7 }
 0xf8b   : > { %2602 = vrot.lane.b32.xlu1 %v4628_v45, %s4760_s22 }
 0xff0   : > { %v2595_v58 = vpop.permute.xlu0 %2594 }
 0xff1   : > { %v2617_v47 = vmul.f32 %v2595_v58, %v2577_v23  ;;  %v2593_v43 = vpop.permute.xlu1 %2592  ;;  %v2629_v23 = vrot.slane %v5726_v7, 7 }
 0xff2   : > { %v2616_v18 = vmul.f32 %v2593_v43, %v2576_v55  ;;  %v2580_v55 = vsub.f32 1.0, %v5778_v54 }
 0xff3   : > { %v2648_v4 = vadd.f32 %v2640_v46, %v2617_v47  ;;  %v2645_v46 = vmul.f32 %v5782_v27, %v2629_v23 }
 0xff4   : > { %v2647_v33 = vadd.f32 %v2639_v15, %v2616_v18  ;;  %v2599_v59 = vpop.permute.xlu0 %2598 }
 0xff5   : > { %v2660_v61 = vmul.f32 %v5827_v24, %v2648_v4  ;;  %v2619_v13 = vmul.f32 %v2599_v59, %v2579_v60  ;;  %v2597_v63 = vpop.permute.xlu1 %2596  ;;  %v2675_v4 = vmul.f32 %v2668_v22, %v5726_v7  ;;  %v2583_v60 = vsub.f32 1.0, %v5790_v31 }
 0xff6   : > { %v2659_v56 = vmul.f32 %v5827_v24, %v2647_v33  ;;  %v2618_v52 = vmul.f32 %v2597_v63, %v2578_v1  ;;  %v2581_v59 = vsub.f32 1.0, %v5786_v0 }
 0xff7   : > { %v5842_v45 = vadd.f32 %v2686_v12, %v2660_v61  ;;  %v2650_v35 = vadd.f32 %v2642_v30, %v2619_v13  ;;  %v2644_v30 = vmul.f32 %v5786_v0, %v2335_v10  ;;  %v2690_v10 = vrot.slane %v5834_v14, 7 }
 0xff8   : > { %v5846_v34 = vadd.f32 %v2685_v5, %v2659_v56  ;;  %v2649_v36 = vadd.f32 %v2641_v53, %v2618_v52  ;;  %v2605_v58 = vpop.permute.xlu0 %2604  ;;  %v2643_v5 = vmul.f32 %v5778_v54, %v2628_v17  ;;  %v2646_v17 = vmul.f32 %v5790_v31, %v2630_v9 }
 0xff9   : > { %v2718_v21 = vrot.slane %v5842_v45, 4  ;;  %v2662_v40 = vmul.f32 %v5827_v24, %v2650_v35  ;;  %v2622_v47 = vmul.f32 %v2605_v58, %v2582_v19  ;;  %v2601_v43 = vpop.permute.xlu1 %2600  ;;  %v2692_v9 = vrot.slane %v2676_v39, 7 }
 0xffa   : > { %v2717_v49 = vrot.slane %v5846_v34, 5  ;;  %v2661_v12 = vmul.f32 %v5827_v24, %v2649_v36  ;;  %v2620_v15 = vmul.f32 %v2601_v43, %v2580_v55 }
 0xffb   : > { %v5856_v18 = vadd.f32 %v2688_v48, %v2662_v40  ;;  %v2653_v28 = vadd.f32 %v2645_v46, %v2622_v47 }
 0xffc   : > { %v2719_v25 = vsel %vm815_vm3, %v2718_v21, %v2717_v49  ;;  %v5861_v42 = vadd.f32 %v2687_v50, %v2661_v12  ;;  %v2651_v27 = vadd.f32 %v2643_v5, %v2620_v15  ;;  %v2607_v33 = vpop.permute.xlu0 %2606  ;;  %v2691_v50 = vrot.slane %v2675_v4, 7 }
 0xffd   : > { %v2722_v1 = vrot.slane %v5856_v18, 2  ;;  %v2665_v54 = vmul.f32 %v5827_v24, %v2653_v28  ;;  %v2623_v48 = vmul.f32 %v2607_v33, %v2583_v60  ;;  %v2603_v61 = vpop.permute.xlu1 %2602 }
 0xffe   : > { %v2720_v7 = vrot.slane %v5861_v42, 3  ;;  %v2663_v22 = vmul.f32 %v5827_v24, %v2651_v27  ;;  %v2621_v13 = vmul.f32 %v2603_v61, %v2581_v59 }
 0xfff   : > { %v2654_v63 = vadd.f32 %v2646_v17, %v2623_v48  ;;  %v5877_v52 = vadd.f32 %v2691_v50, %v2665_v54 }
0x1000   : > { %v5874_v56 = vadd.f32 %v2689_v37, %v2663_v22  ;;  %v2652_v53 = vadd.f32 %v2644_v30, %v2621_v13  ;;  %v2721_v31 = vsel %vm818_vm4, %v2720_v7, %v2719_v25 }
0x1001   : > { %v2666_v35 = vmul.f32 %v5827_v24, %v2654_v63  ;;  %v2723_v19 = vsel %vm821_vm5, %v2722_v1, %v2721_v31  ;;  %v2727_v36 = vrot.slane %v5877_v52, 7 }
0x1002   : > { %v2724_v57 = vrot.slane %v5874_v56, 1  ;;  %v2664_v0 = vmul.f32 %v5827_v24, %v2652_v53 }
0x1003   : > { %v5884_v23 = vadd.f32 %v2692_v9, %v2666_v35 }
0x1004   : > { %v5886_v8 = vadd.f32 %v2690_v10, %v2664_v0  ;;  %v2725_v37 = vsel %vm824_vm6, %v2724_v57, %v2723_v19 }
0x1005   : > { %v2729_v58 = vrot.slane %v5884_v23, 6 }
0x1006   : > { %v2726_v55 = vsel %vm827_vm7, %v5886_v8, %v2725_v37 }
0x1007   : > { %v2728_v39 = vsel %vm830_vm8, %v2727_v36, %v2726_v55 }
0x1008   : > { %v2730_v14 = vsel %vm833_vm9, %v2729_v58, %v2728_v39 }
0x1009   : > { %2731 = vrot.lane.b32.xlu1 %v2730_v14, %s4760_s22 }
0x107b   : > { %v2732_v24 = vpop.permute.xlu1 %2731 }
0x107c   : > { %4284 = vmatmul.mubr.msk.f32.vlgmr.msra.gmra.mxu0 %vm499_vm10, %v2732_v24 }
0x113c   : > { %v2801_v21 = vpop.f32.mrf.mxu0 }
0x113d   : > { %v2877_v46 = vadd.f32 %v2801_v21, %v4922_v29  ;;  %v2806_v28 = vrot.slane %v2801_v21, 2  ;;  %v2807_v60 = vrot.slane %v2801_v21, 3  ;;  %v2808_v25 = vrot.slane %v2801_v21, 4 }
0x113e   : > { %v4285_v40 = vpop.f32.mrf.mxu0  ;;  %v2809_v33 = vrot.slane %v2801_v21, 5  ;;  %v2810_v1 = vrot.slane %v2801_v21, 6  ;;  %v2811_v48 = vrot.slane %v2801_v21, 7  ;;  %v2812_v13 = vrot.slane %v2801_v21, 1 }
0x113f   : > { %v2880_v47 = vrot.slane %v2877_v46, 3  ;;  %v2879_v43 = vrot.slane %v2877_v46, 2  ;;  %v2882_v49 = vrot.slane %v2877_v46, 5  ;;  %v2881_v12 = vrot.slane %v2877_v46, 4 }
0x1140   : > { %v2884_v5 = vrot.slane %v2877_v46, 7  ;;  %v2883_v15 = vrot.slane %v2877_v46, 6  ;;  %v2885_v4 = vrot.slane %v2877_v46, 1  ;;  %v2821_v27 = vadd.f32 %v2806_v28, %v4943_v62 }
0x1141   : > { %2888 = vrot.lane.b32.xlu1 %v2880_v47, %s4759_s21  ;;  %2886 = vrot.lane.b32.xlu0 %v2879_v43, %s4759_s21  ;;  %v2822_v59 = vadd.f32 %v2807_v60, %v4948_v16  ;;  %v2823_v54 = vadd.f32 %v2808_v25, %v4945_v11  ;;  %v2824_v61 = vadd.f32 %v2809_v33, %v4953_v20 }
0x1142   : > { %v4100_v17 = vmul.f32 -1.442695, %v2821_v27  ;;  %v2825_v22 = vadd.f32 %v2810_v1, %v4958_v26  ;;  %v2826_v50 = vadd.f32 %v2811_v48, %v4961_v32  ;;  %v2827_v53 = vadd.f32 %v2801_v21, %v4965_v38 }
0x1143   : > { %v4101_v7 = vmul.f32 -1.442695, %v2822_v59  ;;  %v4102_v30 = vmul.f32 -1.442695, %v2823_v54  ;;  %v4103_v63 = vmul.f32 -1.442695, %v2824_v61  ;;  %v2828_v9 = vadd.f32 %v2812_v13, %v4969_v41 }
0x1144   : > { %4629 = vpow2.f32 %v4100_v17  ;;  %v4104_v31 = vmul.f32 -1.442695, %v2825_v22  ;;  %v4105_v35 = vmul.f32 -1.442695, %v2826_v50  ;;  %v4106_v19 = vmul.f32 -1.442695, %v2827_v53 }
0x1145   : > { %2892 = vrot.lane.b32.xlu1 %v2882_v49, %s4759_s21  ;;  %2890 = vrot.lane.b32.xlu0 %v2881_v12, %s4759_s21  ;;  %4631 = vpow2.f32 %v4101_v7  ;;  %v4107_v57 = vmul.f32 -1.442695, %v2828_v9 }
0x1146   : > { %4633 = vpow2.f32 %v4102_v30 }
0x1147   : > { %4635 = vpow2.f32 %v4103_v63 }
0x1148   : > { %4637 = vpow2.f32 %v4104_v31 }
0x1149   : > { %2896 = vrot.lane.b32.xlu1 %v2884_v5, %s4759_s21  ;;  %2894 = vrot.lane.b32.xlu0 %v2883_v15, %s4759_s21  ;;  %4639 = vpow2.f32 %v4105_v35 }
0x114a   : > { %4641 = vpow2.f32 %v4106_v19 }
0x114b   : > { %4643 = vpow2.f32 %v4107_v57 }
0x114d   : > { %2898 = vrot.lane.b32.xlu1 %v2877_v46, %s4759_s21  ;;  %2900 = vrot.lane.b32.xlu0 %v2885_v4, %s4759_s21 }
0x1151   : > { %v4630_v10 = vpop.eup %4629 }
0x1152   : > { %v4632_v0 = vpop.eup %4631  ;;  %v2853_v37 = vadd.f32 1.0, %v4630_v10 }
0x1153   : > { %v4634_v58 = vpop.eup %4633  ;;  %v2854_v55 = vadd.f32 1.0, %v4632_v0 }
0x1154   : > { %v4636_v39 = vpop.eup %4635  ;;  %v2855_v14 = vadd.f32 1.0, %v4634_v58  ;;  %4645 = vrcp.f32 %v2853_v37 }
0x1155   : > { %v4638_v24 = vpop.eup %4637  ;;  %v2856_v21 = vadd.f32 1.0, %v4636_v39  ;;  %4647 = vrcp.f32 %v2854_v55 }
0x1156   : > { %v4640_v40 = vpop.eup %4639  ;;  %v2857_v46 = vadd.f32 1.0, %v4638_v24  ;;  %4649 = vrcp.f32 %v2855_v14 }
0x1157   : > { %v4642_v47 = vpop.eup %4641  ;;  %v2858_v43 = vadd.f32 1.0, %v4640_v40  ;;  %4651 = vrcp.f32 %v2856_v21 }
0x1158   : > { %v4644_v49 = vpop.eup %4643  ;;  %v2859_v12 = vadd.f32 1.0, %v4642_v47  ;;  %4653 = vrcp.f32 %v2857_v46 }
0x1159   : > { %v2860_v5 = vadd.f32 1.0, %v4644_v49  ;;  %4655 = vrcp.f32 %v2858_v43 }
0x115a   : > { %4657 = vrcp.f32 %v2859_v12 }
0x115b   : > { %4659 = vrcp.f32 %v2860_v5 }
0x1161   : > { %v5916_v15 = vpop.eup %4645 }
0x1162   : > { %v5918_v4 = vpop.eup %4647 }
0x1163   : > { %v5922_v33 = vpop.eup %4649 }
0x1164   : > { %v5926_v59 = vpop.eup %4651 }
0x1165   : > { %v5930_v61 = vpop.eup %4653 }
0x1166   : > { %v5934_v7 = vpop.eup %4655 }
0x1167   : > { %v5938_v63 = vpop.eup %4657 }
0x1168   : > { %v5942_v53 = vpop.eup %4659 }
0x11b3   : > { %v2889_v28 = vpop.permute.xlu1 %2888  ;;  %v2887_v60 = vpop.permute.xlu0 %2886 }
0x11b4   : > { %v2911_v25 = vmul.f32 %v5918_v4, %v2889_v28  ;;  %v2910_v27 = vmul.f32 %v5916_v15, %v2887_v60 }
0x11b6   : > { %2928 = vrot.lane.b32.xlu1 %v2911_v25, %s4759_s21  ;;  %2926 = vrot.lane.b32.xlu0 %v2910_v27, %s4759_s21 }
0x11b7   : > { %v2893_v1 = vpop.permute.xlu1 %2892  ;;  %v2891_v54 = vpop.permute.xlu0 %2890 }
0x11b8   : > { %v2913_v17 = vmul.f32 %v5926_v59, %v2893_v1  ;;  %v2912_v48 = vmul.f32 %v5922_v33, %v2891_v54 }
0x11ba   : > { %2932 = vrot.lane.b32.xlu1 %v2913_v17, %s4759_s21  ;;  %2930 = vrot.lane.b32.xlu0 %v2912_v48, %s4759_s21  ;;  %v3058_v48 = vstv %s3057_s0 }
0x11bb   : > { %v2897_v22 = vpop.permute.xlu1 %2896  ;;  %v2895_v30 = vpop.permute.xlu0 %2894 }
0x11bc   : > { %v2915_v13 = vmul.f32 %v5934_v7, %v2897_v22  ;;  %v2914_v50 = vmul.f32 %v5930_v61, %v2895_v30  ;;  %v3060_v22 = vmul.f32 %v3058_v48, %v5842_v45  ;;  %v3059_v30 = vmul.f32 %v3058_v48, %v5846_v34 }
0x11be   : > { %2936 = vrot.lane.b32.xlu1 %v2915_v13, %s4759_s21  ;;  %2934 = vrot.lane.b32.xlu0 %v2914_v50, %s4759_s21  ;;  %v3015_v13 = vrot.slane %v5842_v45, 7  ;;  %v2967_v50 = vsub.f32 1.0, %v5918_v4 }
0x11bf   : > { %v2899_v31 = vpop.permute.xlu1 %2898  ;;  %v2901_v9 = vpop.permute.xlu0 %2900 }
0x11c0   : > { %v2916_v35 = vmul.f32 %v5938_v63, %v2899_v31  ;;  %v2917_v19 = vmul.f32 %v5942_v53, %v2901_v9  ;;  %v3014_v31 = vrot.slane %v5846_v34, 7  ;;  %v3062_v9 = vmul.f32 %v3058_v48, %v5856_v18 }
0x11c1   : > { %v3016_v34 = vrot.slane %v5861_v42, 7 }
0x11c2   : > { %2938 = vrot.lane.b32.xlu1 %v2916_v35, %s4759_s21  ;;  %2940 = vrot.lane.b32.xlu0 %v2917_v19, %s4759_s21  ;;  %v3061_v35 = vmul.f32 %v3058_v48, %v5861_v42  ;;  %v3076_v19 = vrot.slane %v3060_v22, 7  ;;  %v3019_v22 = vrot.slane %v5886_v8, 7 }
0x1228   : > { %v2929_v57 = vpop.permute.xlu1 %2928  ;;  %v2927_v10 = vpop.permute.xlu0 %2926 }
0x1229   : > { %v2951_v0 = vadd.f32 %v2929_v57, %v4948_v16  ;;  %v2950_v37 = vadd.f32 %v2927_v10, %v4943_v62  ;;  %v2966_v10 = vsub.f32 1.0, %v5916_v15 }
0x122b   : > { %4661 = vtanh.f32 %v2951_v0  ;;  %v3075_v0 = vrot.slane %v3059_v30, 7 }
0x122c   : > { %4663 = vtanh.f32 %v2950_v37  ;;  %v2933_v58 = vpop.permute.xlu1 %2932  ;;  %v2931_v55 = vpop.permute.xlu0 %2930  ;;  %v5974_v37 = vmul.f32 %v3058_v48, %v5874_v56 }
0x122d   : > { %v2953_v39 = vadd.f32 %v2933_v58, %v4953_v20  ;;  %v2952_v14 = vadd.f32 %v2931_v55, %v4945_v11  ;;  %v3030_v58 = vmul.f32 %v5918_v4, %v3015_v13  ;;  %v2971_v13 = vsub.f32 1.0, %v5934_v7 }
0x122e   : > { %v3079_v42 = vrot.slane %v5974_v37, 7 }
0x122f   : > { %4665 = vtanh.f32 %v2953_v39  ;;  %v3017_v39 = vrot.slane %v5856_v18, 7  ;;  %v3018_v18 = vrot.slane %v5874_v56, 7 }
0x1230   : > { %4667 = vtanh.f32 %v2952_v14  ;;  %v2937_v24 = vpop.permute.xlu1 %2936  ;;  %v2935_v21 = vpop.permute.xlu0 %2934  ;;  %v5980_v14 = vmul.f32 %v3058_v48, %v5877_v52 }
0x1231   : > { %v2955_v40 = vadd.f32 %v2937_v24, %v4961_v32  ;;  %v2954_v46 = vadd.f32 %v2935_v21, %v4958_v26  ;;  %v5982_v24 = vstv %s3047_s13  ;;  %v3029_v21 = vmul.f32 %v5916_v15, %v3014_v31 }
0x1233   : > { %4669 = vtanh.f32 %v2955_v40 }
0x1234   : > { %4671 = vtanh.f32 %v2954_v46  ;;  %v2939_v47 = vpop.permute.xlu1 %2938  ;;  %v2941_v43 = vpop.permute.xlu0 %2940 }
0x1235   : > { %v2956_v49 = vadd.f32 %v2939_v47, %v4965_v38  ;;  %v2957_v12 = vadd.f32 %v2941_v43, %v4969_v41  ;;  %v2969_v47 = vsub.f32 1.0, %v5926_v59  ;;  %v3078_v43 = vrot.slane %v3062_v9, 7 }
0x1237   : > { %4673 = vtanh.f32 %v2956_v49  ;;  %v3077_v49 = vrot.slane %v3061_v35, 7  ;;  %v2970_v35 = vsub.f32 1.0, %v5930_v61 }
0x1238   : > { %v4662_v5 = vpop.eup %4661  ;;  %4675 = vtanh.f32 %v2957_v12 }
0x1239   : > { %v4664_v28 = vpop.eup %4663  ;;  %2984 = vrot.lane.b32.xlu1 %v4662_v5, %s4760_s22  ;;  %v2968_v5 = vsub.f32 1.0, %v5922_v33 }
0x123a   : > { %2982 = vrot.lane.b32.xlu0 %v4664_v28, %s4760_s22 }
0x123c   : > { %v4666_v60 = vpop.eup %4665 }
0x123d   : > { %v4668_v25 = vpop.eup %4667  ;;  %2988 = vrot.lane.b32.xlu1 %v4666_v60, %s4760_s22  ;;  %v3032_v60 = vmul.f32 %v5926_v59, %v3017_v39 }
0x123e   : > { %2986 = vrot.lane.b32.xlu0 %v4668_v25, %s4760_s22 }
0x1240   : > { %v4670_v27 = vpop.eup %4669 }
0x1241   : > { %v4672_v1 = vpop.eup %4671  ;;  %2992 = vrot.lane.b32.xlu1 %v4670_v27, %s4760_s22  ;;  %v3020_v27 = vrot.slane %v5884_v23, 7 }
0x1242   : > { %2990 = vrot.lane.b32.xlu0 %v4672_v1, %s4760_s22 }
0x1244   : > { %v4674_v54 = vpop.eup %4673 }
0x1245   : > { %v4676_v17 = vpop.eup %4675  ;;  %2994 = vrot.lane.b32.xlu1 %v4674_v54, %s4760_s22  ;;  %v3031_v54 = vmul.f32 %v5922_v33, %v3016_v34 }
0x1246   : > { %2996 = vrot.lane.b32.xlu0 %v4676_v17, %s4760_s22 }
0x12ab   : > { %v2985_v57 = vpop.permute.xlu1 %2984 }
0x12ac   : > { %v3007_v55 = vmul.f32 %v2985_v57, %v2967_v50  ;;  %v2983_v45 = vpop.permute.xlu0 %2982  ;;  %v3064_v50 = vmul.f32 %v3058_v48, %v5886_v8  ;;  %v3066_v57 = vmul.f32 %v3058_v48, %v5884_v23  ;;  %v2972_v23 = vsub.f32 1.0, %v5938_v63 }
0x12ad   : > { %v3006_v40 = vmul.f32 %v2983_v45, %v2966_v10 }
0x12ae   : > { %v3038_v46 = vadd.f32 %v3030_v58, %v3007_v55  ;;  %v3080_v34 = vrot.slane %v3064_v50, 7 }
0x12af   : > { %v3037_v4 = vadd.f32 %v3029_v21, %v3006_v40  ;;  %v2989_v12 = vpop.permute.xlu1 %2988 }
0x12b0   : > { %v3050_v28 = vmul.f32 %v5982_v24, %v3038_v46  ;;  %v3009_v25 = vmul.f32 %v2989_v12, %v2969_v47  ;;  %v2987_v15 = vpop.permute.xlu0 %2986  ;;  %v2973_v47 = vsub.f32 1.0, %v5942_v53 }
0x12b1   : > { %v3049_v1 = vmul.f32 %v5982_v24, %v3037_v4  ;;  %v3008_v17 = vmul.f32 %v2987_v15, %v2968_v5 }
0x12b2   : > { %v5995_v30 = vadd.f32 %v3076_v19, %v3050_v28  ;;  %v3040_v56 = vadd.f32 %v3032_v60, %v3009_v25  ;;  %v3034_v19 = vmul.f32 %v5934_v7, %v3019_v22 }
0x12b3   : > { %v5999_v31 = vadd.f32 %v3075_v0, %v3049_v1  ;;  %v3039_v59 = vadd.f32 %v3031_v54, %v3008_v17  ;;  %v2993_v9 = vpop.permute.xlu1 %2992  ;;  %v3033_v0 = vmul.f32 %v5930_v61, %v3018_v18  ;;  %v3035_v61 = vmul.f32 %v5938_v63, %v2727_v36 }
0x12b4   : > { %v3108_v33 = vrot.slane %v5995_v30, 5  ;;  %v3052_v10 = vmul.f32 %v5982_v24, %v3040_v56  ;;  %v3011_v37 = vmul.f32 %v2993_v9, %v2971_v13  ;;  %v2991_v58 = vpop.permute.xlu0 %2990  ;;  %v3081_v36 = vrot.slane %v5980_v14, 7 }
0x12b5   : > { %v3107_v55 = vrot.slane %v5999_v31, 6  ;;  %v3051_v8 = vmul.f32 %v5982_v24, %v3039_v59  ;;  %v3010_v45 = vmul.f32 %v2991_v58, %v2970_v35 }
0x12b6   : > { %v6009_v39 = vadd.f32 %v3078_v43, %v3052_v10  ;;  %v3042_v21 = vadd.f32 %v3034_v19, %v3011_v37 }
0x12b7   : > { %v3109_v48 = vsel %vm815_vm3, %v3108_v33, %v3107_v55  ;;  %v6013_v40 = vadd.f32 %v3077_v49, %v3051_v8  ;;  %v3041_v7 = vadd.f32 %v3033_v0, %v3010_v45  ;;  %v2995_v46 = vpop.permute.xlu1 %2994  ;;  %v3036_v49 = vmul.f32 %v5942_v53, %v3020_v27 }
0x12b8   : > { %v3112_v4 = vrot.slane %v6009_v39, 3  ;;  %v3054_v12 = vmul.f32 %v5982_v24, %v3042_v21  ;;  %v3012_v43 = vmul.f32 %v2995_v46, %v2972_v23  ;;  %v2997_v5 = vpop.permute.xlu0 %2996  ;;  %v3082_v53 = vrot.slane %v3066_v57, 7 }
0x12b9   : > { %v3110_v18 = vrot.slane %v6013_v40, 4  ;;  %v3053_v28 = vmul.f32 %v5982_v24, %v3041_v7  ;;  %v3013_v60 = vmul.f32 %v2997_v5, %v2973_v47 }
0x12ba   : > { %v6024_v25 = vadd.f32 %v3080_v34, %v3054_v12  ;;  %v3043_v15 = vadd.f32 %v3035_v61, %v3012_v43 }
0x12bb   : > { %v6026_v1 = vadd.f32 %v3079_v42, %v3053_v28  ;;  %v3044_v54 = vadd.f32 %v3036_v49, %v3013_v60  ;;  %v3111_v17 = vsel %vm818_vm4, %v3110_v18, %v3109_v48 }
0x12bc   : > { %v3116_v52 = vrot.slane %v6024_v25, 1  ;;  %v3055_v63 = vmul.f32 %v5982_v24, %v3043_v15  ;;  %v3113_v22 = vsel %vm821_vm5, %v3112_v4, %v3111_v17 }
0x12bd   : > { %v3114_v56 = vrot.slane %v6026_v1, 2  ;;  %v3056_v27 = vmul.f32 %v5982_v24, %v3044_v54 }
0x12be   : > { %v6035_v13 = vadd.f32 %v3081_v36, %v3055_v63 }
0x12bf   : > { %v6037_v42 = vadd.f32 %v3082_v53, %v3056_v27  ;;  %v3115_v50 = vsel %vm824_vm6, %v3114_v56, %v3113_v22 }
0x12c0   : > { %v3117_v59 = vsel %vm827_vm7, %v3116_v52, %v3115_v50 }
0x12c1   : > { %v3118_v14 = vsel %vm830_vm8, %v6035_v13, %v3117_v59  ;;  %v3119_v9 = vrot.slane %v6037_v42, 7 }
0x12c3   : > { %v3120_v35 = vsel %vm833_vm9, %v3119_v9, %v3118_v14 }
0x12c4   : > { %3121 = vrot.lane.b32.xlu0 %v3120_v35, %s4760_s22 }
0x1336   : > { %v3122_v24 = vpop.permute.xlu0 %3121 }
0x1337   : > { %4295 = vmatmul.mubr.msk.f32.vlgmr.msra.gmra.mxu1 %vm499_vm10, %v3122_v24 }
0x1338   : > { %4319 = vmatprep.mubr.msk.f32.mxu1 %vm4757_vm1, %v4756_v3 }
0x13f7   : > { %v3191_v57 = vpop.f32.mrf.mxu1 }
0x13f8   : > { %v3267_v10 = vadd.f32 %v3191_v57, %v4922_v29  ;;  %v3196_v29 = vrot.slane %v3191_v57, 1  ;;  %v3197_v34 = vrot.slane %v3191_v57, 2  ;;  %v3198_v21 = vrot.slane %v3191_v57, 3 }
0x13f9   : > { %v4296_v33 = vpop.f32.mrf.mxu1  ;;  %v3199_v48 = vrot.slane %v3191_v57, 4  ;;  %v3200_v46 = vrot.slane %v3191_v57, 5  ;;  %v3201_v12 = vrot.slane %v3191_v57, 6  ;;  %v3202_v28 = vrot.slane %v3191_v57, 7 }
0x13fa   : > { %v3270_v19 = vrot.slane %v3267_v10, 2  ;;  %v3269_v37 = vrot.slane %v3267_v10, 1  ;;  %v3272_v58 = vrot.slane %v3267_v10, 4  ;;  %v3271_v55 = vrot.slane %v3267_v10, 3 }
0x13fb   : > { %v3274_v8 = vrot.slane %v3267_v10, 6  ;;  %v3273_v0 = vrot.slane %v3267_v10, 5  ;;  %v3275_v45 = vrot.slane %v3267_v10, 7  ;;  %v3211_v23 = vadd.f32 %v3196_v29, %v4943_v62 }
0x13fc   : > { %3278 = vrot.lane.b32.xlu0 %v3270_v19, %s4759_s21  ;;  %3276 = vrot.lane.b32.xlu1 %v3269_v37, %s4759_s21  ;;  %v3212_v7 = vadd.f32 %v3197_v34, %v4948_v16  ;;  %v3213_v47 = vadd.f32 %v3198_v21, %v4945_v11  ;;  %v3214_v61 = vadd.f32 %v3199_v48, %v4953_v20 }
0x13fd   : > { %v4109_v4 = vmul.f32 -1.442695, %v3211_v23  ;;  %v3215_v5 = vadd.f32 %v3200_v46, %v4958_v26  ;;  %v3216_v49 = vadd.f32 %v3201_v12, %v4961_v32  ;;  %v3218_v15 = vadd.f32 %v3191_v57, %v4969_v41 }
0x13fe   : > { %v4110_v43 = vmul.f32 -1.442695, %v3212_v7  ;;  %v4111_v18 = vmul.f32 -1.442695, %v3213_v47  ;;  %v4112_v60 = vmul.f32 -1.442695, %v3214_v61  ;;  %v3217_v17 = vadd.f32 %v3202_v28, %v4965_v38 }
0x13ff   : > { %4677 = vpow2.f32 %v4109_v4  ;;  %v4113_v54 = vmul.f32 -1.442695, %v3215_v5  ;;  %v4114_v52 = vmul.f32 -1.442695, %v3216_v49  ;;  %v4116_v36 = vmul.f32 -1.442695, %v3218_v15 }
0x1400   : > { %3282 = vrot.lane.b32.xlu0 %v3272_v58, %s4759_s21  ;;  %3280 = vrot.lane.b32.xlu1 %v3271_v55, %s4759_s21  ;;  %4679 = vpow2.f32 %v4110_v43  ;;  %v4115_v63 = vmul.f32 -1.442695, %v3217_v17 }
0x1401   : > { %4681 = vpow2.f32 %v4111_v18 }
0x1402   : > { %4683 = vpow2.f32 %v4112_v60 }
0x1403   : > { %4685 = vpow2.f32 %v4113_v54 }
0x1404   : > { %3286 = vrot.lane.b32.xlu0 %v3274_v8, %s4759_s21  ;;  %3284 = vrot.lane.b32.xlu1 %v3273_v0, %s4759_s21  ;;  %4687 = vpow2.f32 %v4114_v52 }
0x1405   : > { %4689 = vpow2.f32 %v4116_v36 }
0x1406   : > { %4691 = vpow2.f32 %v4115_v63 }
0x1408   : > { %3290 = vrot.lane.b32.xlu0 %v3267_v10, %s4759_s21  ;;  %3288 = vrot.lane.b32.xlu1 %v3275_v45, %s4759_s21 }
0x140c   : > { %v4678_v22 = vpop.eup %4677 }
0x140d   : > { %v4680_v56 = vpop.eup %4679  ;;  %v3243_v53 = vadd.f32 1.0, %v4678_v22 }
0x140e   : > { %v4682_v27 = vpop.eup %4681  ;;  %v3244_v50 = vadd.f32 1.0, %v4680_v56 }
0x140f   : > { %v4684_v59 = vpop.eup %4683  ;;  %v3245_v14 = vadd.f32 1.0, %v4682_v27  ;;  %4693 = vrcp.f32 %v3243_v53 }
0x1410   : > { %v4686_v35 = vpop.eup %4685  ;;  %v3246_v24 = vadd.f32 1.0, %v4684_v59  ;;  %4695 = vrcp.f32 %v3244_v50 }
0x1411   : > { %v4688_v57 = vpop.eup %4687  ;;  %v3247_v33 = vadd.f32 1.0, %v4686_v35  ;;  %4697 = vrcp.f32 %v3245_v14 }
0x1412   : > { %v4690_v10 = vpop.eup %4689  ;;  %v3248_v19 = vadd.f32 1.0, %v4688_v57  ;;  %4699 = vrcp.f32 %v3246_v24 }
0x1413   : > { %v4692_v37 = vpop.eup %4691  ;;  %v3250_v58 = vadd.f32 1.0, %v4690_v10  ;;  %4701 = vrcp.f32 %v3247_v33 }
0x1414   : > { %v3249_v55 = vadd.f32 1.0, %v4692_v37  ;;  %4703 = vrcp.f32 %v3248_v19 }
0x1415   : > { %4705 = vrcp.f32 %v3250_v58  ;;  %v3492_v58 = vld [vmem:[%s6269_s5 + $0x18] sm:$0xff] }
0x1416   : > { %4707 = vrcp.f32 %v3249_v55  ;;  %v6121_v55 = vld [vmem:[%s6269_s5 + $0x20] sm:$0xff]  ;;  %4312 = vmatpush3.msra.mxu1 %v3492_v58 }
0x1417   : > { %4297 = vmatprep.subr.msk.mxu0 %vm371_vm0, %v6121_v55  ;;  %4313 = vmatprep.subr.mxu1 %v4756_v3 }
0x1418   : > { %4298 = vmatpush3.msk.msra.mxu0 %vm371_vm0, %v6121_v55 }
0x141c   : > { %v6068_v8 = vpop.eup %4693 }
0x141d   : > { %v6070_v0 = vpop.eup %4695 }
0x141e   : > { %v6074_v23 = vpop.eup %4697 }
0x141f   : > { %v6078_v48 = vpop.eup %4699 }
0x1420   : > { %v6082_v12 = vpop.eup %4701 }
0x1421   : > { %v6086_v61 = vpop.eup %4703 }
0x1422   : > { %v6090_v49 = vpop.eup %4705  ;;  %v3361_v58 = vsub.f32 1.0, %v6086_v61 }
0x1423   : > { %v6094_v60 = vpop.eup %4707 }
0x146e   : > { %v3279_v45 = vpop.permute.xlu0 %3278  ;;  %v3277_v29 = vpop.permute.xlu1 %3276 }
0x146f   : > { %v3301_v34 = vmul.f32 %v6070_v0, %v3279_v45  ;;  %v3300_v21 = vmul.f32 %v6068_v8, %v3277_v29  ;;  %v3494_v45 = vld [vmem:[%s6127_s19] sm:$0xff]  ;;  %v3491_v29 = vld [vmem:[%s6269_s5 + $0x10] sm:$0xff] }
0x1470   : > { %4299 = vmatprep.mubr.msk.f32.mxu0 %vm346_vm2, %v3494_v45  ;;  %4314 = vmatpush3.msra.mxu1 %v3491_v29 }
0x1471   : > { %3318 = vrot.lane.b32.xlu0 %v3301_v34, %s4759_s21  ;;  %3316 = vrot.lane.b32.xlu1 %v3300_v21, %s4759_s21  ;;  %v3495_v34 = vld [vmem:[%s6127_s19 + $0x8] sm:$0xff]  ;;  %v3496_v21 = vld [vmem:[%s6127_s19 + $0x10] sm:$0xff] }
0x1472   : > { %v3283_v7 = vpop.permute.xlu0 %3282  ;;  %v3281_v46 = vpop.permute.xlu1 %3280  ;;  %4300 = vmatmul.mubr.msk.f32.vlgmr.msra.gmra.mxu0 %vm346_vm2, %v3495_v34  ;;  %4315 = vmatprep.subr.mxu1 %v4756_v3 }
0x1473   : > { %v3303_v47 = vmul.f32 %v6078_v48, %v3283_v7  ;;  %v3302_v4 = vmul.f32 %v6074_v23, %v3281_v46  ;;  %v3490_v7 = vld [vmem:[%s6269_s5 + $0x8] sm:$0xff]  ;;  %4302 = vmatprep.mubr.msk.f32.mxu0 %vm346_vm2, %v3496_v21  ;;  %v3489_v46 = vld [vmem:[%s6269_s5] sm:$0xff]  ;;  %v3410_v21 = vrot.slane %v6035_v13, 7 }
0x1474   : > { %4316 = vmatpush3.msra.mxu1 %v3490_v7 }
0x1475   : > { %3322 = vrot.lane.b32.xlu0 %v3303_v47, %s4759_s21  ;;  %3320 = vrot.lane.b32.xlu1 %v3302_v4, %s4759_s21  ;;  %v6153_v47 = vstv %s3447_s30 }
0x1476   : > { %v3287_v43 = vpop.permute.xlu0 %3286  ;;  %v3285_v5 = vpop.permute.xlu1 %3284  ;;  %4317 = vmatprep.subr.mxu1 %v4756_v3  ;;  %v3450_v4 = vmul.f32 %v6153_v47, %v5995_v30  ;;  %v3452_v3 = vmul.f32 %v6153_v47, %v6009_v39 }
0x1477   : > { %v3305_v18 = vmul.f32 %v6086_v61, %v3287_v43  ;;  %v3304_v28 = vmul.f32 %v6082_v12, %v3285_v5  ;;  %4318 = vmatpush3.msra.mxu1 %v3489_v46  ;;  %v3449_v43 = vmul.f32 %v6153_v47, %v5999_v31  ;;  %v3357_v5 = vsub.f32 1.0, %v6070_v0 }
0x1479   : > { %3326 = vrot.lane.b32.xlu0 %v3305_v18, %s4759_s21  ;;  %3324 = vrot.lane.b32.xlu1 %v3304_v28, %s4759_s21  ;;  %v3405_v18 = vrot.slane %v5995_v30, 7  ;;  %v3404_v28 = vrot.slane %v5999_v31, 7  ;;  %v3406_v30 = vrot.slane %v6013_v40, 7  ;;  %v6170_v31 = vstv %s3437_s29 }
0x147a   : > { %v3291_v15 = vpop.permute.xlu0 %3290  ;;  %v3289_v54 = vpop.permute.xlu1 %3288 }
0x147b   : > { %v3307_v17 = vmul.f32 %v6090_v49, %v3291_v15  ;;  %v3306_v52 = vmul.f32 %v6094_v60, %v3289_v54  ;;  %v3466_v15 = vrot.slane %v3450_v4, 7 }
0x147d   : > { %3330 = vrot.lane.b32.xlu0 %v3307_v17, %s4759_s21  ;;  %3328 = vrot.lane.b32.xlu1 %v3306_v52, %s4759_s21  ;;  %v3356_v17 = vsub.f32 1.0, %v6068_v8  ;;  %v3465_v52 = vrot.slane %v3449_v43, 7 }
0x14e3   : > { %v3319_v36 = vpop.permute.xlu0 %3318  ;;  %v3317_v63 = vpop.permute.xlu1 %3316 }
0x14e4   : > { %v3341_v22 = vadd.f32 %v3319_v36, %v4948_v16  ;;  %v3340_v56 = vadd.f32 %v3317_v63, %v4943_v62  ;;  %v3451_v36 = vmul.f32 %v6153_v47, %v6013_v40  ;;  %v3420_v63 = vmul.f32 %v6070_v0, %v3405_v18 }
0x14e5   : > { %v3453_v0 = vmul.f32 %v6153_v47, %v6026_v1 }
0x14e6   : > { %4709 = vtanh.f32 %v3341_v22  ;;  %v3467_v40 = vrot.slane %v3451_v36, 7 }
0x14e7   : > { %4711 = vtanh.f32 %v3340_v56  ;;  %v3323_v53 = vpop.permute.xlu0 %3322  ;;  %v3321_v27 = vpop.permute.xlu1 %3320  ;;  %v3469_v45 = vrot.slane %v3453_v0, 7  ;;  %v3499_v0 = vld [vmem:[%s6127_s19 + $0x28] sm:$0xff] }
0x14e8   : > { %v3343_v50 = vadd.f32 %v3323_v53, %v4953_v20  ;;  %v3342_v59 = vadd.f32 %v3321_v27, %v4945_v11  ;;  %v3407_v53 = vrot.slane %v6009_v39, 7  ;;  %v3419_v27 = vmul.f32 %v6068_v8, %v3404_v28 }
0x14e9   : > { %v3358_v39 = vsub.f32 1.0, %v6074_v23 }
0x14ea   : > { %4713 = vtanh.f32 %v3343_v50 }
0x14eb   : > { %4715 = vtanh.f32 %v3342_v59  ;;  %v3327_v14 = vpop.permute.xlu0 %3326  ;;  %v3325_v35 = vpop.permute.xlu1 %3324  ;;  %v3454_v59 = vmul.f32 %v6153_v47, %v6024_v25 }
0x14ec   : > { %v3345_v24 = vadd.f32 %v3327_v14, %v4961_v32  ;;  %v3344_v57 = vadd.f32 %v3325_v35, %v4958_v26  ;;  %v3359_v35 = vsub.f32 1.0, %v6078_v48 }
0x14ee   : > { %4717 = vtanh.f32 %v3345_v24  ;;  %v3468_v24 = vrot.slane %v3452_v3, 7 }
0x14ef   : > { %4719 = vtanh.f32 %v3344_v57  ;;  %v3331_v16 = vpop.permute.xlu0 %3330  ;;  %v3329_v62 = vpop.permute.xlu1 %3328 }
0x14f0   : > { %v3347_v33 = vadd.f32 %v3331_v16, %v4969_v41  ;;  %v3346_v10 = vadd.f32 %v3329_v62, %v4965_v38  ;;  %v3409_v62 = vrot.slane %v6024_v25, 7 }
0x14f2   : > { %4721 = vtanh.f32 %v3347_v33  ;;  %v3422_v33 = vmul.f32 %v6078_v48, %v3407_v53  ;;  %v3360_v48 = vsub.f32 1.0, %v6082_v12  ;;  %v3424_v46 = vmul.f32 %v6086_v61, %v3409_v62 }
0x14f3   : > { %v4710_v20 = vpop.eup %4709  ;;  %4723 = vtanh.f32 %v3346_v10  ;;  %v3456_v62 = vmul.f32 %v6153_v47, %v6037_v42 }
0x14f4   : > { %v4712_v11 = vpop.eup %4711  ;;  %3374 = vrot.lane.b32.xlu0 %v4710_v20, %s4760_s22 }
0x14f5   : > { %3372 = vrot.lane.b32.xlu1 %v4712_v11, %s4760_s22  ;;  %v3408_v11 = vrot.slane %v6026_v1, 7 }
0x14f7   : > { %v4714_v32 = vpop.eup %4713  ;;  %v3423_v18 = vmul.f32 %v6082_v12, %v3408_v11  ;;  %v3501_v11 = vld [vmem:[%s6127_s19 + $0x38] sm:$0xff] }
0x14f8   : > { %v4716_v19 = vpop.eup %4715  ;;  %3378 = vrot.lane.b32.xlu0 %v4714_v32, %s4760_s22 }
0x14f9   : > { %3376 = vrot.lane.b32.xlu1 %v4716_v19, %s4760_s22  ;;  %v3421_v19 = vmul.f32 %v6074_v23, %v3406_v30  ;;  %v3426_v30 = vmul.f32 %v6090_v49, %v3119_v9 }
0x14fb   : > { %v4718_v26 = vpop.eup %4717 }
0x14fc   : > { %v4720_v37 = vpop.eup %4719  ;;  %3382 = vrot.lane.b32.xlu0 %v4718_v26, %s4760_s22 }
0x14fd   : > { %3380 = vrot.lane.b32.xlu1 %v4720_v37, %s4760_s22  ;;  %v3470_v37 = vrot.slane %v3454_v59, 7 }
0x14ff   : > { %v4722_v38 = vpop.eup %4721 }
0x1500   : > { %v4724_v41 = vpop.eup %4723  ;;  %3386 = vrot.lane.b32.xlu0 %v4722_v38, %s4760_s22 }
0x1501   : > { %3384 = vrot.lane.b32.xlu1 %v4724_v41, %s4760_s22 }
0x1566   : > { %v3375_v54 = vpop.permute.xlu0 %3374 }
0x1567   : > { %v3397_v22 = vmul.f32 %v3375_v54, %v3357_v5  ;;  %v3373_v56 = vpop.permute.xlu1 %3372  ;;  %v3363_v54 = vsub.f32 1.0, %v6090_v49 }
0x1568   : > { %v3396_v50 = vmul.f32 %v3373_v56, %v3356_v17  ;;  %v3455_v17 = vmul.f32 %v6153_v47, %v6035_v13  ;;  %v3497_v56 = vld [vmem:[%s6127_s19 + $0x18] sm:$0xff]  ;;  %v3498_v13 = vld [vmem:[%s6127_s19 + $0x20] sm:$0xff] }
0x1569   : > { %v3428_v14 = vadd.f32 %v3420_v63, %v3397_v22  ;;  %v3362_v22 = vsub.f32 1.0, %v6094_v60  ;;  %4303 = vmatmul.mubr.msk.f32.gmra.mxu0 %vm346_vm2, %v3497_v56 }
0x156a   : > { %v3427_v57 = vadd.f32 %v3419_v27, %v3396_v50  ;;  %v3379_v16 = vpop.permute.xlu0 %3378  ;;  %4305 = vmatprep.mubr.msk.f32.mxu0 %vm346_vm2, %v3498_v13  ;;  %v3851_v13 = vrot.slane %v6121_v55, %v489_v51 }
0x156b   : > { %v3440_v8 = vmul.f32 %v6170_v31, %v3428_v14  ;;  %v3399_v10 = vmul.f32 %v3379_v16, %v3359_v35  ;;  %v3377_v20 = vpop.permute.xlu1 %3376  ;;  %v3425_v35 = vmul.f32 %v6094_v60, %v3410_v21 }
0x156c   : > { %v3439_v32 = vmul.f32 %v6170_v31, %v3427_v57  ;;  %v3398_v26 = vmul.f32 %v3377_v20, %v3358_v39  ;;  %v3500_v39 = vld [vmem:[%s6127_s19 + $0x30] sm:$0xff] }
0x156d   : > { %v3482_v38 = vadd.f32 %v3466_v15, %v3440_v8  ;;  %v3430_v41 = vadd.f32 %v3422_v33, %v3399_v10  ;;  %4306 = vmatmul.mubr.msk.f32.gmra.mxu0 %vm346_vm2, %v3499_v0  ;;  %v3471_v10 = vrot.slane %v3455_v17, 7 }
0x156e   : > { %v3481_v25 = vadd.f32 %v3465_v52, %v3439_v32  ;;  %v3429_v29 = vadd.f32 %v3421_v19, %v3398_v26  ;;  %v3383_v34 = vpop.permute.xlu0 %3382  ;;  %4308 = vmatprep.mubr.msk.f32.mxu0 %vm346_vm2, %v3500_v39 }
0x156f   : > { %v3643_v7 = vrot.slane %v3482_v38, 6  ;;  %v3442_v1 = vmul.f32 %v6170_v31, %v3430_v41  ;;  %v3401_v23 = vmul.f32 %v3383_v34, %v3361_v58  ;;  %v3381_v4 = vpop.permute.xlu1 %3380 }
0x1570   : > { %v3642_v43 = vrot.slane %v3481_v25, 7  ;;  %v3441_v5 = vmul.f32 %v6170_v31, %v3429_v29  ;;  %v3400_v28 = vmul.f32 %v3381_v4, %v3360_v48  ;;  %v4301_v25 = vpop.f32.mrf.mxu0  ;;  %v4761_v48 = vmov 1966171168  }
0x1571   : > { %v3484_v3 = vadd.f32 %v3468_v24, %v3442_v1  ;;  %v3432_v15 = vadd.f32 %v3424_v46, %v3401_v23  ;;  %4309 = vmatmul.mubr.msk.f32.gmra.mxu0 %vm346_vm2, %v3501_v11  ;;  %v3733_v21 = vunpack.c.l.s4 %v4761_v48  ;;  %v3830_v4 = vsub.s32 4, %v4830_v6 }
0x1572   : > { %v3644_v52 = vsel %vm815_vm3, %v3643_v7, %v3642_v43  ;;  %v3483_v61 = vadd.f32 %v3467_v40, %v3441_v5  ;;  %v3431_v36 = vadd.f32 %v3423_v18, %v3400_v28  ;;  %v3387_v63 = vpop.permute.xlu0 %3386  ;;  %v3595_v29 = vpop.f32.mrf.mxu0 }
0x1573   : > { %v3647_v12 = vrot.slane %v3484_v3, 4  ;;  %v3444_v53 = vmul.f32 %v6170_v31, %v3432_v15  ;;  %v3403_v27 = vmul.f32 %v3387_v63, %v3363_v54  ;;  %v3385_v50 = vpop.permute.xlu1 %3384  ;;  %v3734_v7 = vunpack.c.0.s8 %v3733_v21 }
0x1574   : > { %v3645_v59 = vrot.slane %v3483_v61, 5  ;;  %v3443_v14 = vmul.f32 %v6170_v31, %v3431_v36  ;;  %v3402_v24 = vmul.f32 %v3385_v50, %v3362_v22 }
0x1575   : > { %v3486_v57 = vadd.f32 %v3470_v37, %v3444_v53  ;;  %v3434_v16 = vadd.f32 %v3426_v30, %v3403_v27  ;;  %v3472_v37 = vrot.slane %v3456_v62, 7  ;;  %v3737_v46 = vsub.s32 %v3734_v7, %v4830_v6 }
0x1576   : > { %v3646_v9 = vsel %vm818_vm4, %v3645_v59, %v3644_v52  ;;  %v3485_v49 = vadd.f32 %v3469_v45, %v3443_v14  ;;  %v3433_v40 = vadd.f32 %v3425_v35, %v3402_v24  ;;  %v3831_v52 = vrot.slane %v6121_v55, %v3830_v4 }
0x1577   : > { %v3651_v8 = vrot.slane %v3486_v57, 2  ;;  %v3648_v33 = vsel %vm821_vm5, %v3647_v12, %v3646_v9  ;;  %v3446_v32 = vmul.f32 %v6170_v31, %v3434_v16 }
0x1578   : > { %v3649_v60 = vrot.slane %v3485_v49, 3  ;;  %v3445_v20 = vmul.f32 %v6170_v31, %v3433_v40  ;;  %v3884_v31 = vrot.slane %v6121_v55, 6 }
0x1579   : > { %v3488_v38 = vadd.f32 %v3472_v37, %v3446_v32 }
0x157a   : > { %v3487_v19 = vadd.f32 %v3471_v10, %v3445_v20  ;;  %v3650_v26 = vsel %vm824_vm6, %v3649_v60, %v3648_v33  ;;  %4322 = vpush %v3884_v31 }
0x157b   : > { %v3652_v42 = vsel %vm827_vm7, %v3651_v8, %v3650_v26 }
0x157c   : > { %v3653_v47 = vrot.slane %v3487_v19, 1 }
0x157e   : > { %v3654_v41 = vsel %vm830_vm8, %v3653_v47, %v3652_v42 }
0x157f   : > { %v3655_v58 = vsel %vm833_vm9, %v3488_v38, %v3654_v41 }
0x1580   : > { %3656 = vrot.lane.b32.xlu1 %v3655_v58, %s4760_s22 }
0x15ab   : > { %s4323_s22 = spop %4322 }
0x15f2   : > { %v3657_v45 = vpop.permute.xlu1 %3656 }
0x15f3   : > { %4320 = vmatmul.mubr.msk.f32.vlgmr.msra.gmra.mxu1 %vm499_vm10, %v3657_v45 }
0x1629   : > { %v4304_v34 = vpop.f32.mrf.mxu0 }
0x162b   : > { %v3605_v1 = vpop.f32.mrf.mxu0 }
0x162d   : > { %v4307_v23 = vpop.f32.mrf.mxu0 }
0x162f   : > { %v3615_v28 = vpop.f32.mrf.mxu0 }
0x1631   : > { %v4310_v56 = vpop.f32.mrf.mxu0 }
0x1633   : > { %v3625_v57 = vpop.f32.mrf.mxu0 }
0x16b3   : > { %v3726_v43 = vpop.f32.mrf.mxu1 }
0x16b4   : > { %v3731_v5 = vcombine.high %v3726_v43, %v3726_v43  ;;  %v3738_v18 = vrot.slane %v3726_v43, %v3737_v46 }
0x16b5   : > { %v4321_v3 = vpop.f32.mrf.mxu1 }
0x16b6   : > { %v3745_v15 = vrot.slane %v3731_v5, %v3737_v46  ;;  %v3746_v54 = vcombine.high %v3738_v18, %v3738_v18  ;;  %v3754_v17 = vrot.slane %v3738_v18, %v3737_v46 }
0x16b8   : > { %v3747_v61 = vcombine.high %v3745_v15, %v3745_v15  ;;  %v3768_v36 = vrot.slane %v3746_v54, %v3737_v46  ;;  %v3783_v63 = vrot.slane %v3754_v17, %v4935_v44  ;;  %v3776_v22 = vcombine.high %v3754_v17, %v3754_v17 }
0x16b9   : > { %v3761_v12 = vrot.slane %v3745_v15, %v3737_v46  ;;  %v3905_v54 = vand.u32 127, %v332_v2  ;;  %v3886_v17 = vstv %s4323_s22 }
0x16ba   : > { %v3778_v53 = vcombine.high %v3768_v36, %v3768_v36  ;;  %v3787_v30 = vrot.slane %v3768_v36, %v4935_v44  ;;  %v3820_v27 = vadd.f32 %v3783_v63, %v3595_v29  ;;  %v3791_v50 = vrot.slane %v3776_v22, %v4935_v44 }
0x16bb   : > { %v3775_v59 = vrot.slane %v3747_v61, %v3737_v46  ;;  %v3799_v14 = vrot.slane %v3761_v12, %v4935_v44  ;;  %v3777_v35 = vcombine.high %v3761_v12, %v3761_v12  ;;  %v3908_v36 = vsub.s32 %v3905_v54, %v4830_v6 }
0x16bc   : > { %v3795_v24 = vrot.slane %v3778_v53, %v4935_v44  ;;  %v3822_v0 = vadd.f32 %v3791_v50, %v3605_v1  ;;  %v3832_v16 = vadd.f32 %v3831_v52, %v3820_v27  ;;  %v3821_v39 = vadd.f32 %v4301_v25, %v3787_v30 }
0x16bd   : > { %v3803_v9 = vrot.slane %v3775_v59, %v4935_v44  ;;  %v3824_v49 = vadd.f32 %v3799_v14, %v3615_v28  ;;  %v3779_v40 = vcombine.high %v3775_v59, %v3775_v59  ;;  %v3807_v62 = vrot.slane %v3777_v35, %v4935_v44 }
0x16be   : > { %v3834_v8 = vadd.f32 %v3831_v52, %v3822_v0  ;;  %v3840_v33 = vmax.f32 %v3832_v16, 0.0  ;;  %v3833_v60 = vadd.f32 %v3831_v52, %v3821_v39  ;;  %v3823_v51 = vadd.f32 %v4304_v34, %v3795_v24 }
0x16bf   : > { %v3825_v55 = vadd.f32 %v4307_v23, %v3803_v9  ;;  %v3836_v10 = vadd.f32 %v3831_v52, %v3824_v49  ;;  %v3811_v20 = vrot.slane %v3779_v40, %v4935_v44  ;;  %v3826_v11 = vadd.f32 %v3807_v62, %v3625_v57 }
0x16c0   : > { %v3842_v32 = vmax.f32 %v3834_v8, 0.0  ;;  %v3852_v19 = vmul.f32 %v3851_v13, %v3840_v33  ;;  %v3841_v26 = vmax.f32 %v3833_v60, 0.0  ;;  %v3835_v37 = vadd.f32 %v3831_v52, %v3823_v51 }
0x16c1   : > { %v3837_v42 = vadd.f32 %v3831_v52, %v3825_v55  ;;  %v3844_v47 = vmax.f32 %v3836_v10, 0.0  ;;  %v3827_v38 = vadd.f32 %v4310_v56, %v3811_v20  ;;  %v3838_v41 = vadd.f32 %v3831_v52, %v3826_v11 }
0x16c2   : > { %v3860_v58 = vsel %vm499_vm10, %v3852_v19, 0.0  ;;  %v3853_v45 = vmul.f32 %v3851_v13, %v3841_v26  ;;  %v3854_v31 = vmul.f32 %v3851_v13, %v3842_v32  ;;  %v3843_v25 = vmax.f32 %v3835_v37, 0.0 }
0x16c3   : > { %3861 = vadd.xlane.f32.xlu0 %v3860_v58  ;;  %v3846_v29 = vmax.f32 %v3838_v41, 0.0  ;;  %v3856_v48 = vmul.f32 %v3851_v13, %v3844_v47  ;;  %v3845_v44 = vmax.f32 %v3837_v42, 0.0  ;;  %v3839_v21 = vadd.f32 %v3831_v52, %v3827_v38 }
0x16c4   : > { %v3863_v34 = vsel %vm499_vm10, %v3853_v45, 0.0  ;;  %v3866_v7 = vsel %vm499_vm10, %v3854_v31, 0.0  ;;  %v3855_v1 = vmul.f32 %v3851_v13, %v3843_v25 }
0x16c5   : > { %3864 = vadd.xlane.f32.xlu1 %v3863_v34  ;;  %v3872_v46 = vsel %vm499_vm10, %v3856_v48, 0.0  ;;  %v3858_v23 = vmul.f32 %v3851_v13, %v3846_v29  ;;  %v3847_v4 = vmax.f32 %v3839_v21, 0.0  ;;  %v3857_v5 = vmul.f32 %v3851_v13, %v3845_v44 }
0x16c6   : > { %v3869_v43 = vsel %vm499_vm10, %v3855_v1, 0.0 }
0x16c7   : > { %3867 = vadd.xlane.f32.xlu0 %v3866_v7  ;;  %v3878_v18 = vsel %vm499_vm10, %v3858_v23, 0.0  ;;  %v3875_v28 = vsel %vm499_vm10, %v3857_v5, 0.0  ;;  %v3859_v3 = vmul.f32 %v3851_v13, %v3847_v4 }
0x16c9   : > { %3873 = vadd.xlane.f32.xlu1 %v3872_v46  ;;  %v3881_v15 = vsel %vm499_vm10, %v3859_v3, 0.0 }
0x16cb   : > { %3870 = vadd.xlane.f32.xlu0 %v3869_v43 }
0x16cd   : > { %3879 = vadd.xlane.f32.xlu1 %v3878_v18 }
0x16cf   : > { %3876 = vadd.xlane.f32.xlu0 %v3875_v28 }
0x16d3   : > { %3882 = vadd.xlane.f32.xlu0 %v3881_v15 }
0x174c   : > { %v3862_v52 = vpop.xlane.xlu0 %3861 }
0x174d   : > { %v3888_v63 = vadd.f32 %v3886_v17, %v3862_v52 }
0x174e   : > { %v3865_v61 = vpop.xlane.xlu1 %3864 }
0x174f   : > { %v3889_v22 = vadd.f32 %v3886_v17, %v3865_v61  ;;  %v3909_v27 = vrot.slane %v3888_v63, %v3908_v36 }
0x1750   : > { %v3868_v56 = vpop.xlane.xlu0 %3867 }
0x1751   : > { %v3913_v12 = vrot.slane %v3889_v22, %v3908_v36  ;;  %v3890_v53 = vadd.f32 %v3886_v17, %v3868_v56 }
0x1752   : > { %v3874_v30 = vpop.xlane.xlu1 %3873 }
0x1753   : > { %v3917_v50 = vrot.slane %v3890_v53, %v3908_v36  ;;  %v3938_v59 = vsel %vm815_vm3, %v3913_v12, %v3909_v27  ;;  %v3892_v35 = vadd.f32 %v3886_v17, %v3874_v30 }
0x1754   : > { %v3871_v13 = vpop.xlane.xlu0 %3870 }
0x1755   : > { %v3891_v14 = vadd.f32 %v3886_v17, %v3871_v13  ;;  %v3939_v0 = vsel %vm818_vm4, %v3917_v50, %v3938_v59  ;;  %v3925_v39 = vrot.slane %v3892_v35, %v3908_v36 }
0x1756   : > { %v3880_v24 = vpop.xlane.xlu1 %3879 }
0x1757   : > { %v3921_v2 = vrot.slane %v3891_v14, %v3908_v36  ;;  %v3894_v9 = vadd.f32 %v3886_v17, %v3880_v24 }
0x1758   : > { %v3877_v57 = vpop.xlane.xlu0 %3876 }
0x1759   : > { %v3940_v6 = vsel %vm821_vm5, %v3921_v2, %v3939_v0  ;;  %v3893_v16 = vadd.f32 %v3886_v17, %v3877_v57  ;;  %v3933_v60 = vrot.slane %v3894_v9, %v3908_v36 }
0x175a   : > { %v3941_v40 = vsel %vm824_vm6, %v3925_v39, %v3940_v6 }
0x175b   : > { %v3929_v49 = vrot.slane %v3893_v16, %v3908_v36 }
0x175c   : > { %v3883_v62 = vpop.xlane.xlu0 %3882 }
0x175d   : > { %v3942_v8 = vsel %vm827_vm7, %v3929_v49, %v3941_v40  ;;  %v3895_v33 = vadd.f32 %v3886_v17, %v3883_v62 }
0x175e   : > { %v3943_v55 = vsel %vm830_vm8, %v3933_v60, %v3942_v8 }
0x175f   : > { %v3937_v51 = vrot.slane %v3895_v33, %v3908_v36 }
0x1761   : > { %v3944_v10 = vsel %vm833_vm9, %v3937_v51, %v3943_v55 }
0x1762   : > { %3947 = vst.msk [vmem:[%s269_s11] sm:$0xff] %vm3946_vm11, %v3944_v10 }
0x1763 PF: > { %s22_s26 = sadd.s32 1, %s4753_s26  }
0x1764   : > { %p19_p1 = scmp.ge.s32.totalorder %s22_s26, 6  }
0x1766   :  { %21 = sbr.rel (!%p19_p1) target bundleno = 16 (0x10), region = 76 }

</bundles_post_ra>
